<compile_context>
chip_gen: v5e
topology: v5e:2x2
jax: 0.10.0
libtpu: 0.0.40
codegen_flags: <defaults>
</compile_context>

<pallas_src>
import numpy as np

import jax
import jax.numpy as jnp
from jax.experimental import pallas as pl
from jax.experimental.pallas import tpu as pltpu

EPS = 1e-5            # PyTorch BatchNorm1d default eps
LANES = 128           # channel padding / lane width
NUM_CLASSES = 8


# ------------------------------ fused kernel ---------------------------------

def _make_kernel(lgs, num_layers, lanes):
    """lgs: logical spatial length of each dense block (static Python ints)."""
    nb = len(lgs)

    def kernel(x_ref, wst_ref, ss_ref, sb_ref,
               n1s_ref, n1b_ref, w1_ref, n2s_ref, n2b_ref, w2_ref,
               ts_ref, tb_ref, tw_ref, p1_ref, p2_ref, p3_ref,
               c5s_ref, c5b_ref, cw_ref, cb_ref, o_ref):
        f32 = jnp.float32

        # ---------------- stem: conv0(k7,s2,p3) + BN + ReLU + MaxPool(3,2,1) -
        # x_ref[0]: (L/4, 36) = [prev group | cur group | next group] of 4
        # positions x 3 channels.  One bf16 matmul produces even and odd conv
        # outputs side by side along lanes: h[:, :128]=even, h[:, 128:]=odd.
        xs = x_ref[0].astype(jnp.bfloat16)                         # (L4, 36)
        h = jnp.dot(xs, wst_ref[...], preferred_element_type=f32)  # (L4, 256)
        h = jnp.maximum(h * ss_ref[...] + sb_ref[...], 0.0)        # BN + ReLU
        he = h[:, :lanes]                                          # h[2i]
        ho = h[:, lanes:]                                          # h[2i+1]
        row = jax.lax.broadcasted_iota(jnp.int32, he.shape, 0)
        ho_prev = jnp.where(row == 0, 0.0,
                            pltpu.roll(ho, shift=1, axis=0))       # h[2i-1]
        # pool[i] = max(h[2i-1], h[2i], h[2i+1]); zero pad OK since h >= 0.
        feats = jnp.maximum(jnp.maximum(he, ho), ho_prev)          # (L4, 128)

        # ---------------- dense blocks (+ transitions) ------------------------
        pools = (p1_ref, p2_ref, p3_ref)
        for b in range(nb):
            lg = lgs[b]                       # logical length of this block
            lb = feats.shape[0]               # buffer length (>= 8 sublanes)
            row = jax.lax.broadcasted_iota(jnp.int32, (lb, lanes), 0)
            for j in range(num_layers):
                li = num_layers * b + j
                # BN1 + ReLU (scale/bias zero on pad / not-yet-written lanes)
                a1 = jnp.maximum(feats * n1s_ref[li] + n1b_ref[li], 0.0)
                # conv1 (1x1): (lb,128) @ (128,48) bf16
                b1 = jnp.dot(a1.astype(jnp.bfloat16), w1_ref[li],
                             preferred_element_type=f32)
                # BN2 + ReLU
                h2 = jnp.maximum(b1 * n2s_ref[li] + n2b_ref[li], 0.0)
                h2b = h2.astype(jnp.bfloat16)
                # conv2 (k=3, pad=1): three bf16 tap matmuls; weights are
                # pre-scattered into this layer's channel slice, so adding to
                # `feats` *is* the dense concatenation.  Spatial shifts are
                # XLU rolls + boundary masks (no f32 matmuls).
                t0 = jnp.dot(h2b, w2_ref[3 * li + 0], preferred_element_type=f32)
                t1 = jnp.dot(h2b, w2_ref[3 * li + 1], preferred_element_type=f32)
                t2 = jnp.dot(h2b, w2_ref[3 * li + 2], preferred_element_type=f32)
                down = jnp.where(row == 0, 0.0,
                                 pltpu.roll(t0, shift=1, axis=0))       # h2[l-1]
                up = jnp.where(row >= lg - 1, 0.0,
                               pltpu.roll(t2, shift=lb - 1, axis=0))    # h2[l+1]
                feats = feats + t1 + down + up
            if b < nb - 1:
                # transition: BN + ReLU + AvgPool(4,4) + 1x1 conv
                # (pool and 1x1 conv commute; pool first is cheaper).
                ht = jnp.maximum(feats * ts_ref[b] + tb_ref[b], 0.0)
                hp = jnp.dot(pools[b][...], ht.astype(jnp.bfloat16),
                             preferred_element_type=f32)
                feats = jnp.dot(hp.astype(jnp.bfloat16), tw_ref[b],
                                preferred_element_type=f32)

        # ---------------- head: norm5 + ReLU + global-avg-pool + Linear -------
        h5 = jnp.maximum(feats * c5s_ref[...] + c5b_ref[...], 0.0)
        row = jax.lax.broadcasted_iota(jnp.int32, h5.shape, 0)
        h5 = jnp.where(row < lgs[-1], h5, 0.0)          # drop padded rows
        pooled = jnp.sum(h5, axis=0, keepdims=True) * (1.0 / lgs[-1])
        o_ref[0] = (jnp.dot(pooled.astype(jnp.bfloat16), cw_ref[...],
                            preferred_element_type=f32) + cb_ref[...])

    return kernel


# ------------------------------ call wrapper ----------------------------------

def _full(a):
    return pl.BlockSpec(a.shape, lambda i, _r=a.ndim: (0,) * _r)


def _densenet_pallas(x_stk, p):
    n, l0, kw = x_stk.shape
    nb = p["tw"].shape[0] + 1
    nl = p["n1s"].shape[0] // nb
    lgs = tuple(l0 // (4 ** b) for b in range(nb))      # static Python ints
    kernel = _make_kernel(lgs, nl, LANES)
    weights = [p["wstem"], p["sscale"], p["sbias"],
               p["n1s"], p["n1b"], p["w1"], p["n2s"], p["n2b"], p["w2"],
               p["tscale"], p["tbias"], p["tw"],
               p["pool0"], p["pool1"], p["pool2"],
               p["hscale"], p["hbias"], p["hw"], p["hb"]]
    return pl.pallas_call(
        kernel,
        out_shape=jax.ShapeDtypeStruct((n, 1, LANES), jnp.float32),
        grid=(n,),
        in_specs=[pl.BlockSpec((1, l0, kw), lambda i: (i, 0, 0))]
                 + [_full(w) for w in weights],
        out_specs=pl.BlockSpec((1, 1, LANES), lambda i: (i, 0, 0)),
        compiler_params=pltpu.CompilerParams(
            dimension_semantics=("parallel",)),
    )(x_stk, *weights)


def forward(prep, x):
    """x: (N, 3, L) PyTorch NCL layout -> logits (N, NUM_CLASSES)."""
    n, cin, l = x.shape
    # Group-of-4 phase split + neighbour-group stacking (layout plumbing done
    # in XLA): x_stk[n, i, :] = [x[:,4i-4:4i], x[:,4i:4i+4], x[:,4i+4:4i+8]]
    # flattened (position-major, 3 channels each), zero at the boundaries.
    xt = jnp.transpose(x, (0, 2, 1)).reshape(n, l // 4, 4 * cin)
    zero = jnp.zeros((n, 1, 4 * cin), x.dtype)
    xm1 = jnp.concatenate([zero, xt[:, :-1]], axis=1)
    xp1 = jnp.concatenate([xt[:, 1:], zero], axis=1)
    x_stk = jnp.concatenate([xm1, xt, xp1], axis=-1)     # (N, L/4, 12*cin)
    out = _densenet_pallas(x_stk, prep)                  # (N, 1, 128)
    return out[:, 0, :NUM_CLASSES]


# -------------------- parameter preprocessing (done once) ---------------------

def _fold_bn(bn):
    """Eval-mode BN -> per-channel scale/bias."""
    scale = np.asarray(bn["gamma"]) / np.sqrt(np.asarray(bn["var"]) + EPS)
    bias = np.asarray(bn["beta"]) - np.asarray(bn["mean"]) * scale
    return scale.astype(np.float32), bias.astype(np.float32)


def prepare_params(params, l_in, growth_rate=12, bn_size=4, lanes=LANES):
    nb = len(params["blocks"])
    nl = len(params["blocks"][0])
    bott = bn_size * growth_rate
    assert nb == 4 and l_in % 4 == 0
    l0 = l_in // 4
    lgs = [l0 // (4 ** b) for b in range(nb)]
    # rolls need sublane-aligned lengths for all but the (padded) last block
    assert all(lg % 8 == 0 for lg in lgs[:-1]) and lgs[-1] >= 1

    prep = {}

    # ---- stem: conv0 folded into one (36, 256) matmul (even | odd outputs) ---
    w0 = np.asarray(params["conv0"], np.float32)          # (64, 3, 7)
    c0, cin, _ = w0.shape
    wst = np.zeros((12 * cin, 2 * lanes), np.float32)

    def rowbase(pos):   # position offset relative to 4i -> row base in x_stk
        g, hh = divmod(pos + 4, 4)
        return (4 * g + hh) * cin

    for k in range(7):
        # even conv output m=2i reads x[4i-3+k]; odd m=2i+1 reads x[4i-1+k]
        wst[rowbase(k - 3):rowbase(k - 3) + cin, 0:c0] += w0[:, :, k].T
        wst[rowbase(k - 1):rowbase(k - 1) + cin, lanes:lanes + c0] += w0[:, :, k].T
    s0, b0 = _fold_bn(params["norm0"])
    ss = np.zeros((1, 2 * lanes), np.float32)
    bs = np.zeros((1, 2 * lanes), np.float32)
    ss[0, :c0] = s0
    ss[0, lanes:lanes + c0] = s0
    bs[0, :c0] = b0
    bs[0, lanes:lanes + c0] = b0
    prep["wstem"] = jnp.asarray(wst, jnp.bfloat16)
    prep["sscale"] = jnp.asarray(ss)
    prep["sbias"] = jnp.asarray(bs)

    # ---- dense blocks + transitions ------------------------------------------
    n1s = np.zeros((nb * nl, 1, lanes), np.float32)
    n1b = np.zeros_like(n1s)
    w1 = np.zeros((nb * nl, lanes, bott), np.float32)
    n2s = np.zeros((nb * nl, 1, bott), np.float32)
    n2b = np.zeros_like(n2s)
    w2 = np.zeros((nb * nl * 3, bott, lanes), np.float32)
    tscale = np.zeros((nb - 1, 1, lanes), np.float32)
    tbias = np.zeros_like(tscale)
    tw = np.zeros((nb - 1, lanes, lanes), np.float32)
    pools = []

    c_in = c0
    for bi, layers in enumerate(params["blocks"]):
        for j, lay in enumerate(layers):
            li = bi * nl + j
            nin = c_in + j * growth_rate
            s_, b_ = _fold_bn(lay["norm1"])
            n1s[li, 0, :nin] = s_
            n1b[li, 0, :nin] = b_
            s2_, b2_ = _fold_bn(lay["norm2"])
            n2s[li, 0, :] = s2_
            n2b[li, 0, :] = b2_
            w1[li, :nin, :] = np.asarray(lay["conv1"])[:, :, 0].T
            cw2 = np.asarray(lay["conv2"])                 # (growth, bott, 3)
            off = nin                                      # dense-concat offset
            for k in range(3):
                w2[3 * li + k, :, off:off + growth_rate] = cw2[:, :, k].T
        c_in = c_in + nl * growth_rate
        trans = params["transitions"][bi]
        if trans is not None:
            s_, b_ = _fold_bn(trans["norm"])
            tscale[bi, 0, :c_in] = s_
            tbias[bi, 0, :c_in] = b_
            cw = np.asarray(trans["conv"])                 # (c_out, c_in, 1)
            c_out = cw.shape[0]
            tw[bi, :c_in, :c_out] = cw[:, :, 0].T
            lin_b = max(lgs[bi], 8)
            lout = lgs[bi + 1]
            lout_b = max(lout, 8)
            pm = np.zeros((lout_b, lin_b), np.float32)     # AvgPool(4,4)
            for i in range(lout):
                pm[i, 4 * i:4 * i + 4] = 0.25
            pools.append(jnp.asarray(pm, jnp.bfloat16))
            c_in = c_out

    prep["n1s"] = jnp.asarray(n1s)
    prep["n1b"] = jnp.asarray(n1b)
    prep["w1"] = jnp.asarray(w1, jnp.bfloat16)
    prep["n2s"] = jnp.asarray(n2s)
    prep["n2b"] = jnp.asarray(n2b)
    prep["w2"] = jnp.asarray(w2, jnp.bfloat16)
    prep["tscale"] = jnp.asarray(tscale)
    prep["tbias"] = jnp.asarray(tbias)
    prep["tw"] = jnp.asarray(tw, jnp.bfloat16)
    prep["pool0"], prep["pool1"], prep["pool2"] = pools

    # ---- classifier head -------------------------------------------------------
    s5, b5 = _fold_bn(params["norm5"])
    hscale = np.zeros((1, lanes), np.float32)
    hbias = np.zeros((1, lanes), np.float32)
    hscale[0, :c_in] = s5
    hbias[0, :c_in] = b5
    cw = np.asarray(params["cls_w"])                       # (num_classes, nf)
    cb = np.asarray(params["cls_b"])
    hw = np.zeros((lanes, lanes), np.float32)
    hw[:cw.shape[1], :cw.shape[0]] = cw.T
    hb = np.zeros((1, lanes), np.float32)
    hb[0, :cb.shape[0]] = cb
    prep["hscale"] = jnp.asarray(hscale)
    prep["hbias"] = jnp.asarray(hbias)
    prep["hw"] = jnp.asarray(hw, jnp.bfloat16)
    prep["hb"] = jnp.asarray(hb)
    return prep


# ------------------------- random torch-style params --------------------------

def init_params(key, growth_rate=12, block_config=(3, 3, 3, 3),
                num_init_features=64, bn_size=4, num_classes=NUM_CLASSES):
    keys = iter(jax.random.split(key, 64))

    def kaiming(shape):  # (Cout, Cin, K), fan_in = Cin*K, gain sqrt(2)
        cout, cin, k = shape
        std = (2.0 / (cin * k)) ** 0.5
        return jax.random.normal(next(keys), shape, jnp.float32) * std

    def bn(c):  # eval-mode BatchNorm1d: gamma=1, beta=0, running stats (0, 1)
        return dict(gamma=jnp.ones((c,), jnp.float32),
                    beta=jnp.zeros((c,), jnp.float32),
                    mean=jnp.zeros((c,), jnp.float32),
                    var=jnp.ones((c,), jnp.float32))

    params = dict(conv0=kaiming((num_init_features, 3, 7)),
                  norm0=bn(num_init_features))
    num_features = num_init_features
    blocks, transitions = [], []
    for i, num_layers in enumerate(block_config):
        layers = []
        for j in range(num_layers):
            nin = num_features + j * growth_rate
            bott = bn_size * growth_rate
            layers.append(dict(norm1=bn(nin),
                               conv1=kaiming((bott, nin, 1)),
                               norm2=bn(bott),
                               conv2=kaiming((growth_rate, bott, 3))))
        blocks.append(layers)
        num_features += num_layers * growth_rate
        if i != len(block_config) - 1:
            transitions.append(dict(norm=bn(num_features),
                                    conv=kaiming((num_features // 2,
                                                  num_features, 1))))
            num_features //= 2
        else:
            transitions.append(None)
    params["blocks"] = blocks
    params["transitions"] = transitions
    params["norm5"] = bn(num_features)
    bound = 1.0 / (num_features ** 0.5)
    params["cls_w"] = jax.random.uniform(next(keys), (num_classes, num_features),
                                         jnp.float32, -bound, bound)
    params["cls_b"] = jnp.zeros((num_classes,), jnp.float32)
    return params


# ----------------------------------- main --------------------------------------

if __name__ == "__main__":
    key = jax.random.PRNGKey(0)
    pkey, xkey = jax.random.split(key)
    torch_style_params = init_params(pkey)
    L_IN = 512
    prep = prepare_params(torch_style_params, l_in=L_IN)
    x = jax.random.normal(xkey, (2, 3, L_IN), jnp.float32)
    fwd = jax.jit(forward)
    logits = fwd(prep, x)
    jax.block_until_ready(logits)
    assert logits.shape == (2, NUM_CLASSES), logits.shape
    print("KERNEL_OK")
</pallas_src>

<mosaic_0001>
module attributes {stable_mosaic.version = 11 : i64} {
  func.func @kernel(%arg0: i32, %arg1: memref<1x128x36xf32, #tpu.memory_space<vmem>>, %arg2: memref<36x256xbf16, #tpu.memory_space<vmem>>, %arg3: memref<1x256xf32, #tpu.memory_space<vmem>>, %arg4: memref<1x256xf32, #tpu.memory_space<vmem>>, %arg5: memref<12x1x128xf32, #tpu.memory_space<vmem>>, %arg6: memref<12x1x128xf32, #tpu.memory_space<vmem>>, %arg7: memref<12x128x48xbf16, #tpu.memory_space<vmem>>, %arg8: memref<12x1x48xf32, #tpu.memory_space<vmem>>, %arg9: memref<12x1x48xf32, #tpu.memory_space<vmem>>, %arg10: memref<36x48x128xbf16, #tpu.memory_space<vmem>>, %arg11: memref<3x1x128xf32, #tpu.memory_space<vmem>>, %arg12: memref<3x1x128xf32, #tpu.memory_space<vmem>>, %arg13: memref<3x128x128xbf16, #tpu.memory_space<vmem>>, %arg14: memref<32x128xbf16, #tpu.memory_space<vmem>>, %arg15: memref<8x32xbf16, #tpu.memory_space<vmem>>, %arg16: memref<8x8xbf16, #tpu.memory_space<vmem>>, %arg17: memref<1x128xf32, #tpu.memory_space<vmem>>, %arg18: memref<1x128xf32, #tpu.memory_space<vmem>>, %arg19: memref<128x128xbf16, #tpu.memory_space<vmem>>, %arg20: memref<1x128xf32, #tpu.memory_space<vmem>>, %arg21: memref<1x1x128xf32, #tpu.memory_space<vmem>>) attributes {dimension_semantics = [#tpu.dimension_semantics<parallel>], iteration_bounds = array<i64: 2>, scalar_prefetch = 0 : i64, scratch_operands = 0 : i64, tpu.core_type = #tpu.core_type<tc>, window_params = [{transform_indices = @transform_0, window_bounds = array<i64: 1, 128, 36>}, {pipeline_mode = #tpu.pipeline_mode<synchronous>, transform_indices = @transform_1, window_bounds = array<i64: 36, 256>}, {pipeline_mode = #tpu.pipeline_mode<synchronous>, transform_indices = @transform_2, window_bounds = array<i64: 1, 256>}, {pipeline_mode = #tpu.pipeline_mode<synchronous>, transform_indices = @transform_3, window_bounds = array<i64: 1, 256>}, {pipeline_mode = #tpu.pipeline_mode<synchronous>, transform_indices = @transform_4, window_bounds = array<i64: 12, 1, 128>}, {pipeline_mode = #tpu.pipeline_mode<synchronous>, transform_indices = @transform_5, window_bounds = array<i64: 12, 1, 128>}, {pipeline_mode = #tpu.pipeline_mode<synchronous>, transform_indices = @transform_6, window_bounds = array<i64: 12, 128, 48>}, {pipeline_mode = #tpu.pipeline_mode<synchronous>, transform_indices = @transform_7, window_bounds = array<i64: 12, 1, 48>}, {pipeline_mode = #tpu.pipeline_mode<synchronous>, transform_indices = @transform_8, window_bounds = array<i64: 12, 1, 48>}, {pipeline_mode = #tpu.pipeline_mode<synchronous>, transform_indices = @transform_9, window_bounds = array<i64: 36, 48, 128>}, {pipeline_mode = #tpu.pipeline_mode<synchronous>, transform_indices = @transform_10, window_bounds = array<i64: 3, 1, 128>}, {pipeline_mode = #tpu.pipeline_mode<synchronous>, transform_indices = @transform_11, window_bounds = array<i64: 3, 1, 128>}, {pipeline_mode = #tpu.pipeline_mode<synchronous>, transform_indices = @transform_12, window_bounds = array<i64: 3, 128, 128>}, {pipeline_mode = #tpu.pipeline_mode<synchronous>, transform_indices = @transform_13, window_bounds = array<i64: 32, 128>}, {pipeline_mode = #tpu.pipeline_mode<synchronous>, transform_indices = @transform_14, window_bounds = array<i64: 8, 32>}, {pipeline_mode = #tpu.pipeline_mode<synchronous>, transform_indices = @transform_15, window_bounds = array<i64: 8, 8>}, {pipeline_mode = #tpu.pipeline_mode<synchronous>, transform_indices = @transform_16, window_bounds = array<i64: 1, 128>}, {pipeline_mode = #tpu.pipeline_mode<synchronous>, transform_indices = @transform_17, window_bounds = array<i64: 1, 128>}, {pipeline_mode = #tpu.pipeline_mode<synchronous>, transform_indices = @transform_18, window_bounds = array<i64: 128, 128>}, {pipeline_mode = #tpu.pipeline_mode<synchronous>, transform_indices = @transform_19, window_bounds = array<i64: 1, 128>}, {transform_indices = @transform_20, window_bounds = array<i64: 1, 1, 128>}]} {
    %c0 = arith.constant 0 : index
    %c0_0 = arith.constant 0 : index
    %c0_1 = arith.constant 0 : index
    %0 = vector.load %arg1[%c0, %c0_0, %c0_1] : memref<1x128x36xf32, #tpu.memory_space<vmem>>, vector<1x128x36xf32>
    %1 = vector.shape_cast %0 : vector<1x128x36xf32> to vector<128x36xf32>
    %2 = arith.truncf %1 : vector<128x36xf32> to vector<128x36xbf16>
    %c0_2 = arith.constant 0 : index
    %c0_3 = arith.constant 0 : index
    %3 = vector.load %arg2[%c0_2, %c0_3] : memref<36x256xbf16, #tpu.memory_space<vmem>>, vector<36x256xbf16>
    %cst = arith.constant dense<0.000000e+00> : vector<128x256xf32>
    %4 = tpu.matmul %2, %3, %cst {dimension_numbers = #tpu.dot_dimension_numbers<[1], [0], [0], [1], [0, 0, 1, 1], [], []>} : vector<128x36xbf16>, vector<36x256xbf16>, vector<128x256xf32> -> vector<128x256xf32>
    %c0_4 = arith.constant 0 : index
    %c0_5 = arith.constant 0 : index
    %5 = vector.load %arg3[%c0_4, %c0_5] : memref<1x256xf32, #tpu.memory_space<vmem>>, vector<1x256xf32>
    %6 = vector.broadcast %5 : vector<1x256xf32> to vector<128x256xf32>
    %7 = arith.mulf %4, %6 : vector<128x256xf32>
    %c0_6 = arith.constant 0 : index
    %c0_7 = arith.constant 0 : index
    %8 = vector.load %arg4[%c0_6, %c0_7] : memref<1x256xf32, #tpu.memory_space<vmem>>, vector<1x256xf32>
    %9 = vector.broadcast %8 : vector<1x256xf32> to vector<128x256xf32>
    %10 = arith.addf %7, %9 : vector<128x256xf32>
    %cst_8 = arith.constant 0.000000e+00 : f32
    %11 = vector.broadcast %cst_8 : f32 to vector<128x256xf32>
    %12 = arith.maximumf %10, %11 : vector<128x256xf32>
    %13 = vector.extract_strided_slice %12 {offsets = [0, 0], sizes = [128, 128], strides = [1, 1]} : vector<128x256xf32> to vector<128x128xf32>
    %14 = vector.extract_strided_slice %12 {offsets = [0, 128], sizes = [128, 128], strides = [1, 1]} : vector<128x256xf32> to vector<128x128xf32>
    %15 = tpu.iota {dimensions = array<i32: 0>} : vector<128x128xi32>
    %c0_i32 = arith.constant 0 : i32
    %16 = vector.broadcast %c0_i32 : i32 to vector<128x128xi32>
    %17 = arith.cmpi eq, %15, %16 : vector<128x128xi32>
    %c1_i32 = arith.constant 1 : i32
    %18 = tpu.dynamic_rotate %14 by %c1_i32 dim 0 : vector<128x128xf32>, i32 -> vector<128x128xf32>
    %cst_9 = arith.constant 0.000000e+00 : f32
    %19 = vector.broadcast %cst_9 : f32 to vector<128x128xf32>
    %20 = arith.select %17, %19, %18 : vector<128x128xi1>, vector<128x128xf32>
    %21 = arith.maximumf %13, %14 : vector<128x128xf32>
    %22 = arith.maximumf %21, %20 : vector<128x128xf32>
    %23 = tpu.iota {dimensions = array<i32: 0>} : vector<128x128xi32>
    %c0_10 = arith.constant 0 : index
    %c0_11 = arith.constant 0 : index
    %c0_12 = arith.constant 0 : index
    %24 = vector.load %arg5[%c0_10, %c0_11, %c0_12] : memref<12x1x128xf32, #tpu.memory_space<vmem>>, vector<1x1x128xf32>
    %25 = vector.shape_cast %24 : vector<1x1x128xf32> to vector<1x128xf32>
    %26 = vector.broadcast %25 : vector<1x128xf32> to vector<128x128xf32>
    %27 = arith.mulf %22, %26 : vector<128x128xf32>
    %c0_13 = arith.constant 0 : index
    %c0_14 = arith.constant 0 : index
    %c0_15 = arith.constant 0 : index
    %28 = vector.load %arg6[%c0_13, %c0_14, %c0_15] : memref<12x1x128xf32, #tpu.memory_space<vmem>>, vector<1x1x128xf32>
    %29 = vector.shape_cast %28 : vector<1x1x128xf32> to vector<1x128xf32>
    %30 = vector.broadcast %29 : vector<1x128xf32> to vector<128x128xf32>
    %31 = arith.addf %27, %30 : vector<128x128xf32>
    %cst_16 = arith.constant 0.000000e+00 : f32
    %32 = vector.broadcast %cst_16 : f32 to vector<128x128xf32>
    %33 = arith.maximumf %31, %32 : vector<128x128xf32>
    %34 = arith.truncf %33 : vector<128x128xf32> to vector<128x128xbf16>
    %c0_17 = arith.constant 0 : index
    %c0_18 = arith.constant 0 : index
    %c0_19 = arith.constant 0 : index
    %35 = vector.load %arg7[%c0_17, %c0_18, %c0_19] : memref<12x128x48xbf16, #tpu.memory_space<vmem>>, vector<1x128x48xbf16>
    %36 = vector.shape_cast %35 : vector<1x128x48xbf16> to vector<128x48xbf16>
    %cst_20 = arith.constant dense<0.000000e+00> : vector<128x48xf32>
    %37 = tpu.matmul %34, %36, %cst_20 {dimension_numbers = #tpu.dot_dimension_numbers<[1], [0], [0], [1], [0, 0, 1, 1], [], []>} : vector<128x128xbf16>, vector<128x48xbf16>, vector<128x48xf32> -> vector<128x48xf32>
    %c0_21 = arith.constant 0 : index
    %c0_22 = arith.constant 0 : index
    %c0_23 = arith.constant 0 : index
    %38 = vector.load %arg8[%c0_21, %c0_22, %c0_23] : memref<12x1x48xf32, #tpu.memory_space<vmem>>, vector<1x1x48xf32>
    %39 = vector.shape_cast %38 : vector<1x1x48xf32> to vector<1x48xf32>
    %40 = vector.broadcast %39 : vector<1x48xf32> to vector<128x48xf32>
    %41 = arith.mulf %37, %40 : vector<128x48xf32>
    %c0_24 = arith.constant 0 : index
    %c0_25 = arith.constant 0 : index
    %c0_26 = arith.constant 0 : index
    %42 = vector.load %arg9[%c0_24, %c0_25, %c0_26] : memref<12x1x48xf32, #tpu.memory_space<vmem>>, vector<1x1x48xf32>
    %43 = vector.shape_cast %42 : vector<1x1x48xf32> to vector<1x48xf32>
    %44 = vector.broadcast %43 : vector<1x48xf32> to vector<128x48xf32>
    %45 = arith.addf %41, %44 : vector<128x48xf32>
    %cst_27 = arith.constant 0.000000e+00 : f32
    %46 = vector.broadcast %cst_27 : f32 to vector<128x48xf32>
    %47 = arith.maximumf %45, %46 : vector<128x48xf32>
    %48 = arith.truncf %47 : vector<128x48xf32> to vector<128x48xbf16>
    %c0_28 = arith.constant 0 : index
    %c0_29 = arith.constant 0 : index
    %c0_30 = arith.constant 0 : index
    %49 = vector.load %arg10[%c0_28, %c0_29, %c0_30] : memref<36x48x128xbf16, #tpu.memory_space<vmem>>, vector<1x48x128xbf16>
    %50 = vector.shape_cast %49 : vector<1x48x128xbf16> to vector<48x128xbf16>
    %cst_31 = arith.constant dense<0.000000e+00> : vector<128x128xf32>
    %51 = tpu.matmul %48, %50, %cst_31 {dimension_numbers = #tpu.dot_dimension_numbers<[1], [0], [0], [1], [0, 0, 1, 1], [], []>} : vector<128x48xbf16>, vector<48x128xbf16>, vector<128x128xf32> -> vector<128x128xf32>
    %c1 = arith.constant 1 : index
    %c0_32 = arith.constant 0 : index
    %c0_33 = arith.constant 0 : index
    %52 = vector.load %arg10[%c1, %c0_32, %c0_33] : memref<36x48x128xbf16, #tpu.memory_space<vmem>>, vector<1x48x128xbf16>
    %53 = vector.shape_cast %52 : vector<1x48x128xbf16> to vector<48x128xbf16>
    %cst_34 = arith.constant dense<0.000000e+00> : vector<128x128xf32>
    %54 = tpu.matmul %48, %53, %cst_34 {dimension_numbers = #tpu.dot_dimension_numbers<[1], [0], [0], [1], [0, 0, 1, 1], [], []>} : vector<128x48xbf16>, vector<48x128xbf16>, vector<128x128xf32> -> vector<128x128xf32>
    %c2 = arith.constant 2 : index
    %c0_35 = arith.constant 0 : index
    %c0_36 = arith.constant 0 : index
    %55 = vector.load %arg10[%c2, %c0_35, %c0_36] : memref<36x48x128xbf16, #tpu.memory_space<vmem>>, vector<1x48x128xbf16>
    %56 = vector.shape_cast %55 : vector<1x48x128xbf16> to vector<48x128xbf16>
    %cst_37 = arith.constant dense<0.000000e+00> : vector<128x128xf32>
    %57 = tpu.matmul %48, %56, %cst_37 {dimension_numbers = #tpu.dot_dimension_numbers<[1], [0], [0], [1], [0, 0, 1, 1], [], []>} : vector<128x48xbf16>, vector<48x128xbf16>, vector<128x128xf32> -> vector<128x128xf32>
    %c0_i32_38 = arith.constant 0 : i32
    %58 = vector.broadcast %c0_i32_38 : i32 to vector<128x128xi32>
    %59 = arith.cmpi eq, %23, %58 : vector<128x128xi32>
    %c1_i32_39 = arith.constant 1 : i32
    %60 = tpu.dynamic_rotate %51 by %c1_i32_39 dim 0 : vector<128x128xf32>, i32 -> vector<128x128xf32>
    %cst_40 = arith.constant 0.000000e+00 : f32
    %61 = vector.broadcast %cst_40 : f32 to vector<128x128xf32>
    %62 = arith.select %59, %61, %60 : vector<128x128xi1>, vector<128x128xf32>
    %c127_i32 = arith.constant 127 : i32
    %63 = vector.broadcast %c127_i32 : i32 to vector<128x128xi32>
    %64 = arith.cmpi sge, %23, %63 : vector<128x128xi32>
    %c127_i32_41 = arith.constant 127 : i32
    %65 = tpu.dynamic_rotate %57 by %c127_i32_41 dim 0 : vector<128x128xf32>, i32 -> vector<128x128xf32>
    %cst_42 = arith.constant 0.000000e+00 : f32
    %66 = vector.broadcast %cst_42 : f32 to vector<128x128xf32>
    %67 = arith.select %64, %66, %65 : vector<128x128xi1>, vector<128x128xf32>
    %68 = arith.addf %22, %54 : vector<128x128xf32>
    %69 = arith.addf %68, %62 : vector<128x128xf32>
    %70 = arith.addf %69, %67 : vector<128x128xf32>
    %c1_43 = arith.constant 1 : index
    %c0_44 = arith.constant 0 : index
    %c0_45 = arith.constant 0 : index
    %71 = vector.load %arg5[%c1_43, %c0_44, %c0_45] : memref<12x1x128xf32, #tpu.memory_space<vmem>>, vector<1x1x128xf32>
    %72 = vector.shape_cast %71 : vector<1x1x128xf32> to vector<1x128xf32>
    %73 = vector.broadcast %72 : vector<1x128xf32> to vector<128x128xf32>
    %74 = arith.mulf %70, %73 : vector<128x128xf32>
    %c1_46 = arith.constant 1 : index
    %c0_47 = arith.constant 0 : index
    %c0_48 = arith.constant 0 : index
    %75 = vector.load %arg6[%c1_46, %c0_47, %c0_48] : memref<12x1x128xf32, #tpu.memory_space<vmem>>, vector<1x1x128xf32>
    %76 = vector.shape_cast %75 : vector<1x1x128xf32> to vector<1x128xf32>
    %77 = vector.broadcast %76 : vector<1x128xf32> to vector<128x128xf32>
    %78 = arith.addf %74, %77 : vector<128x128xf32>
    %cst_49 = arith.constant 0.000000e+00 : f32
    %79 = vector.broadcast %cst_49 : f32 to vector<128x128xf32>
    %80 = arith.maximumf %78, %79 : vector<128x128xf32>
    %81 = arith.truncf %80 : vector<128x128xf32> to vector<128x128xbf16>
    %c1_50 = arith.constant 1 : index
    %c0_51 = arith.constant 0 : index
    %c0_52 = arith.constant 0 : index
    %82 = vector.load %arg7[%c1_50, %c0_51, %c0_52] : memref<12x128x48xbf16, #tpu.memory_space<vmem>>, vector<1x128x48xbf16>
    %83 = vector.shape_cast %82 : vector<1x128x48xbf16> to vector<128x48xbf16>
    %cst_53 = arith.constant dense<0.000000e+00> : vector<128x48xf32>
    %84 = tpu.matmul %81, %83, %cst_53 {dimension_numbers = #tpu.dot_dimension_numbers<[1], [0], [0], [1], [0, 0, 1, 1], [], []>} : vector<128x128xbf16>, vector<128x48xbf16>, vector<128x48xf32> -> vector<128x48xf32>
    %c1_54 = arith.constant 1 : index
    %c0_55 = arith.constant 0 : index
    %c0_56 = arith.constant 0 : index
    %85 = vector.load %arg8[%c1_54, %c0_55, %c0_56] : memref<12x1x48xf32, #tpu.memory_space<vmem>>, vector<1x1x48xf32>
    %86 = vector.shape_cast %85 : vector<1x1x48xf32> to vector<1x48xf32>
    %87 = vector.broadcast %86 : vector<1x48xf32> to vector<128x48xf32>
    %88 = arith.mulf %84, %87 : vector<128x48xf32>
    %c1_57 = arith.constant 1 : index
    %c0_58 = arith.constant 0 : index
    %c0_59 = arith.constant 0 : index
    %89 = vector.load %arg9[%c1_57, %c0_58, %c0_59] : memref<12x1x48xf32, #tpu.memory_space<vmem>>, vector<1x1x48xf32>
    %90 = vector.shape_cast %89 : vector<1x1x48xf32> to vector<1x48xf32>
    %91 = vector.broadcast %90 : vector<1x48xf32> to vector<128x48xf32>
    %92 = arith.addf %88, %91 : vector<128x48xf32>
    %cst_60 = arith.constant 0.000000e+00 : f32
    %93 = vector.broadcast %cst_60 : f32 to vector<128x48xf32>
    %94 = arith.maximumf %92, %93 : vector<128x48xf32>
    %95 = arith.truncf %94 : vector<128x48xf32> to vector<128x48xbf16>
    %c3 = arith.constant 3 : index
    %c0_61 = arith.constant 0 : index
    %c0_62 = arith.constant 0 : index
    %96 = vector.load %arg10[%c3, %c0_61, %c0_62] : memref<36x48x128xbf16, #tpu.memory_space<vmem>>, vector<1x48x128xbf16>
    %97 = vector.shape_cast %96 : vector<1x48x128xbf16> to vector<48x128xbf16>
    %cst_63 = arith.constant dense<0.000000e+00> : vector<128x128xf32>
    %98 = tpu.matmul %95, %97, %cst_63 {dimension_numbers = #tpu.dot_dimension_numbers<[1], [0], [0], [1], [0, 0, 1, 1], [], []>} : vector<128x48xbf16>, vector<48x128xbf16>, vector<128x128xf32> -> vector<128x128xf32>
    %c4 = arith.constant 4 : index
    %c0_64 = arith.constant 0 : index
    %c0_65 = arith.constant 0 : index
    %99 = vector.load %arg10[%c4, %c0_64, %c0_65] : memref<36x48x128xbf16, #tpu.memory_space<vmem>>, vector<1x48x128xbf16>
    %100 = vector.shape_cast %99 : vector<1x48x128xbf16> to vector<48x128xbf16>
    %cst_66 = arith.constant dense<0.000000e+00> : vector<128x128xf32>
    %101 = tpu.matmul %95, %100, %cst_66 {dimension_numbers = #tpu.dot_dimension_numbers<[1], [0], [0], [1], [0, 0, 1, 1], [], []>} : vector<128x48xbf16>, vector<48x128xbf16>, vector<128x128xf32> -> vector<128x128xf32>
    %c5 = arith.constant 5 : index
    %c0_67 = arith.constant 0 : index
    %c0_68 = arith.constant 0 : index
    %102 = vector.load %arg10[%c5, %c0_67, %c0_68] : memref<36x48x128xbf16, #tpu.memory_space<vmem>>, vector<1x48x128xbf16>
    %103 = vector.shape_cast %102 : vector<1x48x128xbf16> to vector<48x128xbf16>
    %cst_69 = arith.constant dense<0.000000e+00> : vector<128x128xf32>
    %104 = tpu.matmul %95, %103, %cst_69 {dimension_numbers = #tpu.dot_dimension_numbers<[1], [0], [0], [1], [0, 0, 1, 1], [], []>} : vector<128x48xbf16>, vector<48x128xbf16>, vector<128x128xf32> -> vector<128x128xf32>
    %c0_i32_70 = arith.constant 0 : i32
    %105 = vector.broadcast %c0_i32_70 : i32 to vector<128x128xi32>
    %106 = arith.cmpi eq, %23, %105 : vector<128x128xi32>
    %c1_i32_71 = arith.constant 1 : i32
    %107 = tpu.dynamic_rotate %98 by %c1_i32_71 dim 0 : vector<128x128xf32>, i32 -> vector<128x128xf32>
    %cst_72 = arith.constant 0.000000e+00 : f32
    %108 = vector.broadcast %cst_72 : f32 to vector<128x128xf32>
    %109 = arith.select %106, %108, %107 : vector<128x128xi1>, vector<128x128xf32>
    %c127_i32_73 = arith.constant 127 : i32
    %110 = vector.broadcast %c127_i32_73 : i32 to vector<128x128xi32>
    %111 = arith.cmpi sge, %23, %110 : vector<128x128xi32>
    %c127_i32_74 = arith.constant 127 : i32
    %112 = tpu.dynamic_rotate %104 by %c127_i32_74 dim 0 : vector<128x128xf32>, i32 -> vector<128x128xf32>
    %cst_75 = arith.constant 0.000000e+00 : f32
    %113 = vector.broadcast %cst_75 : f32 to vector<128x128xf32>
    %114 = arith.select %111, %113, %112 : vector<128x128xi1>, vector<128x128xf32>
    %115 = arith.addf %70, %101 : vector<128x128xf32>
    %116 = arith.addf %115, %109 : vector<128x128xf32>
    %117 = arith.addf %116, %114 : vector<128x128xf32>
    %c2_76 = arith.constant 2 : index
    %c0_77 = arith.constant 0 : index
    %c0_78 = arith.constant 0 : index
    %118 = vector.load %arg5[%c2_76, %c0_77, %c0_78] : memref<12x1x128xf32, #tpu.memory_space<vmem>>, vector<1x1x128xf32>
    %119 = vector.shape_cast %118 : vector<1x1x128xf32> to vector<1x128xf32>
    %120 = vector.broadcast %119 : vector<1x128xf32> to vector<128x128xf32>
    %121 = arith.mulf %117, %120 : vector<128x128xf32>
    %c2_79 = arith.constant 2 : index
    %c0_80 = arith.constant 0 : index
    %c0_81 = arith.constant 0 : index
    %122 = vector.load %arg6[%c2_79, %c0_80, %c0_81] : memref<12x1x128xf32, #tpu.memory_space<vmem>>, vector<1x1x128xf32>
    %123 = vector.shape_cast %122 : vector<1x1x128xf32> to vector<1x128xf32>
    %124 = vector.broadcast %123 : vector<1x128xf32> to vector<128x128xf32>
    %125 = arith.addf %121, %124 : vector<128x128xf32>
    %cst_82 = arith.constant 0.000000e+00 : f32
    %126 = vector.broadcast %cst_82 : f32 to vector<128x128xf32>
    %127 = arith.maximumf %125, %126 : vector<128x128xf32>
    %128 = arith.truncf %127 : vector<128x128xf32> to vector<128x128xbf16>
    %c2_83 = arith.constant 2 : index
    %c0_84 = arith.constant 0 : index
    %c0_85 = arith.constant 0 : index
    %129 = vector.load %arg7[%c2_83, %c0_84, %c0_85] : memref<12x128x48xbf16, #tpu.memory_space<vmem>>, vector<1x128x48xbf16>
    %130 = vector.shape_cast %129 : vector<1x128x48xbf16> to vector<128x48xbf16>
    %cst_86 = arith.constant dense<0.000000e+00> : vector<128x48xf32>
    %131 = tpu.matmul %128, %130, %cst_86 {dimension_numbers = #tpu.dot_dimension_numbers<[1], [0], [0], [1], [0, 0, 1, 1], [], []>} : vector<128x128xbf16>, vector<128x48xbf16>, vector<128x48xf32> -> vector<128x48xf32>
    %c2_87 = arith.constant 2 : index
    %c0_88 = arith.constant 0 : index
    %c0_89 = arith.constant 0 : index
    %132 = vector.load %arg8[%c2_87, %c0_88, %c0_89] : memref<12x1x48xf32, #tpu.memory_space<vmem>>, vector<1x1x48xf32>
    %133 = vector.shape_cast %132 : vector<1x1x48xf32> to vector<1x48xf32>
    %134 = vector.broadcast %133 : vector<1x48xf32> to vector<128x48xf32>
    %135 = arith.mulf %131, %134 : vector<128x48xf32>
    %c2_90 = arith.constant 2 : index
    %c0_91 = arith.constant 0 : index
    %c0_92 = arith.constant 0 : index
    %136 = vector.load %arg9[%c2_90, %c0_91, %c0_92] : memref<12x1x48xf32, #tpu.memory_space<vmem>>, vector<1x1x48xf32>
    %137 = vector.shape_cast %136 : vector<1x1x48xf32> to vector<1x48xf32>
    %138 = vector.broadcast %137 : vector<1x48xf32> to vector<128x48xf32>
    %139 = arith.addf %135, %138 : vector<128x48xf32>
    %cst_93 = arith.constant 0.000000e+00 : f32
    %140 = vector.broadcast %cst_93 : f32 to vector<128x48xf32>
    %141 = arith.maximumf %139, %140 : vector<128x48xf32>
    %142 = arith.truncf %141 : vector<128x48xf32> to vector<128x48xbf16>
    %c6 = arith.constant 6 : index
    %c0_94 = arith.constant 0 : index
    %c0_95 = arith.constant 0 : index
    %143 = vector.load %arg10[%c6, %c0_94, %c0_95] : memref<36x48x128xbf16, #tpu.memory_space<vmem>>, vector<1x48x128xbf16>
    %144 = vector.shape_cast %143 : vector<1x48x128xbf16> to vector<48x128xbf16>
    %cst_96 = arith.constant dense<0.000000e+00> : vector<128x128xf32>
    %145 = tpu.matmul %142, %144, %cst_96 {dimension_numbers = #tpu.dot_dimension_numbers<[1], [0], [0], [1], [0, 0, 1, 1], [], []>} : vector<128x48xbf16>, vector<48x128xbf16>, vector<128x128xf32> -> vector<128x128xf32>
    %c7 = arith.constant 7 : index
    %c0_97 = arith.constant 0 : index
    %c0_98 = arith.constant 0 : index
    %146 = vector.load %arg10[%c7, %c0_97, %c0_98] : memref<36x48x128xbf16, #tpu.memory_space<vmem>>, vector<1x48x128xbf16>
    %147 = vector.shape_cast %146 : vector<1x48x128xbf16> to vector<48x128xbf16>
    %cst_99 = arith.constant dense<0.000000e+00> : vector<128x128xf32>
    %148 = tpu.matmul %142, %147, %cst_99 {dimension_numbers = #tpu.dot_dimension_numbers<[1], [0], [0], [1], [0, 0, 1, 1], [], []>} : vector<128x48xbf16>, vector<48x128xbf16>, vector<128x128xf32> -> vector<128x128xf32>
    %c8 = arith.constant 8 : index
    %c0_100 = arith.constant 0 : index
    %c0_101 = arith.constant 0 : index
    %149 = vector.load %arg10[%c8, %c0_100, %c0_101] : memref<36x48x128xbf16, #tpu.memory_space<vmem>>, vector<1x48x128xbf16>
    %150 = vector.shape_cast %149 : vector<1x48x128xbf16> to vector<48x128xbf16>
    %cst_102 = arith.constant dense<0.000000e+00> : vector<128x128xf32>
    %151 = tpu.matmul %142, %150, %cst_102 {dimension_numbers = #tpu.dot_dimension_numbers<[1], [0], [0], [1], [0, 0, 1, 1], [], []>} : vector<128x48xbf16>, vector<48x128xbf16>, vector<128x128xf32> -> vector<128x128xf32>
    %c0_i32_103 = arith.constant 0 : i32
    %152 = vector.broadcast %c0_i32_103 : i32 to vector<128x128xi32>
    %153 = arith.cmpi eq, %23, %152 : vector<128x128xi32>
    %c1_i32_104 = arith.constant 1 : i32
    %154 = tpu.dynamic_rotate %145 by %c1_i32_104 dim 0 : vector<128x128xf32>, i32 -> vector<128x128xf32>
    %cst_105 = arith.constant 0.000000e+00 : f32
    %155 = vector.broadcast %cst_105 : f32 to vector<128x128xf32>
    %156 = arith.select %153, %155, %154 : vector<128x128xi1>, vector<128x128xf32>
    %c127_i32_106 = arith.constant 127 : i32
    %157 = vector.broadcast %c127_i32_106 : i32 to vector<128x128xi32>
    %158 = arith.cmpi sge, %23, %157 : vector<128x128xi32>
    %c127_i32_107 = arith.constant 127 : i32
    %159 = tpu.dynamic_rotate %151 by %c127_i32_107 dim 0 : vector<128x128xf32>, i32 -> vector<128x128xf32>
    %cst_108 = arith.constant 0.000000e+00 : f32
    %160 = vector.broadcast %cst_108 : f32 to vector<128x128xf32>
    %161 = arith.select %158, %160, %159 : vector<128x128xi1>, vector<128x128xf32>
    %162 = arith.addf %117, %148 : vector<128x128xf32>
    %163 = arith.addf %162, %156 : vector<128x128xf32>
    %164 = arith.addf %163, %161 : vector<128x128xf32>
    %c0_109 = arith.constant 0 : index
    %c0_110 = arith.constant 0 : index
    %c0_111 = arith.constant 0 : index
    %165 = vector.load %arg11[%c0_109, %c0_110, %c0_111] : memref<3x1x128xf32, #tpu.memory_space<vmem>>, vector<1x1x128xf32>
    %166 = vector.shape_cast %165 : vector<1x1x128xf32> to vector<1x128xf32>
    %167 = vector.broadcast %166 : vector<1x128xf32> to vector<128x128xf32>
    %168 = arith.mulf %164, %167 : vector<128x128xf32>
    %c0_112 = arith.constant 0 : index
    %c0_113 = arith.constant 0 : index
    %c0_114 = arith.constant 0 : index
    %169 = vector.load %arg12[%c0_112, %c0_113, %c0_114] : memref<3x1x128xf32, #tpu.memory_space<vmem>>, vector<1x1x128xf32>
    %170 = vector.shape_cast %169 : vector<1x1x128xf32> to vector<1x128xf32>
    %171 = vector.broadcast %170 : vector<1x128xf32> to vector<128x128xf32>
    %172 = arith.addf %168, %171 : vector<128x128xf32>
    %cst_115 = arith.constant 0.000000e+00 : f32
    %173 = vector.broadcast %cst_115 : f32 to vector<128x128xf32>
    %174 = arith.maximumf %172, %173 : vector<128x128xf32>
    %c0_116 = arith.constant 0 : index
    %c0_117 = arith.constant 0 : index
    %175 = vector.load %arg14[%c0_116, %c0_117] : memref<32x128xbf16, #tpu.memory_space<vmem>>, vector<32x128xbf16>
    %176 = arith.truncf %174 : vector<128x128xf32> to vector<128x128xbf16>
    %cst_118 = arith.constant dense<0.000000e+00> : vector<32x128xf32>
    %177 = tpu.matmul %175, %176, %cst_118 {dimension_numbers = #tpu.dot_dimension_numbers<[1], [0], [0], [1], [0, 0, 1, 1], [], []>} : vector<32x128xbf16>, vector<128x128xbf16>, vector<32x128xf32> -> vector<32x128xf32>
    %178 = arith.truncf %177 : vector<32x128xf32> to vector<32x128xbf16>
    %c0_119 = arith.constant 0 : index
    %c0_120 = arith.constant 0 : index
    %c0_121 = arith.constant 0 : index
    %179 = vector.load %arg13[%c0_119, %c0_120, %c0_121] : memref<3x128x128xbf16, #tpu.memory_space<vmem>>, vector<1x128x128xbf16>
    %180 = vector.shape_cast %179 : vector<1x128x128xbf16> to vector<128x128xbf16>
    %cst_122 = arith.constant dense<0.000000e+00> : vector<32x128xf32>
    %181 = tpu.matmul %178, %180, %cst_122 {dimension_numbers = #tpu.dot_dimension_numbers<[1], [0], [0], [1], [0, 0, 1, 1], [], []>} : vector<32x128xbf16>, vector<128x128xbf16>, vector<32x128xf32> -> vector<32x128xf32>
    %182 = tpu.iota {dimensions = array<i32: 0>} : vector<32x128xi32>
    %c3_123 = arith.constant 3 : index
    %c0_124 = arith.constant 0 : index
    %c0_125 = arith.constant 0 : index
    %183 = vector.load %arg5[%c3_123, %c0_124, %c0_125] : memref<12x1x128xf32, #tpu.memory_space<vmem>>, vector<1x1x128xf32>
    %184 = vector.shape_cast %183 : vector<1x1x128xf32> to vector<1x128xf32>
    %185 = vector.broadcast %184 : vector<1x128xf32> to vector<32x128xf32>
    %186 = arith.mulf %181, %185 : vector<32x128xf32>
    %c3_126 = arith.constant 3 : index
    %c0_127 = arith.constant 0 : index
    %c0_128 = arith.constant 0 : index
    %187 = vector.load %arg6[%c3_126, %c0_127, %c0_128] : memref<12x1x128xf32, #tpu.memory_space<vmem>>, vector<1x1x128xf32>
    %188 = vector.shape_cast %187 : vector<1x1x128xf32> to vector<1x128xf32>
    %189 = vector.broadcast %188 : vector<1x128xf32> to vector<32x128xf32>
    %190 = arith.addf %186, %189 : vector<32x128xf32>
    %cst_129 = arith.constant 0.000000e+00 : f32
    %191 = vector.broadcast %cst_129 : f32 to vector<32x128xf32>
    %192 = arith.maximumf %190, %191 : vector<32x128xf32>
    %193 = arith.truncf %192 : vector<32x128xf32> to vector<32x128xbf16>
    %c3_130 = arith.constant 3 : index
    %c0_131 = arith.constant 0 : index
    %c0_132 = arith.constant 0 : index
    %194 = vector.load %arg7[%c3_130, %c0_131, %c0_132] : memref<12x128x48xbf16, #tpu.memory_space<vmem>>, vector<1x128x48xbf16>
    %195 = vector.shape_cast %194 : vector<1x128x48xbf16> to vector<128x48xbf16>
    %cst_133 = arith.constant dense<0.000000e+00> : vector<32x48xf32>
    %196 = tpu.matmul %193, %195, %cst_133 {dimension_numbers = #tpu.dot_dimension_numbers<[1], [0], [0], [1], [0, 0, 1, 1], [], []>} : vector<32x128xbf16>, vector<128x48xbf16>, vector<32x48xf32> -> vector<32x48xf32>
    %c3_134 = arith.constant 3 : index
    %c0_135 = arith.constant 0 : index
    %c0_136 = arith.constant 0 : index
    %197 = vector.load %arg8[%c3_134, %c0_135, %c0_136] : memref<12x1x48xf32, #tpu.memory_space<vmem>>, vector<1x1x48xf32>
    %198 = vector.shape_cast %197 : vector<1x1x48xf32> to vector<1x48xf32>
    %199 = vector.broadcast %198 : vector<1x48xf32> to vector<32x48xf32>
    %200 = arith.mulf %196, %199 : vector<32x48xf32>
    %c3_137 = arith.constant 3 : index
    %c0_138 = arith.constant 0 : index
    %c0_139 = arith.constant 0 : index
    %201 = vector.load %arg9[%c3_137, %c0_138, %c0_139] : memref<12x1x48xf32, #tpu.memory_space<vmem>>, vector<1x1x48xf32>
    %202 = vector.shape_cast %201 : vector<1x1x48xf32> to vector<1x48xf32>
    %203 = vector.broadcast %202 : vector<1x48xf32> to vector<32x48xf32>
    %204 = arith.addf %200, %203 : vector<32x48xf32>
    %cst_140 = arith.constant 0.000000e+00 : f32
    %205 = vector.broadcast %cst_140 : f32 to vector<32x48xf32>
    %206 = arith.maximumf %204, %205 : vector<32x48xf32>
    %207 = arith.truncf %206 : vector<32x48xf32> to vector<32x48xbf16>
    %c9 = arith.constant 9 : index
    %c0_141 = arith.constant 0 : index
    %c0_142 = arith.constant 0 : index
    %208 = vector.load %arg10[%c9, %c0_141, %c0_142] : memref<36x48x128xbf16, #tpu.memory_space<vmem>>, vector<1x48x128xbf16>
    %209 = vector.shape_cast %208 : vector<1x48x128xbf16> to vector<48x128xbf16>
    %cst_143 = arith.constant dense<0.000000e+00> : vector<32x128xf32>
    %210 = tpu.matmul %207, %209, %cst_143 {dimension_numbers = #tpu.dot_dimension_numbers<[1], [0], [0], [1], [0, 0, 1, 1], [], []>} : vector<32x48xbf16>, vector<48x128xbf16>, vector<32x128xf32> -> vector<32x128xf32>
    %c10 = arith.constant 10 : index
    %c0_144 = arith.constant 0 : index
    %c0_145 = arith.constant 0 : index
    %211 = vector.load %arg10[%c10, %c0_144, %c0_145] : memref<36x48x128xbf16, #tpu.memory_space<vmem>>, vector<1x48x128xbf16>
    %212 = vector.shape_cast %211 : vector<1x48x128xbf16> to vector<48x128xbf16>
    %cst_146 = arith.constant dense<0.000000e+00> : vector<32x128xf32>
    %213 = tpu.matmul %207, %212, %cst_146 {dimension_numbers = #tpu.dot_dimension_numbers<[1], [0], [0], [1], [0, 0, 1, 1], [], []>} : vector<32x48xbf16>, vector<48x128xbf16>, vector<32x128xf32> -> vector<32x128xf32>
    %c11 = arith.constant 11 : index
    %c0_147 = arith.constant 0 : index
    %c0_148 = arith.constant 0 : index
    %214 = vector.load %arg10[%c11, %c0_147, %c0_148] : memref<36x48x128xbf16, #tpu.memory_space<vmem>>, vector<1x48x128xbf16>
    %215 = vector.shape_cast %214 : vector<1x48x128xbf16> to vector<48x128xbf16>
    %cst_149 = arith.constant dense<0.000000e+00> : vector<32x128xf32>
    %216 = tpu.matmul %207, %215, %cst_149 {dimension_numbers = #tpu.dot_dimension_numbers<[1], [0], [0], [1], [0, 0, 1, 1], [], []>} : vector<32x48xbf16>, vector<48x128xbf16>, vector<32x128xf32> -> vector<32x128xf32>
    %c0_i32_150 = arith.constant 0 : i32
    %217 = vector.broadcast %c0_i32_150 : i32 to vector<32x128xi32>
    %218 = arith.cmpi eq, %182, %217 : vector<32x128xi32>
    %c1_i32_151 = arith.constant 1 : i32
    %219 = tpu.dynamic_rotate %210 by %c1_i32_151 dim 0 : vector<32x128xf32>, i32 -> vector<32x128xf32>
    %cst_152 = arith.constant 0.000000e+00 : f32
    %220 = vector.broadcast %cst_152 : f32 to vector<32x128xf32>
    %221 = arith.select %218, %220, %219 : vector<32x128xi1>, vector<32x128xf32>
    %c31_i32 = arith.constant 31 : i32
    %222 = vector.broadcast %c31_i32 : i32 to vector<32x128xi32>
    %223 = arith.cmpi sge, %182, %222 : vector<32x128xi32>
    %c31_i32_153 = arith.constant 31 : i32
    %224 = tpu.dynamic_rotate %216 by %c31_i32_153 dim 0 : vector<32x128xf32>, i32 -> vector<32x128xf32>
    %cst_154 = arith.constant 0.000000e+00 : f32
    %225 = vector.broadcast %cst_154 : f32 to vector<32x128xf32>
    %226 = arith.select %223, %225, %224 : vector<32x128xi1>, vector<32x128xf32>
    %227 = arith.addf %181, %213 : vector<32x128xf32>
    %228 = arith.addf %227, %221 : vector<32x128xf32>
    %229 = arith.addf %228, %226 : vector<32x128xf32>
    %c4_155 = arith.constant 4 : index
    %c0_156 = arith.constant 0 : index
    %c0_157 = arith.constant 0 : index
    %230 = vector.load %arg5[%c4_155, %c0_156, %c0_157] : memref<12x1x128xf32, #tpu.memory_space<vmem>>, vector<1x1x128xf32>
    %231 = vector.shape_cast %230 : vector<1x1x128xf32> to vector<1x128xf32>
    %232 = vector.broadcast %231 : vector<1x128xf32> to vector<32x128xf32>
    %233 = arith.mulf %229, %232 : vector<32x128xf32>
    %c4_158 = arith.constant 4 : index
    %c0_159 = arith.constant 0 : index
    %c0_160 = arith.constant 0 : index
    %234 = vector.load %arg6[%c4_158, %c0_159, %c0_160] : memref<12x1x128xf32, #tpu.memory_space<vmem>>, vector<1x1x128xf32>
    %235 = vector.shape_cast %234 : vector<1x1x128xf32> to vector<1x128xf32>
    %236 = vector.broadcast %235 : vector<1x128xf32> to vector<32x128xf32>
    %237 = arith.addf %233, %236 : vector<32x128xf32>
    %cst_161 = arith.constant 0.000000e+00 : f32
    %238 = vector.broadcast %cst_161 : f32 to vector<32x128xf32>
    %239 = arith.maximumf %237, %238 : vector<32x128xf32>
    %240 = arith.truncf %239 : vector<32x128xf32> to vector<32x128xbf16>
    %c4_162 = arith.constant 4 : index
    %c0_163 = arith.constant 0 : index
    %c0_164 = arith.constant 0 : index
    %241 = vector.load %arg7[%c4_162, %c0_163, %c0_164] : memref<12x128x48xbf16, #tpu.memory_space<vmem>>, vector<1x128x48xbf16>
    %242 = vector.shape_cast %241 : vector<1x128x48xbf16> to vector<128x48xbf16>
    %cst_165 = arith.constant dense<0.000000e+00> : vector<32x48xf32>
    %243 = tpu.matmul %240, %242, %cst_165 {dimension_numbers = #tpu.dot_dimension_numbers<[1], [0], [0], [1], [0, 0, 1, 1], [], []>} : vector<32x128xbf16>, vector<128x48xbf16>, vector<32x48xf32> -> vector<32x48xf32>
    %c4_166 = arith.constant 4 : index
    %c0_167 = arith.constant 0 : index
    %c0_168 = arith.constant 0 : index
    %244 = vector.load %arg8[%c4_166, %c0_167, %c0_168] : memref<12x1x48xf32, #tpu.memory_space<vmem>>, vector<1x1x48xf32>
    %245 = vector.shape_cast %244 : vector<1x1x48xf32> to vector<1x48xf32>
    %246 = vector.broadcast %245 : vector<1x48xf32> to vector<32x48xf32>
    %247 = arith.mulf %243, %246 : vector<32x48xf32>
    %c4_169 = arith.constant 4 : index
    %c0_170 = arith.constant 0 : index
    %c0_171 = arith.constant 0 : index
    %248 = vector.load %arg9[%c4_169, %c0_170, %c0_171] : memref<12x1x48xf32, #tpu.memory_space<vmem>>, vector<1x1x48xf32>
    %249 = vector.shape_cast %248 : vector<1x1x48xf32> to vector<1x48xf32>
    %250 = vector.broadcast %249 : vector<1x48xf32> to vector<32x48xf32>
    %251 = arith.addf %247, %250 : vector<32x48xf32>
    %cst_172 = arith.constant 0.000000e+00 : f32
    %252 = vector.broadcast %cst_172 : f32 to vector<32x48xf32>
    %253 = arith.maximumf %251, %252 : vector<32x48xf32>
    %254 = arith.truncf %253 : vector<32x48xf32> to vector<32x48xbf16>
    %c12 = arith.constant 12 : index
    %c0_173 = arith.constant 0 : index
    %c0_174 = arith.constant 0 : index
    %255 = vector.load %arg10[%c12, %c0_173, %c0_174] : memref<36x48x128xbf16, #tpu.memory_space<vmem>>, vector<1x48x128xbf16>
    %256 = vector.shape_cast %255 : vector<1x48x128xbf16> to vector<48x128xbf16>
    %cst_175 = arith.constant dense<0.000000e+00> : vector<32x128xf32>
    %257 = tpu.matmul %254, %256, %cst_175 {dimension_numbers = #tpu.dot_dimension_numbers<[1], [0], [0], [1], [0, 0, 1, 1], [], []>} : vector<32x48xbf16>, vector<48x128xbf16>, vector<32x128xf32> -> vector<32x128xf32>
    %c13 = arith.constant 13 : index
    %c0_176 = arith.constant 0 : index
    %c0_177 = arith.constant 0 : index
    %258 = vector.load %arg10[%c13, %c0_176, %c0_177] : memref<36x48x128xbf16, #tpu.memory_space<vmem>>, vector<1x48x128xbf16>
    %259 = vector.shape_cast %258 : vector<1x48x128xbf16> to vector<48x128xbf16>
    %cst_178 = arith.constant dense<0.000000e+00> : vector<32x128xf32>
    %260 = tpu.matmul %254, %259, %cst_178 {dimension_numbers = #tpu.dot_dimension_numbers<[1], [0], [0], [1], [0, 0, 1, 1], [], []>} : vector<32x48xbf16>, vector<48x128xbf16>, vector<32x128xf32> -> vector<32x128xf32>
    %c14 = arith.constant 14 : index
    %c0_179 = arith.constant 0 : index
    %c0_180 = arith.constant 0 : index
    %261 = vector.load %arg10[%c14, %c0_179, %c0_180] : memref<36x48x128xbf16, #tpu.memory_space<vmem>>, vector<1x48x128xbf16>
    %262 = vector.shape_cast %261 : vector<1x48x128xbf16> to vector<48x128xbf16>
    %cst_181 = arith.constant dense<0.000000e+00> : vector<32x128xf32>
    %263 = tpu.matmul %254, %262, %cst_181 {dimension_numbers = #tpu.dot_dimension_numbers<[1], [0], [0], [1], [0, 0, 1, 1], [], []>} : vector<32x48xbf16>, vector<48x128xbf16>, vector<32x128xf32> -> vector<32x128xf32>
    %c0_i32_182 = arith.constant 0 : i32
    %264 = vector.broadcast %c0_i32_182 : i32 to vector<32x128xi32>
    %265 = arith.cmpi eq, %182, %264 : vector<32x128xi32>
    %c1_i32_183 = arith.constant 1 : i32
    %266 = tpu.dynamic_rotate %257 by %c1_i32_183 dim 0 : vector<32x128xf32>, i32 -> vector<32x128xf32>
    %cst_184 = arith.constant 0.000000e+00 : f32
    %267 = vector.broadcast %cst_184 : f32 to vector<32x128xf32>
    %268 = arith.select %265, %267, %266 : vector<32x128xi1>, vector<32x128xf32>
    %c31_i32_185 = arith.constant 31 : i32
    %269 = vector.broadcast %c31_i32_185 : i32 to vector<32x128xi32>
    %270 = arith.cmpi sge, %182, %269 : vector<32x128xi32>
    %c31_i32_186 = arith.constant 31 : i32
    %271 = tpu.dynamic_rotate %263 by %c31_i32_186 dim 0 : vector<32x128xf32>, i32 -> vector<32x128xf32>
    %cst_187 = arith.constant 0.000000e+00 : f32
    %272 = vector.broadcast %cst_187 : f32 to vector<32x128xf32>
    %273 = arith.select %270, %272, %271 : vector<32x128xi1>, vector<32x128xf32>
    %274 = arith.addf %229, %260 : vector<32x128xf32>
    %275 = arith.addf %274, %268 : vector<32x128xf32>
    %276 = arith.addf %275, %273 : vector<32x128xf32>
    %c5_188 = arith.constant 5 : index
    %c0_189 = arith.constant 0 : index
    %c0_190 = arith.constant 0 : index
    %277 = vector.load %arg5[%c5_188, %c0_189, %c0_190] : memref<12x1x128xf32, #tpu.memory_space<vmem>>, vector<1x1x128xf32>
    %278 = vector.shape_cast %277 : vector<1x1x128xf32> to vector<1x128xf32>
    %279 = vector.broadcast %278 : vector<1x128xf32> to vector<32x128xf32>
    %280 = arith.mulf %276, %279 : vector<32x128xf32>
    %c5_191 = arith.constant 5 : index
    %c0_192 = arith.constant 0 : index
    %c0_193 = arith.constant 0 : index
    %281 = vector.load %arg6[%c5_191, %c0_192, %c0_193] : memref<12x1x128xf32, #tpu.memory_space<vmem>>, vector<1x1x128xf32>
    %282 = vector.shape_cast %281 : vector<1x1x128xf32> to vector<1x128xf32>
    %283 = vector.broadcast %282 : vector<1x128xf32> to vector<32x128xf32>
    %284 = arith.addf %280, %283 : vector<32x128xf32>
    %cst_194 = arith.constant 0.000000e+00 : f32
    %285 = vector.broadcast %cst_194 : f32 to vector<32x128xf32>
    %286 = arith.maximumf %284, %285 : vector<32x128xf32>
    %287 = arith.truncf %286 : vector<32x128xf32> to vector<32x128xbf16>
    %c5_195 = arith.constant 5 : index
    %c0_196 = arith.constant 0 : index
    %c0_197 = arith.constant 0 : index
    %288 = vector.load %arg7[%c5_195, %c0_196, %c0_197] : memref<12x128x48xbf16, #tpu.memory_space<vmem>>, vector<1x128x48xbf16>
    %289 = vector.shape_cast %288 : vector<1x128x48xbf16> to vector<128x48xbf16>
    %cst_198 = arith.constant dense<0.000000e+00> : vector<32x48xf32>
    %290 = tpu.matmul %287, %289, %cst_198 {dimension_numbers = #tpu.dot_dimension_numbers<[1], [0], [0], [1], [0, 0, 1, 1], [], []>} : vector<32x128xbf16>, vector<128x48xbf16>, vector<32x48xf32> -> vector<32x48xf32>
    %c5_199 = arith.constant 5 : index
    %c0_200 = arith.constant 0 : index
    %c0_201 = arith.constant 0 : index
    %291 = vector.load %arg8[%c5_199, %c0_200, %c0_201] : memref<12x1x48xf32, #tpu.memory_space<vmem>>, vector<1x1x48xf32>
    %292 = vector.shape_cast %291 : vector<1x1x48xf32> to vector<1x48xf32>
    %293 = vector.broadcast %292 : vector<1x48xf32> to vector<32x48xf32>
    %294 = arith.mulf %290, %293 : vector<32x48xf32>
    %c5_202 = arith.constant 5 : index
    %c0_203 = arith.constant 0 : index
    %c0_204 = arith.constant 0 : index
    %295 = vector.load %arg9[%c5_202, %c0_203, %c0_204] : memref<12x1x48xf32, #tpu.memory_space<vmem>>, vector<1x1x48xf32>
    %296 = vector.shape_cast %295 : vector<1x1x48xf32> to vector<1x48xf32>
    %297 = vector.broadcast %296 : vector<1x48xf32> to vector<32x48xf32>
    %298 = arith.addf %294, %297 : vector<32x48xf32>
    %cst_205 = arith.constant 0.000000e+00 : f32
    %299 = vector.broadcast %cst_205 : f32 to vector<32x48xf32>
    %300 = arith.maximumf %298, %299 : vector<32x48xf32>
    %301 = arith.truncf %300 : vector<32x48xf32> to vector<32x48xbf16>
    %c15 = arith.constant 15 : index
    %c0_206 = arith.constant 0 : index
    %c0_207 = arith.constant 0 : index
    %302 = vector.load %arg10[%c15, %c0_206, %c0_207] : memref<36x48x128xbf16, #tpu.memory_space<vmem>>, vector<1x48x128xbf16>
    %303 = vector.shape_cast %302 : vector<1x48x128xbf16> to vector<48x128xbf16>
    %cst_208 = arith.constant dense<0.000000e+00> : vector<32x128xf32>
    %304 = tpu.matmul %301, %303, %cst_208 {dimension_numbers = #tpu.dot_dimension_numbers<[1], [0], [0], [1], [0, 0, 1, 1], [], []>} : vector<32x48xbf16>, vector<48x128xbf16>, vector<32x128xf32> -> vector<32x128xf32>
    %c16 = arith.constant 16 : index
    %c0_209 = arith.constant 0 : index
    %c0_210 = arith.constant 0 : index
    %305 = vector.load %arg10[%c16, %c0_209, %c0_210] : memref<36x48x128xbf16, #tpu.memory_space<vmem>>, vector<1x48x128xbf16>
    %306 = vector.shape_cast %305 : vector<1x48x128xbf16> to vector<48x128xbf16>
    %cst_211 = arith.constant dense<0.000000e+00> : vector<32x128xf32>
    %307 = tpu.matmul %301, %306, %cst_211 {dimension_numbers = #tpu.dot_dimension_numbers<[1], [0], [0], [1], [0, 0, 1, 1], [], []>} : vector<32x48xbf16>, vector<48x128xbf16>, vector<32x128xf32> -> vector<32x128xf32>
    %c17 = arith.constant 17 : index
    %c0_212 = arith.constant 0 : index
    %c0_213 = arith.constant 0 : index
    %308 = vector.load %arg10[%c17, %c0_212, %c0_213] : memref<36x48x128xbf16, #tpu.memory_space<vmem>>, vector<1x48x128xbf16>
    %309 = vector.shape_cast %308 : vector<1x48x128xbf16> to vector<48x128xbf16>
    %cst_214 = arith.constant dense<0.000000e+00> : vector<32x128xf32>
    %310 = tpu.matmul %301, %309, %cst_214 {dimension_numbers = #tpu.dot_dimension_numbers<[1], [0], [0], [1], [0, 0, 1, 1], [], []>} : vector<32x48xbf16>, vector<48x128xbf16>, vector<32x128xf32> -> vector<32x128xf32>
    %c0_i32_215 = arith.constant 0 : i32
    %311 = vector.broadcast %c0_i32_215 : i32 to vector<32x128xi32>
    %312 = arith.cmpi eq, %182, %311 : vector<32x128xi32>
    %c1_i32_216 = arith.constant 1 : i32
    %313 = tpu.dynamic_rotate %304 by %c1_i32_216 dim 0 : vector<32x128xf32>, i32 -> vector<32x128xf32>
    %cst_217 = arith.constant 0.000000e+00 : f32
    %314 = vector.broadcast %cst_217 : f32 to vector<32x128xf32>
    %315 = arith.select %312, %314, %313 : vector<32x128xi1>, vector<32x128xf32>
    %c31_i32_218 = arith.constant 31 : i32
    %316 = vector.broadcast %c31_i32_218 : i32 to vector<32x128xi32>
    %317 = arith.cmpi sge, %182, %316 : vector<32x128xi32>
    %c31_i32_219 = arith.constant 31 : i32
    %318 = tpu.dynamic_rotate %310 by %c31_i32_219 dim 0 : vector<32x128xf32>, i32 -> vector<32x128xf32>
    %cst_220 = arith.constant 0.000000e+00 : f32
    %319 = vector.broadcast %cst_220 : f32 to vector<32x128xf32>
    %320 = arith.select %317, %319, %318 : vector<32x128xi1>, vector<32x128xf32>
    %321 = arith.addf %276, %307 : vector<32x128xf32>
    %322 = arith.addf %321, %315 : vector<32x128xf32>
    %323 = arith.addf %322, %320 : vector<32x128xf32>
    %c1_221 = arith.constant 1 : index
    %c0_222 = arith.constant 0 : index
    %c0_223 = arith.constant 0 : index
    %324 = vector.load %arg11[%c1_221, %c0_222, %c0_223] : memref<3x1x128xf32, #tpu.memory_space<vmem>>, vector<1x1x128xf32>
    %325 = vector.shape_cast %324 : vector<1x1x128xf32> to vector<1x128xf32>
    %326 = vector.broadcast %325 : vector<1x128xf32> to vector<32x128xf32>
    %327 = arith.mulf %323, %326 : vector<32x128xf32>
    %c1_224 = arith.constant 1 : index
    %c0_225 = arith.constant 0 : index
    %c0_226 = arith.constant 0 : index
    %328 = vector.load %arg12[%c1_224, %c0_225, %c0_226] : memref<3x1x128xf32, #tpu.memory_space<vmem>>, vector<1x1x128xf32>
    %329 = vector.shape_cast %328 : vector<1x1x128xf32> to vector<1x128xf32>
    %330 = vector.broadcast %329 : vector<1x128xf32> to vector<32x128xf32>
    %331 = arith.addf %327, %330 : vector<32x128xf32>
    %cst_227 = arith.constant 0.000000e+00 : f32
    %332 = vector.broadcast %cst_227 : f32 to vector<32x128xf32>
    %333 = arith.maximumf %331, %332 : vector<32x128xf32>
    %c0_228 = arith.constant 0 : index
    %c0_229 = arith.constant 0 : index
    %334 = vector.load %arg15[%c0_228, %c0_229] : memref<8x32xbf16, #tpu.memory_space<vmem>>, vector<8x32xbf16>
    %335 = arith.truncf %333 : vector<32x128xf32> to vector<32x128xbf16>
    %cst_230 = arith.constant dense<0.000000e+00> : vector<8x128xf32>
    %336 = tpu.matmul %334, %335, %cst_230 {dimension_numbers = #tpu.dot_dimension_numbers<[1], [0], [0], [1], [0, 0, 1, 1], [], []>} : vector<8x32xbf16>, vector<32x128xbf16>, vector<8x128xf32> -> vector<8x128xf32>
    %337 = arith.truncf %336 : vector<8x128xf32> to vector<8x128xbf16>
    %c1_231 = arith.constant 1 : index
    %c0_232 = arith.constant 0 : index
    %c0_233 = arith.constant 0 : index
    %338 = vector.load %arg13[%c1_231, %c0_232, %c0_233] : memref<3x128x128xbf16, #tpu.memory_space<vmem>>, vector<1x128x128xbf16>
    %339 = vector.shape_cast %338 : vector<1x128x128xbf16> to vector<128x128xbf16>
    %cst_234 = arith.constant dense<0.000000e+00> : vector<8x128xf32>
    %340 = tpu.matmul %337, %339, %cst_234 {dimension_numbers = #tpu.dot_dimension_numbers<[1], [0], [0], [1], [0, 0, 1, 1], [], []>} : vector<8x128xbf16>, vector<128x128xbf16>, vector<8x128xf32> -> vector<8x128xf32>
    %341 = tpu.iota {dimensions = array<i32: 0>} : vector<8x128xi32>
    %c6_235 = arith.constant 6 : index
    %c0_236 = arith.constant 0 : index
    %c0_237 = arith.constant 0 : index
    %342 = vector.load %arg5[%c6_235, %c0_236, %c0_237] : memref<12x1x128xf32, #tpu.memory_space<vmem>>, vector<1x1x128xf32>
    %343 = vector.shape_cast %342 : vector<1x1x128xf32> to vector<1x128xf32>
    %344 = vector.broadcast %343 : vector<1x128xf32> to vector<8x128xf32>
    %345 = arith.mulf %340, %344 : vector<8x128xf32>
    %c6_238 = arith.constant 6 : index
    %c0_239 = arith.constant 0 : index
    %c0_240 = arith.constant 0 : index
    %346 = vector.load %arg6[%c6_238, %c0_239, %c0_240] : memref<12x1x128xf32, #tpu.memory_space<vmem>>, vector<1x1x128xf32>
    %347 = vector.shape_cast %346 : vector<1x1x128xf32> to vector<1x128xf32>
    %348 = vector.broadcast %347 : vector<1x128xf32> to vector<8x128xf32>
    %349 = arith.addf %345, %348 : vector<8x128xf32>
    %cst_241 = arith.constant 0.000000e+00 : f32
    %350 = vector.broadcast %cst_241 : f32 to vector<8x128xf32>
    %351 = arith.maximumf %349, %350 : vector<8x128xf32>
    %352 = arith.truncf %351 : vector<8x128xf32> to vector<8x128xbf16>
    %c6_242 = arith.constant 6 : index
    %c0_243 = arith.constant 0 : index
    %c0_244 = arith.constant 0 : index
    %353 = vector.load %arg7[%c6_242, %c0_243, %c0_244] : memref<12x128x48xbf16, #tpu.memory_space<vmem>>, vector<1x128x48xbf16>
    %354 = vector.shape_cast %353 : vector<1x128x48xbf16> to vector<128x48xbf16>
    %cst_245 = arith.constant dense<0.000000e+00> : vector<8x48xf32>
    %355 = tpu.matmul %352, %354, %cst_245 {dimension_numbers = #tpu.dot_dimension_numbers<[1], [0], [0], [1], [0, 0, 1, 1], [], []>} : vector<8x128xbf16>, vector<128x48xbf16>, vector<8x48xf32> -> vector<8x48xf32>
    %c6_246 = arith.constant 6 : index
    %c0_247 = arith.constant 0 : index
    %c0_248 = arith.constant 0 : index
    %356 = vector.load %arg8[%c6_246, %c0_247, %c0_248] : memref<12x1x48xf32, #tpu.memory_space<vmem>>, vector<1x1x48xf32>
    %357 = vector.shape_cast %356 : vector<1x1x48xf32> to vector<1x48xf32>
    %358 = vector.broadcast %357 : vector<1x48xf32> to vector<8x48xf32>
    %359 = arith.mulf %355, %358 : vector<8x48xf32>
    %c6_249 = arith.constant 6 : index
    %c0_250 = arith.constant 0 : index
    %c0_251 = arith.constant 0 : index
    %360 = vector.load %arg9[%c6_249, %c0_250, %c0_251] : memref<12x1x48xf32, #tpu.memory_space<vmem>>, vector<1x1x48xf32>
    %361 = vector.shape_cast %360 : vector<1x1x48xf32> to vector<1x48xf32>
    %362 = vector.broadcast %361 : vector<1x48xf32> to vector<8x48xf32>
    %363 = arith.addf %359, %362 : vector<8x48xf32>
    %cst_252 = arith.constant 0.000000e+00 : f32
    %364 = vector.broadcast %cst_252 : f32 to vector<8x48xf32>
    %365 = arith.maximumf %363, %364 : vector<8x48xf32>
    %366 = arith.truncf %365 : vector<8x48xf32> to vector<8x48xbf16>
    %c18 = arith.constant 18 : index
    %c0_253 = arith.constant 0 : index
    %c0_254 = arith.constant 0 : index
    %367 = vector.load %arg10[%c18, %c0_253, %c0_254] : memref<36x48x128xbf16, #tpu.memory_space<vmem>>, vector<1x48x128xbf16>
    %368 = vector.shape_cast %367 : vector<1x48x128xbf16> to vector<48x128xbf16>
    %cst_255 = arith.constant dense<0.000000e+00> : vector<8x128xf32>
    %369 = tpu.matmul %366, %368, %cst_255 {dimension_numbers = #tpu.dot_dimension_numbers<[1], [0], [0], [1], [0, 0, 1, 1], [], []>} : vector<8x48xbf16>, vector<48x128xbf16>, vector<8x128xf32> -> vector<8x128xf32>
    %c19 = arith.constant 19 : index
    %c0_256 = arith.constant 0 : index
    %c0_257 = arith.constant 0 : index
    %370 = vector.load %arg10[%c19, %c0_256, %c0_257] : memref<36x48x128xbf16, #tpu.memory_space<vmem>>, vector<1x48x128xbf16>
    %371 = vector.shape_cast %370 : vector<1x48x128xbf16> to vector<48x128xbf16>
    %cst_258 = arith.constant dense<0.000000e+00> : vector<8x128xf32>
    %372 = tpu.matmul %366, %371, %cst_258 {dimension_numbers = #tpu.dot_dimension_numbers<[1], [0], [0], [1], [0, 0, 1, 1], [], []>} : vector<8x48xbf16>, vector<48x128xbf16>, vector<8x128xf32> -> vector<8x128xf32>
    %c20 = arith.constant 20 : index
    %c0_259 = arith.constant 0 : index
    %c0_260 = arith.constant 0 : index
    %373 = vector.load %arg10[%c20, %c0_259, %c0_260] : memref<36x48x128xbf16, #tpu.memory_space<vmem>>, vector<1x48x128xbf16>
    %374 = vector.shape_cast %373 : vector<1x48x128xbf16> to vector<48x128xbf16>
    %cst_261 = arith.constant dense<0.000000e+00> : vector<8x128xf32>
    %375 = tpu.matmul %366, %374, %cst_261 {dimension_numbers = #tpu.dot_dimension_numbers<[1], [0], [0], [1], [0, 0, 1, 1], [], []>} : vector<8x48xbf16>, vector<48x128xbf16>, vector<8x128xf32> -> vector<8x128xf32>
    %c0_i32_262 = arith.constant 0 : i32
    %376 = vector.broadcast %c0_i32_262 : i32 to vector<8x128xi32>
    %377 = arith.cmpi eq, %341, %376 : vector<8x128xi32>
    %c1_i32_263 = arith.constant 1 : i32
    %378 = tpu.dynamic_rotate %369 by %c1_i32_263 dim 0 : vector<8x128xf32>, i32 -> vector<8x128xf32>
    %cst_264 = arith.constant 0.000000e+00 : f32
    %379 = vector.broadcast %cst_264 : f32 to vector<8x128xf32>
    %380 = arith.select %377, %379, %378 : vector<8x128xi1>, vector<8x128xf32>
    %c7_i32 = arith.constant 7 : i32
    %381 = vector.broadcast %c7_i32 : i32 to vector<8x128xi32>
    %382 = arith.cmpi sge, %341, %381 : vector<8x128xi32>
    %c7_i32_265 = arith.constant 7 : i32
    %383 = tpu.dynamic_rotate %375 by %c7_i32_265 dim 0 : vector<8x128xf32>, i32 -> vector<8x128xf32>
    %cst_266 = arith.constant 0.000000e+00 : f32
    %384 = vector.broadcast %cst_266 : f32 to vector<8x128xf32>
    %385 = arith.select %382, %384, %383 : vector<8x128xi1>, vector<8x128xf32>
    %386 = arith.addf %340, %372 : vector<8x128xf32>
    %387 = arith.addf %386, %380 : vector<8x128xf32>
    %388 = arith.addf %387, %385 : vector<8x128xf32>
    %c7_267 = arith.constant 7 : index
    %c0_268 = arith.constant 0 : index
    %c0_269 = arith.constant 0 : index
    %389 = vector.load %arg5[%c7_267, %c0_268, %c0_269] : memref<12x1x128xf32, #tpu.memory_space<vmem>>, vector<1x1x128xf32>
    %390 = vector.shape_cast %389 : vector<1x1x128xf32> to vector<1x128xf32>
    %391 = vector.broadcast %390 : vector<1x128xf32> to vector<8x128xf32>
    %392 = arith.mulf %388, %391 : vector<8x128xf32>
    %c7_270 = arith.constant 7 : index
    %c0_271 = arith.constant 0 : index
    %c0_272 = arith.constant 0 : index
    %393 = vector.load %arg6[%c7_270, %c0_271, %c0_272] : memref<12x1x128xf32, #tpu.memory_space<vmem>>, vector<1x1x128xf32>
    %394 = vector.shape_cast %393 : vector<1x1x128xf32> to vector<1x128xf32>
    %395 = vector.broadcast %394 : vector<1x128xf32> to vector<8x128xf32>
    %396 = arith.addf %392, %395 : vector<8x128xf32>
    %cst_273 = arith.constant 0.000000e+00 : f32
    %397 = vector.broadcast %cst_273 : f32 to vector<8x128xf32>
    %398 = arith.maximumf %396, %397 : vector<8x128xf32>
    %399 = arith.truncf %398 : vector<8x128xf32> to vector<8x128xbf16>
    %c7_274 = arith.constant 7 : index
    %c0_275 = arith.constant 0 : index
    %c0_276 = arith.constant 0 : index
    %400 = vector.load %arg7[%c7_274, %c0_275, %c0_276] : memref<12x128x48xbf16, #tpu.memory_space<vmem>>, vector<1x128x48xbf16>
    %401 = vector.shape_cast %400 : vector<1x128x48xbf16> to vector<128x48xbf16>
    %cst_277 = arith.constant dense<0.000000e+00> : vector<8x48xf32>
    %402 = tpu.matmul %399, %401, %cst_277 {dimension_numbers = #tpu.dot_dimension_numbers<[1], [0], [0], [1], [0, 0, 1, 1], [], []>} : vector<8x128xbf16>, vector<128x48xbf16>, vector<8x48xf32> -> vector<8x48xf32>
    %c7_278 = arith.constant 7 : index
    %c0_279 = arith.constant 0 : index
    %c0_280 = arith.constant 0 : index
    %403 = vector.load %arg8[%c7_278, %c0_279, %c0_280] : memref<12x1x48xf32, #tpu.memory_space<vmem>>, vector<1x1x48xf32>
    %404 = vector.shape_cast %403 : vector<1x1x48xf32> to vector<1x48xf32>
    %405 = vector.broadcast %404 : vector<1x48xf32> to vector<8x48xf32>
    %406 = arith.mulf %402, %405 : vector<8x48xf32>
    %c7_281 = arith.constant 7 : index
    %c0_282 = arith.constant 0 : index
    %c0_283 = arith.constant 0 : index
    %407 = vector.load %arg9[%c7_281, %c0_282, %c0_283] : memref<12x1x48xf32, #tpu.memory_space<vmem>>, vector<1x1x48xf32>
    %408 = vector.shape_cast %407 : vector<1x1x48xf32> to vector<1x48xf32>
    %409 = vector.broadcast %408 : vector<1x48xf32> to vector<8x48xf32>
    %410 = arith.addf %406, %409 : vector<8x48xf32>
    %cst_284 = arith.constant 0.000000e+00 : f32
    %411 = vector.broadcast %cst_284 : f32 to vector<8x48xf32>
    %412 = arith.maximumf %410, %411 : vector<8x48xf32>
    %413 = arith.truncf %412 : vector<8x48xf32> to vector<8x48xbf16>
    %c21 = arith.constant 21 : index
    %c0_285 = arith.constant 0 : index
    %c0_286 = arith.constant 0 : index
    %414 = vector.load %arg10[%c21, %c0_285, %c0_286] : memref<36x48x128xbf16, #tpu.memory_space<vmem>>, vector<1x48x128xbf16>
    %415 = vector.shape_cast %414 : vector<1x48x128xbf16> to vector<48x128xbf16>
    %cst_287 = arith.constant dense<0.000000e+00> : vector<8x128xf32>
    %416 = tpu.matmul %413, %415, %cst_287 {dimension_numbers = #tpu.dot_dimension_numbers<[1], [0], [0], [1], [0, 0, 1, 1], [], []>} : vector<8x48xbf16>, vector<48x128xbf16>, vector<8x128xf32> -> vector<8x128xf32>
    %c22 = arith.constant 22 : index
    %c0_288 = arith.constant 0 : index
    %c0_289 = arith.constant 0 : index
    %417 = vector.load %arg10[%c22, %c0_288, %c0_289] : memref<36x48x128xbf16, #tpu.memory_space<vmem>>, vector<1x48x128xbf16>
    %418 = vector.shape_cast %417 : vector<1x48x128xbf16> to vector<48x128xbf16>
    %cst_290 = arith.constant dense<0.000000e+00> : vector<8x128xf32>
    %419 = tpu.matmul %413, %418, %cst_290 {dimension_numbers = #tpu.dot_dimension_numbers<[1], [0], [0], [1], [0, 0, 1, 1], [], []>} : vector<8x48xbf16>, vector<48x128xbf16>, vector<8x128xf32> -> vector<8x128xf32>
    %c23 = arith.constant 23 : index
    %c0_291 = arith.constant 0 : index
    %c0_292 = arith.constant 0 : index
    %420 = vector.load %arg10[%c23, %c0_291, %c0_292] : memref<36x48x128xbf16, #tpu.memory_space<vmem>>, vector<1x48x128xbf16>
    %421 = vector.shape_cast %420 : vector<1x48x128xbf16> to vector<48x128xbf16>
    %cst_293 = arith.constant dense<0.000000e+00> : vector<8x128xf32>
    %422 = tpu.matmul %413, %421, %cst_293 {dimension_numbers = #tpu.dot_dimension_numbers<[1], [0], [0], [1], [0, 0, 1, 1], [], []>} : vector<8x48xbf16>, vector<48x128xbf16>, vector<8x128xf32> -> vector<8x128xf32>
    %c0_i32_294 = arith.constant 0 : i32
    %423 = vector.broadcast %c0_i32_294 : i32 to vector<8x128xi32>
    %424 = arith.cmpi eq, %341, %423 : vector<8x128xi32>
    %c1_i32_295 = arith.constant 1 : i32
    %425 = tpu.dynamic_rotate %416 by %c1_i32_295 dim 0 : vector<8x128xf32>, i32 -> vector<8x128xf32>
    %cst_296 = arith.constant 0.000000e+00 : f32
    %426 = vector.broadcast %cst_296 : f32 to vector<8x128xf32>
    %427 = arith.select %424, %426, %425 : vector<8x128xi1>, vector<8x128xf32>
    %c7_i32_297 = arith.constant 7 : i32
    %428 = vector.broadcast %c7_i32_297 : i32 to vector<8x128xi32>
    %429 = arith.cmpi sge, %341, %428 : vector<8x128xi32>
    %c7_i32_298 = arith.constant 7 : i32
    %430 = tpu.dynamic_rotate %422 by %c7_i32_298 dim 0 : vector<8x128xf32>, i32 -> vector<8x128xf32>
    %cst_299 = arith.constant 0.000000e+00 : f32
    %431 = vector.broadcast %cst_299 : f32 to vector<8x128xf32>
    %432 = arith.select %429, %431, %430 : vector<8x128xi1>, vector<8x128xf32>
    %433 = arith.addf %388, %419 : vector<8x128xf32>
    %434 = arith.addf %433, %427 : vector<8x128xf32>
    %435 = arith.addf %434, %432 : vector<8x128xf32>
    %c8_300 = arith.constant 8 : index
    %c0_301 = arith.constant 0 : index
    %c0_302 = arith.constant 0 : index
    %436 = vector.load %arg5[%c8_300, %c0_301, %c0_302] : memref<12x1x128xf32, #tpu.memory_space<vmem>>, vector<1x1x128xf32>
    %437 = vector.shape_cast %436 : vector<1x1x128xf32> to vector<1x128xf32>
    %438 = vector.broadcast %437 : vector<1x128xf32> to vector<8x128xf32>
    %439 = arith.mulf %435, %438 : vector<8x128xf32>
    %c8_303 = arith.constant 8 : index
    %c0_304 = arith.constant 0 : index
    %c0_305 = arith.constant 0 : index
    %440 = vector.load %arg6[%c8_303, %c0_304, %c0_305] : memref<12x1x128xf32, #tpu.memory_space<vmem>>, vector<1x1x128xf32>
    %441 = vector.shape_cast %440 : vector<1x1x128xf32> to vector<1x128xf32>
    %442 = vector.broadcast %441 : vector<1x128xf32> to vector<8x128xf32>
    %443 = arith.addf %439, %442 : vector<8x128xf32>
    %cst_306 = arith.constant 0.000000e+00 : f32
    %444 = vector.broadcast %cst_306 : f32 to vector<8x128xf32>
    %445 = arith.maximumf %443, %444 : vector<8x128xf32>
    %446 = arith.truncf %445 : vector<8x128xf32> to vector<8x128xbf16>
    %c8_307 = arith.constant 8 : index
    %c0_308 = arith.constant 0 : index
    %c0_309 = arith.constant 0 : index
    %447 = vector.load %arg7[%c8_307, %c0_308, %c0_309] : memref<12x128x48xbf16, #tpu.memory_space<vmem>>, vector<1x128x48xbf16>
    %448 = vector.shape_cast %447 : vector<1x128x48xbf16> to vector<128x48xbf16>
    %cst_310 = arith.constant dense<0.000000e+00> : vector<8x48xf32>
    %449 = tpu.matmul %446, %448, %cst_310 {dimension_numbers = #tpu.dot_dimension_numbers<[1], [0], [0], [1], [0, 0, 1, 1], [], []>} : vector<8x128xbf16>, vector<128x48xbf16>, vector<8x48xf32> -> vector<8x48xf32>
    %c8_311 = arith.constant 8 : index
    %c0_312 = arith.constant 0 : index
    %c0_313 = arith.constant 0 : index
    %450 = vector.load %arg8[%c8_311, %c0_312, %c0_313] : memref<12x1x48xf32, #tpu.memory_space<vmem>>, vector<1x1x48xf32>
    %451 = vector.shape_cast %450 : vector<1x1x48xf32> to vector<1x48xf32>
    %452 = vector.broadcast %451 : vector<1x48xf32> to vector<8x48xf32>
    %453 = arith.mulf %449, %452 : vector<8x48xf32>
    %c8_314 = arith.constant 8 : index
    %c0_315 = arith.constant 0 : index
    %c0_316 = arith.constant 0 : index
    %454 = vector.load %arg9[%c8_314, %c0_315, %c0_316] : memref<12x1x48xf32, #tpu.memory_space<vmem>>, vector<1x1x48xf32>
    %455 = vector.shape_cast %454 : vector<1x1x48xf32> to vector<1x48xf32>
    %456 = vector.broadcast %455 : vector<1x48xf32> to vector<8x48xf32>
    %457 = arith.addf %453, %456 : vector<8x48xf32>
    %cst_317 = arith.constant 0.000000e+00 : f32
    %458 = vector.broadcast %cst_317 : f32 to vector<8x48xf32>
    %459 = arith.maximumf %457, %458 : vector<8x48xf32>
    %460 = arith.truncf %459 : vector<8x48xf32> to vector<8x48xbf16>
    %c24 = arith.constant 24 : index
    %c0_318 = arith.constant 0 : index
    %c0_319 = arith.constant 0 : index
    %461 = vector.load %arg10[%c24, %c0_318, %c0_319] : memref<36x48x128xbf16, #tpu.memory_space<vmem>>, vector<1x48x128xbf16>
    %462 = vector.shape_cast %461 : vector<1x48x128xbf16> to vector<48x128xbf16>
    %cst_320 = arith.constant dense<0.000000e+00> : vector<8x128xf32>
    %463 = tpu.matmul %460, %462, %cst_320 {dimension_numbers = #tpu.dot_dimension_numbers<[1], [0], [0], [1], [0, 0, 1, 1], [], []>} : vector<8x48xbf16>, vector<48x128xbf16>, vector<8x128xf32> -> vector<8x128xf32>
    %c25 = arith.constant 25 : index
    %c0_321 = arith.constant 0 : index
    %c0_322 = arith.constant 0 : index
    %464 = vector.load %arg10[%c25, %c0_321, %c0_322] : memref<36x48x128xbf16, #tpu.memory_space<vmem>>, vector<1x48x128xbf16>
    %465 = vector.shape_cast %464 : vector<1x48x128xbf16> to vector<48x128xbf16>
    %cst_323 = arith.constant dense<0.000000e+00> : vector<8x128xf32>
    %466 = tpu.matmul %460, %465, %cst_323 {dimension_numbers = #tpu.dot_dimension_numbers<[1], [0], [0], [1], [0, 0, 1, 1], [], []>} : vector<8x48xbf16>, vector<48x128xbf16>, vector<8x128xf32> -> vector<8x128xf32>
    %c26 = arith.constant 26 : index
    %c0_324 = arith.constant 0 : index
    %c0_325 = arith.constant 0 : index
    %467 = vector.load %arg10[%c26, %c0_324, %c0_325] : memref<36x48x128xbf16, #tpu.memory_space<vmem>>, vector<1x48x128xbf16>
    %468 = vector.shape_cast %467 : vector<1x48x128xbf16> to vector<48x128xbf16>
    %cst_326 = arith.constant dense<0.000000e+00> : vector<8x128xf32>
    %469 = tpu.matmul %460, %468, %cst_326 {dimension_numbers = #tpu.dot_dimension_numbers<[1], [0], [0], [1], [0, 0, 1, 1], [], []>} : vector<8x48xbf16>, vector<48x128xbf16>, vector<8x128xf32> -> vector<8x128xf32>
    %c0_i32_327 = arith.constant 0 : i32
    %470 = vector.broadcast %c0_i32_327 : i32 to vector<8x128xi32>
    %471 = arith.cmpi eq, %341, %470 : vector<8x128xi32>
    %c1_i32_328 = arith.constant 1 : i32
    %472 = tpu.dynamic_rotate %463 by %c1_i32_328 dim 0 : vector<8x128xf32>, i32 -> vector<8x128xf32>
    %cst_329 = arith.constant 0.000000e+00 : f32
    %473 = vector.broadcast %cst_329 : f32 to vector<8x128xf32>
    %474 = arith.select %471, %473, %472 : vector<8x128xi1>, vector<8x128xf32>
    %c7_i32_330 = arith.constant 7 : i32
    %475 = vector.broadcast %c7_i32_330 : i32 to vector<8x128xi32>
    %476 = arith.cmpi sge, %341, %475 : vector<8x128xi32>
    %c7_i32_331 = arith.constant 7 : i32
    %477 = tpu.dynamic_rotate %469 by %c7_i32_331 dim 0 : vector<8x128xf32>, i32 -> vector<8x128xf32>
    %cst_332 = arith.constant 0.000000e+00 : f32
    %478 = vector.broadcast %cst_332 : f32 to vector<8x128xf32>
    %479 = arith.select %476, %478, %477 : vector<8x128xi1>, vector<8x128xf32>
    %480 = arith.addf %435, %466 : vector<8x128xf32>
    %481 = arith.addf %480, %474 : vector<8x128xf32>
    %482 = arith.addf %481, %479 : vector<8x128xf32>
    %c2_333 = arith.constant 2 : index
    %c0_334 = arith.constant 0 : index
    %c0_335 = arith.constant 0 : index
    %483 = vector.load %arg11[%c2_333, %c0_334, %c0_335] : memref<3x1x128xf32, #tpu.memory_space<vmem>>, vector<1x1x128xf32>
    %484 = vector.shape_cast %483 : vector<1x1x128xf32> to vector<1x128xf32>
    %485 = vector.broadcast %484 : vector<1x128xf32> to vector<8x128xf32>
    %486 = arith.mulf %482, %485 : vector<8x128xf32>
    %c2_336 = arith.constant 2 : index
    %c0_337 = arith.constant 0 : index
    %c0_338 = arith.constant 0 : index
    %487 = vector.load %arg12[%c2_336, %c0_337, %c0_338] : memref<3x1x128xf32, #tpu.memory_space<vmem>>, vector<1x1x128xf32>
    %488 = vector.shape_cast %487 : vector<1x1x128xf32> to vector<1x128xf32>
    %489 = vector.broadcast %488 : vector<1x128xf32> to vector<8x128xf32>
    %490 = arith.addf %486, %489 : vector<8x128xf32>
    %cst_339 = arith.constant 0.000000e+00 : f32
    %491 = vector.broadcast %cst_339 : f32 to vector<8x128xf32>
    %492 = arith.maximumf %490, %491 : vector<8x128xf32>
    %c0_340 = arith.constant 0 : index
    %c0_341 = arith.constant 0 : index
    %493 = vector.load %arg16[%c0_340, %c0_341] : memref<8x8xbf16, #tpu.memory_space<vmem>>, vector<8x8xbf16>
    %494 = arith.truncf %492 : vector<8x128xf32> to vector<8x128xbf16>
    %cst_342 = arith.constant dense<0.000000e+00> : vector<8x128xf32>
    %495 = tpu.matmul %493, %494, %cst_342 {dimension_numbers = #tpu.dot_dimension_numbers<[1], [0], [0], [1], [0, 0, 1, 1], [], []>} : vector<8x8xbf16>, vector<8x128xbf16>, vector<8x128xf32> -> vector<8x128xf32>
    %496 = arith.truncf %495 : vector<8x128xf32> to vector<8x128xbf16>
    %c2_343 = arith.constant 2 : index
    %c0_344 = arith.constant 0 : index
    %c0_345 = arith.constant 0 : index
    %497 = vector.load %arg13[%c2_343, %c0_344, %c0_345] : memref<3x128x128xbf16, #tpu.memory_space<vmem>>, vector<1x128x128xbf16>
    %498 = vector.shape_cast %497 : vector<1x128x128xbf16> to vector<128x128xbf16>
    %cst_346 = arith.constant dense<0.000000e+00> : vector<8x128xf32>
    %499 = tpu.matmul %496, %498, %cst_346 {dimension_numbers = #tpu.dot_dimension_numbers<[1], [0], [0], [1], [0, 0, 1, 1], [], []>} : vector<8x128xbf16>, vector<128x128xbf16>, vector<8x128xf32> -> vector<8x128xf32>
    %500 = tpu.iota {dimensions = array<i32: 0>} : vector<8x128xi32>
    %c9_347 = arith.constant 9 : index
    %c0_348 = arith.constant 0 : index
    %c0_349 = arith.constant 0 : index
    %501 = vector.load %arg5[%c9_347, %c0_348, %c0_349] : memref<12x1x128xf32, #tpu.memory_space<vmem>>, vector<1x1x128xf32>
    %502 = vector.shape_cast %501 : vector<1x1x128xf32> to vector<1x128xf32>
    %503 = vector.broadcast %502 : vector<1x128xf32> to vector<8x128xf32>
    %504 = arith.mulf %499, %503 : vector<8x128xf32>
    %c9_350 = arith.constant 9 : index
    %c0_351 = arith.constant 0 : index
    %c0_352 = arith.constant 0 : index
    %505 = vector.load %arg6[%c9_350, %c0_351, %c0_352] : memref<12x1x128xf32, #tpu.memory_space<vmem>>, vector<1x1x128xf32>
    %506 = vector.shape_cast %505 : vector<1x1x128xf32> to vector<1x128xf32>
    %507 = vector.broadcast %506 : vector<1x128xf32> to vector<8x128xf32>
    %508 = arith.addf %504, %507 : vector<8x128xf32>
    %cst_353 = arith.constant 0.000000e+00 : f32
    %509 = vector.broadcast %cst_353 : f32 to vector<8x128xf32>
    %510 = arith.maximumf %508, %509 : vector<8x128xf32>
    %511 = arith.truncf %510 : vector<8x128xf32> to vector<8x128xbf16>
    %c9_354 = arith.constant 9 : index
    %c0_355 = arith.constant 0 : index
    %c0_356 = arith.constant 0 : index
    %512 = vector.load %arg7[%c9_354, %c0_355, %c0_356] : memref<12x128x48xbf16, #tpu.memory_space<vmem>>, vector<1x128x48xbf16>
    %513 = vector.shape_cast %512 : vector<1x128x48xbf16> to vector<128x48xbf16>
    %cst_357 = arith.constant dense<0.000000e+00> : vector<8x48xf32>
    %514 = tpu.matmul %511, %513, %cst_357 {dimension_numbers = #tpu.dot_dimension_numbers<[1], [0], [0], [1], [0, 0, 1, 1], [], []>} : vector<8x128xbf16>, vector<128x48xbf16>, vector<8x48xf32> -> vector<8x48xf32>
    %c9_358 = arith.constant 9 : index
    %c0_359 = arith.constant 0 : index
    %c0_360 = arith.constant 0 : index
    %515 = vector.load %arg8[%c9_358, %c0_359, %c0_360] : memref<12x1x48xf32, #tpu.memory_space<vmem>>, vector<1x1x48xf32>
    %516 = vector.shape_cast %515 : vector<1x1x48xf32> to vector<1x48xf32>
    %517 = vector.broadcast %516 : vector<1x48xf32> to vector<8x48xf32>
    %518 = arith.mulf %514, %517 : vector<8x48xf32>
    %c9_361 = arith.constant 9 : index
    %c0_362 = arith.constant 0 : index
    %c0_363 = arith.constant 0 : index
    %519 = vector.load %arg9[%c9_361, %c0_362, %c0_363] : memref<12x1x48xf32, #tpu.memory_space<vmem>>, vector<1x1x48xf32>
    %520 = vector.shape_cast %519 : vector<1x1x48xf32> to vector<1x48xf32>
    %521 = vector.broadcast %520 : vector<1x48xf32> to vector<8x48xf32>
    %522 = arith.addf %518, %521 : vector<8x48xf32>
    %cst_364 = arith.constant 0.000000e+00 : f32
    %523 = vector.broadcast %cst_364 : f32 to vector<8x48xf32>
    %524 = arith.maximumf %522, %523 : vector<8x48xf32>
    %525 = arith.truncf %524 : vector<8x48xf32> to vector<8x48xbf16>
    %c27 = arith.constant 27 : index
    %c0_365 = arith.constant 0 : index
    %c0_366 = arith.constant 0 : index
    %526 = vector.load %arg10[%c27, %c0_365, %c0_366] : memref<36x48x128xbf16, #tpu.memory_space<vmem>>, vector<1x48x128xbf16>
    %527 = vector.shape_cast %526 : vector<1x48x128xbf16> to vector<48x128xbf16>
    %cst_367 = arith.constant dense<0.000000e+00> : vector<8x128xf32>
    %528 = tpu.matmul %525, %527, %cst_367 {dimension_numbers = #tpu.dot_dimension_numbers<[1], [0], [0], [1], [0, 0, 1, 1], [], []>} : vector<8x48xbf16>, vector<48x128xbf16>, vector<8x128xf32> -> vector<8x128xf32>
    %c28 = arith.constant 28 : index
    %c0_368 = arith.constant 0 : index
    %c0_369 = arith.constant 0 : index
    %529 = vector.load %arg10[%c28, %c0_368, %c0_369] : memref<36x48x128xbf16, #tpu.memory_space<vmem>>, vector<1x48x128xbf16>
    %530 = vector.shape_cast %529 : vector<1x48x128xbf16> to vector<48x128xbf16>
    %cst_370 = arith.constant dense<0.000000e+00> : vector<8x128xf32>
    %531 = tpu.matmul %525, %530, %cst_370 {dimension_numbers = #tpu.dot_dimension_numbers<[1], [0], [0], [1], [0, 0, 1, 1], [], []>} : vector<8x48xbf16>, vector<48x128xbf16>, vector<8x128xf32> -> vector<8x128xf32>
    %c29 = arith.constant 29 : index
    %c0_371 = arith.constant 0 : index
    %c0_372 = arith.constant 0 : index
    %532 = vector.load %arg10[%c29, %c0_371, %c0_372] : memref<36x48x128xbf16, #tpu.memory_space<vmem>>, vector<1x48x128xbf16>
    %533 = vector.shape_cast %532 : vector<1x48x128xbf16> to vector<48x128xbf16>
    %cst_373 = arith.constant dense<0.000000e+00> : vector<8x128xf32>
    %534 = tpu.matmul %525, %533, %cst_373 {dimension_numbers = #tpu.dot_dimension_numbers<[1], [0], [0], [1], [0, 0, 1, 1], [], []>} : vector<8x48xbf16>, vector<48x128xbf16>, vector<8x128xf32> -> vector<8x128xf32>
    %c0_i32_374 = arith.constant 0 : i32
    %535 = vector.broadcast %c0_i32_374 : i32 to vector<8x128xi32>
    %536 = arith.cmpi eq, %500, %535 : vector<8x128xi32>
    %c1_i32_375 = arith.constant 1 : i32
    %537 = tpu.dynamic_rotate %528 by %c1_i32_375 dim 0 : vector<8x128xf32>, i32 -> vector<8x128xf32>
    %cst_376 = arith.constant 0.000000e+00 : f32
    %538 = vector.broadcast %cst_376 : f32 to vector<8x128xf32>
    %539 = arith.select %536, %538, %537 : vector<8x128xi1>, vector<8x128xf32>
    %c1_i32_377 = arith.constant 1 : i32
    %540 = vector.broadcast %c1_i32_377 : i32 to vector<8x128xi32>
    %541 = arith.cmpi sge, %500, %540 : vector<8x128xi32>
    %c7_i32_378 = arith.constant 7 : i32
    %542 = tpu.dynamic_rotate %534 by %c7_i32_378 dim 0 : vector<8x128xf32>, i32 -> vector<8x128xf32>
    %cst_379 = arith.constant 0.000000e+00 : f32
    %543 = vector.broadcast %cst_379 : f32 to vector<8x128xf32>
    %544 = arith.select %541, %543, %542 : vector<8x128xi1>, vector<8x128xf32>
    %545 = arith.addf %499, %531 : vector<8x128xf32>
    %546 = arith.addf %545, %539 : vector<8x128xf32>
    %547 = arith.addf %546, %544 : vector<8x128xf32>
    %c10_380 = arith.constant 10 : index
    %c0_381 = arith.constant 0 : index
    %c0_382 = arith.constant 0 : index
    %548 = vector.load %arg5[%c10_380, %c0_381, %c0_382] : memref<12x1x128xf32, #tpu.memory_space<vmem>>, vector<1x1x128xf32>
    %549 = vector.shape_cast %548 : vector<1x1x128xf32> to vector<1x128xf32>
    %550 = vector.broadcast %549 : vector<1x128xf32> to vector<8x128xf32>
    %551 = arith.mulf %547, %550 : vector<8x128xf32>
    %c10_383 = arith.constant 10 : index
    %c0_384 = arith.constant 0 : index
    %c0_385 = arith.constant 0 : index
    %552 = vector.load %arg6[%c10_383, %c0_384, %c0_385] : memref<12x1x128xf32, #tpu.memory_space<vmem>>, vector<1x1x128xf32>
    %553 = vector.shape_cast %552 : vector<1x1x128xf32> to vector<1x128xf32>
    %554 = vector.broadcast %553 : vector<1x128xf32> to vector<8x128xf32>
    %555 = arith.addf %551, %554 : vector<8x128xf32>
    %cst_386 = arith.constant 0.000000e+00 : f32
    %556 = vector.broadcast %cst_386 : f32 to vector<8x128xf32>
    %557 = arith.maximumf %555, %556 : vector<8x128xf32>
    %558 = arith.truncf %557 : vector<8x128xf32> to vector<8x128xbf16>
    %c10_387 = arith.constant 10 : index
    %c0_388 = arith.constant 0 : index
    %c0_389 = arith.constant 0 : index
    %559 = vector.load %arg7[%c10_387, %c0_388, %c0_389] : memref<12x128x48xbf16, #tpu.memory_space<vmem>>, vector<1x128x48xbf16>
    %560 = vector.shape_cast %559 : vector<1x128x48xbf16> to vector<128x48xbf16>
    %cst_390 = arith.constant dense<0.000000e+00> : vector<8x48xf32>
    %561 = tpu.matmul %558, %560, %cst_390 {dimension_numbers = #tpu.dot_dimension_numbers<[1], [0], [0], [1], [0, 0, 1, 1], [], []>} : vector<8x128xbf16>, vector<128x48xbf16>, vector<8x48xf32> -> vector<8x48xf32>
    %c10_391 = arith.constant 10 : index
    %c0_392 = arith.constant 0 : index
    %c0_393 = arith.constant 0 : index
    %562 = vector.load %arg8[%c10_391, %c0_392, %c0_393] : memref<12x1x48xf32, #tpu.memory_space<vmem>>, vector<1x1x48xf32>
    %563 = vector.shape_cast %562 : vector<1x1x48xf32> to vector<1x48xf32>
    %564 = vector.broadcast %563 : vector<1x48xf32> to vector<8x48xf32>
    %565 = arith.mulf %561, %564 : vector<8x48xf32>
    %c10_394 = arith.constant 10 : index
    %c0_395 = arith.constant 0 : index
    %c0_396 = arith.constant 0 : index
    %566 = vector.load %arg9[%c10_394, %c0_395, %c0_396] : memref<12x1x48xf32, #tpu.memory_space<vmem>>, vector<1x1x48xf32>
    %567 = vector.shape_cast %566 : vector<1x1x48xf32> to vector<1x48xf32>
    %568 = vector.broadcast %567 : vector<1x48xf32> to vector<8x48xf32>
    %569 = arith.addf %565, %568 : vector<8x48xf32>
    %cst_397 = arith.constant 0.000000e+00 : f32
    %570 = vector.broadcast %cst_397 : f32 to vector<8x48xf32>
    %571 = arith.maximumf %569, %570 : vector<8x48xf32>
    %572 = arith.truncf %571 : vector<8x48xf32> to vector<8x48xbf16>
    %c30 = arith.constant 30 : index
    %c0_398 = arith.constant 0 : index
    %c0_399 = arith.constant 0 : index
    %573 = vector.load %arg10[%c30, %c0_398, %c0_399] : memref<36x48x128xbf16, #tpu.memory_space<vmem>>, vector<1x48x128xbf16>
    %574 = vector.shape_cast %573 : vector<1x48x128xbf16> to vector<48x128xbf16>
    %cst_400 = arith.constant dense<0.000000e+00> : vector<8x128xf32>
    %575 = tpu.matmul %572, %574, %cst_400 {dimension_numbers = #tpu.dot_dimension_numbers<[1], [0], [0], [1], [0, 0, 1, 1], [], []>} : vector<8x48xbf16>, vector<48x128xbf16>, vector<8x128xf32> -> vector<8x128xf32>
    %c31 = arith.constant 31 : index
    %c0_401 = arith.constant 0 : index
    %c0_402 = arith.constant 0 : index
    %576 = vector.load %arg10[%c31, %c0_401, %c0_402] : memref<36x48x128xbf16, #tpu.memory_space<vmem>>, vector<1x48x128xbf16>
    %577 = vector.shape_cast %576 : vector<1x48x128xbf16> to vector<48x128xbf16>
    %cst_403 = arith.constant dense<0.000000e+00> : vector<8x128xf32>
    %578 = tpu.matmul %572, %577, %cst_403 {dimension_numbers = #tpu.dot_dimension_numbers<[1], [0], [0], [1], [0, 0, 1, 1], [], []>} : vector<8x48xbf16>, vector<48x128xbf16>, vector<8x128xf32> -> vector<8x128xf32>
    %c32 = arith.constant 32 : index
    %c0_404 = arith.constant 0 : index
    %c0_405 = arith.constant 0 : index
    %579 = vector.load %arg10[%c32, %c0_404, %c0_405] : memref<36x48x128xbf16, #tpu.memory_space<vmem>>, vector<1x48x128xbf16>
    %580 = vector.shape_cast %579 : vector<1x48x128xbf16> to vector<48x128xbf16>
    %cst_406 = arith.constant dense<0.000000e+00> : vector<8x128xf32>
    %581 = tpu.matmul %572, %580, %cst_406 {dimension_numbers = #tpu.dot_dimension_numbers<[1], [0], [0], [1], [0, 0, 1, 1], [], []>} : vector<8x48xbf16>, vector<48x128xbf16>, vector<8x128xf32> -> vector<8x128xf32>
    %c0_i32_407 = arith.constant 0 : i32
    %582 = vector.broadcast %c0_i32_407 : i32 to vector<8x128xi32>
    %583 = arith.cmpi eq, %500, %582 : vector<8x128xi32>
    %c1_i32_408 = arith.constant 1 : i32
    %584 = tpu.dynamic_rotate %575 by %c1_i32_408 dim 0 : vector<8x128xf32>, i32 -> vector<8x128xf32>
    %cst_409 = arith.constant 0.000000e+00 : f32
    %585 = vector.broadcast %cst_409 : f32 to vector<8x128xf32>
    %586 = arith.select %583, %585, %584 : vector<8x128xi1>, vector<8x128xf32>
    %c1_i32_410 = arith.constant 1 : i32
    %587 = vector.broadcast %c1_i32_410 : i32 to vector<8x128xi32>
    %588 = arith.cmpi sge, %500, %587 : vector<8x128xi32>
    %c7_i32_411 = arith.constant 7 : i32
    %589 = tpu.dynamic_rotate %581 by %c7_i32_411 dim 0 : vector<8x128xf32>, i32 -> vector<8x128xf32>
    %cst_412 = arith.constant 0.000000e+00 : f32
    %590 = vector.broadcast %cst_412 : f32 to vector<8x128xf32>
    %591 = arith.select %588, %590, %589 : vector<8x128xi1>, vector<8x128xf32>
    %592 = arith.addf %547, %578 : vector<8x128xf32>
    %593 = arith.addf %592, %586 : vector<8x128xf32>
    %594 = arith.addf %593, %591 : vector<8x128xf32>
    %c11_413 = arith.constant 11 : index
    %c0_414 = arith.constant 0 : index
    %c0_415 = arith.constant 0 : index
    %595 = vector.load %arg5[%c11_413, %c0_414, %c0_415] : memref<12x1x128xf32, #tpu.memory_space<vmem>>, vector<1x1x128xf32>
    %596 = vector.shape_cast %595 : vector<1x1x128xf32> to vector<1x128xf32>
    %597 = vector.broadcast %596 : vector<1x128xf32> to vector<8x128xf32>
    %598 = arith.mulf %594, %597 : vector<8x128xf32>
    %c11_416 = arith.constant 11 : index
    %c0_417 = arith.constant 0 : index
    %c0_418 = arith.constant 0 : index
    %599 = vector.load %arg6[%c11_416, %c0_417, %c0_418] : memref<12x1x128xf32, #tpu.memory_space<vmem>>, vector<1x1x128xf32>
    %600 = vector.shape_cast %599 : vector<1x1x128xf32> to vector<1x128xf32>
    %601 = vector.broadcast %600 : vector<1x128xf32> to vector<8x128xf32>
    %602 = arith.addf %598, %601 : vector<8x128xf32>
    %cst_419 = arith.constant 0.000000e+00 : f32
    %603 = vector.broadcast %cst_419 : f32 to vector<8x128xf32>
    %604 = arith.maximumf %602, %603 : vector<8x128xf32>
    %605 = arith.truncf %604 : vector<8x128xf32> to vector<8x128xbf16>
    %c11_420 = arith.constant 11 : index
    %c0_421 = arith.constant 0 : index
    %c0_422 = arith.constant 0 : index
    %606 = vector.load %arg7[%c11_420, %c0_421, %c0_422] : memref<12x128x48xbf16, #tpu.memory_space<vmem>>, vector<1x128x48xbf16>
    %607 = vector.shape_cast %606 : vector<1x128x48xbf16> to vector<128x48xbf16>
    %cst_423 = arith.constant dense<0.000000e+00> : vector<8x48xf32>
    %608 = tpu.matmul %605, %607, %cst_423 {dimension_numbers = #tpu.dot_dimension_numbers<[1], [0], [0], [1], [0, 0, 1, 1], [], []>} : vector<8x128xbf16>, vector<128x48xbf16>, vector<8x48xf32> -> vector<8x48xf32>
    %c11_424 = arith.constant 11 : index
    %c0_425 = arith.constant 0 : index
    %c0_426 = arith.constant 0 : index
    %609 = vector.load %arg8[%c11_424, %c0_425, %c0_426] : memref<12x1x48xf32, #tpu.memory_space<vmem>>, vector<1x1x48xf32>
    %610 = vector.shape_cast %609 : vector<1x1x48xf32> to vector<1x48xf32>
    %611 = vector.broadcast %610 : vector<1x48xf32> to vector<8x48xf32>
    %612 = arith.mulf %608, %611 : vector<8x48xf32>
    %c11_427 = arith.constant 11 : index
    %c0_428 = arith.constant 0 : index
    %c0_429 = arith.constant 0 : index
    %613 = vector.load %arg9[%c11_427, %c0_428, %c0_429] : memref<12x1x48xf32, #tpu.memory_space<vmem>>, vector<1x1x48xf32>
    %614 = vector.shape_cast %613 : vector<1x1x48xf32> to vector<1x48xf32>
    %615 = vector.broadcast %614 : vector<1x48xf32> to vector<8x48xf32>
    %616 = arith.addf %612, %615 : vector<8x48xf32>
    %cst_430 = arith.constant 0.000000e+00 : f32
    %617 = vector.broadcast %cst_430 : f32 to vector<8x48xf32>
    %618 = arith.maximumf %616, %617 : vector<8x48xf32>
    %619 = arith.truncf %618 : vector<8x48xf32> to vector<8x48xbf16>
    %c33 = arith.constant 33 : index
    %c0_431 = arith.constant 0 : index
    %c0_432 = arith.constant 0 : index
    %620 = vector.load %arg10[%c33, %c0_431, %c0_432] : memref<36x48x128xbf16, #tpu.memory_space<vmem>>, vector<1x48x128xbf16>
    %621 = vector.shape_cast %620 : vector<1x48x128xbf16> to vector<48x128xbf16>
    %cst_433 = arith.constant dense<0.000000e+00> : vector<8x128xf32>
    %622 = tpu.matmul %619, %621, %cst_433 {dimension_numbers = #tpu.dot_dimension_numbers<[1], [0], [0], [1], [0, 0, 1, 1], [], []>} : vector<8x48xbf16>, vector<48x128xbf16>, vector<8x128xf32> -> vector<8x128xf32>
    %c34 = arith.constant 34 : index
    %c0_434 = arith.constant 0 : index
    %c0_435 = arith.constant 0 : index
    %623 = vector.load %arg10[%c34, %c0_434, %c0_435] : memref<36x48x128xbf16, #tpu.memory_space<vmem>>, vector<1x48x128xbf16>
    %624 = vector.shape_cast %623 : vector<1x48x128xbf16> to vector<48x128xbf16>
    %cst_436 = arith.constant dense<0.000000e+00> : vector<8x128xf32>
    %625 = tpu.matmul %619, %624, %cst_436 {dimension_numbers = #tpu.dot_dimension_numbers<[1], [0], [0], [1], [0, 0, 1, 1], [], []>} : vector<8x48xbf16>, vector<48x128xbf16>, vector<8x128xf32> -> vector<8x128xf32>
    %c35 = arith.constant 35 : index
    %c0_437 = arith.constant 0 : index
    %c0_438 = arith.constant 0 : index
    %626 = vector.load %arg10[%c35, %c0_437, %c0_438] : memref<36x48x128xbf16, #tpu.memory_space<vmem>>, vector<1x48x128xbf16>
    %627 = vector.shape_cast %626 : vector<1x48x128xbf16> to vector<48x128xbf16>
    %cst_439 = arith.constant dense<0.000000e+00> : vector<8x128xf32>
    %628 = tpu.matmul %619, %627, %cst_439 {dimension_numbers = #tpu.dot_dimension_numbers<[1], [0], [0], [1], [0, 0, 1, 1], [], []>} : vector<8x48xbf16>, vector<48x128xbf16>, vector<8x128xf32> -> vector<8x128xf32>
    %c0_i32_440 = arith.constant 0 : i32
    %629 = vector.broadcast %c0_i32_440 : i32 to vector<8x128xi32>
    %630 = arith.cmpi eq, %500, %629 : vector<8x128xi32>
    %c1_i32_441 = arith.constant 1 : i32
    %631 = tpu.dynamic_rotate %622 by %c1_i32_441 dim 0 : vector<8x128xf32>, i32 -> vector<8x128xf32>
    %cst_442 = arith.constant 0.000000e+00 : f32
    %632 = vector.broadcast %cst_442 : f32 to vector<8x128xf32>
    %633 = arith.select %630, %632, %631 : vector<8x128xi1>, vector<8x128xf32>
    %c1_i32_443 = arith.constant 1 : i32
    %634 = vector.broadcast %c1_i32_443 : i32 to vector<8x128xi32>
    %635 = arith.cmpi sge, %500, %634 : vector<8x128xi32>
    %c7_i32_444 = arith.constant 7 : i32
    %636 = tpu.dynamic_rotate %628 by %c7_i32_444 dim 0 : vector<8x128xf32>, i32 -> vector<8x128xf32>
    %cst_445 = arith.constant 0.000000e+00 : f32
    %637 = vector.broadcast %cst_445 : f32 to vector<8x128xf32>
    %638 = arith.select %635, %637, %636 : vector<8x128xi1>, vector<8x128xf32>
    %639 = arith.addf %594, %625 : vector<8x128xf32>
    %640 = arith.addf %639, %633 : vector<8x128xf32>
    %641 = arith.addf %640, %638 : vector<8x128xf32>
    %c0_446 = arith.constant 0 : index
    %c0_447 = arith.constant 0 : index
    %642 = vector.load %arg17[%c0_446, %c0_447] : memref<1x128xf32, #tpu.memory_space<vmem>>, vector<1x128xf32>
    %643 = vector.broadcast %642 : vector<1x128xf32> to vector<8x128xf32>
    %644 = arith.mulf %641, %643 : vector<8x128xf32>
    %c0_448 = arith.constant 0 : index
    %c0_449 = arith.constant 0 : index
    %645 = vector.load %arg18[%c0_448, %c0_449] : memref<1x128xf32, #tpu.memory_space<vmem>>, vector<1x128xf32>
    %646 = vector.broadcast %645 : vector<1x128xf32> to vector<8x128xf32>
    %647 = arith.addf %644, %646 : vector<8x128xf32>
    %cst_450 = arith.constant 0.000000e+00 : f32
    %648 = vector.broadcast %cst_450 : f32 to vector<8x128xf32>
    %649 = arith.maximumf %647, %648 : vector<8x128xf32>
    %650 = tpu.iota {dimensions = array<i32: 0>} : vector<8x128xi32>
    %c2_i32 = arith.constant 2 : i32
    %651 = vector.broadcast %c2_i32 : i32 to vector<8x128xi32>
    %652 = arith.cmpi slt, %650, %651 : vector<8x128xi32>
    %cst_451 = arith.constant 0.000000e+00 : f32
    %653 = vector.broadcast %cst_451 : f32 to vector<8x128xf32>
    %654 = arith.select %652, %649, %653 : vector<8x128xi1>, vector<8x128xf32>
    %cst_452 = arith.constant dense<0.000000e+00> : vector<128xf32>
    %655 = vector.multi_reduction <add>, %654, %cst_452 [0] : vector<8x128xf32> to vector<128xf32>
    %656 = vector.shape_cast %655 : vector<128xf32> to vector<1x128xf32>
    %cst_453 = arith.constant 5.000000e-01 : f32
    %657 = vector.broadcast %cst_453 : f32 to vector<1x128xf32>
    %658 = arith.mulf %656, %657 : vector<1x128xf32>
    %659 = arith.truncf %658 : vector<1x128xf32> to vector<1x128xbf16>
    %c0_454 = arith.constant 0 : index
    %c0_455 = arith.constant 0 : index
    %660 = vector.load %arg19[%c0_454, %c0_455] : memref<128x128xbf16, #tpu.memory_space<vmem>>, vector<128x128xbf16>
    %cst_456 = arith.constant dense<0.000000e+00> : vector<1x128xf32>
    %661 = tpu.matmul %659, %660, %cst_456 {dimension_numbers = #tpu.dot_dimension_numbers<[1], [0], [0], [1], [0, 0, 1, 1], [], []>} : vector<1x128xbf16>, vector<128x128xbf16>, vector<1x128xf32> -> vector<1x128xf32>
    %c0_457 = arith.constant 0 : index
    %c0_458 = arith.constant 0 : index
    %662 = vector.load %arg20[%c0_457, %c0_458] : memref<1x128xf32, #tpu.memory_space<vmem>>, vector<1x128xf32>
    %663 = arith.addf %661, %662 : vector<1x128xf32>
    %c0_459 = arith.constant 0 : index
    %c0_460 = arith.constant 0 : index
    %c0_461 = arith.constant 0 : index
    %664 = vector.load %arg21[%c0_459, %c0_460, %c0_461] : memref<1x1x128xf32, #tpu.memory_space<vmem>>, vector<1x1x128xf32>
    %665 = vector.shape_cast %664 : vector<1x1x128xf32> to vector<1x128xf32>
    %666 = vector.shape_cast %663 : vector<1x128xf32> to vector<1x1x128xf32>
    tpu.vector_store %arg21[%c0_459, %c0_460, %c0_461], %666 {strides = array<i32>} : memref<1x1x128xf32, #tpu.memory_space<vmem>>, vector<1x1x128xf32>,
    return
  }
  func.func @transform_0(%arg0: i32) -> (i32, i32, i32) {
    %c0_i32 = arith.constant 0 : i32
    %c0_i32_0 = arith.constant 0 : i32
    %c0_i32_1 = arith.constant 0 : i32
    return %arg0, %c0_i32, %c0_i32_0 : i32, i32, i32
  }
  func.func @transform_1(%arg0: i32) -> (i32, i32) {
    %c0_i32 = arith.constant 0 : i32
    %c0_i32_0 = arith.constant 0 : i32
    %c0_i32_1 = arith.constant 0 : i32
    return %c0_i32, %c0_i32_0 : i32, i32
  }
  func.func @transform_2(%arg0: i32) -> (i32, i32) {
    %c0_i32 = arith.constant 0 : i32
    %c0_i32_0 = arith.constant 0 : i32
    %c0_i32_1 = arith.constant 0 : i32
    return %c0_i32, %c0_i32_0 : i32, i32
  }
  func.func @transform_3(%arg0: i32) -> (i32, i32) {
    %c0_i32 = arith.constant 0 : i32
    %c0_i32_0 = arith.constant 0 : i32
    %c0_i32_1 = arith.constant 0 : i32
    return %c0_i32, %c0_i32_0 : i32, i32
  }
  func.func @transform_4(%arg0: i32) -> (i32, i32, i32) {
    %c0_i32 = arith.constant 0 : i32
    %c0_i32_0 = arith.constant 0 : i32
    %c0_i32_1 = arith.constant 0 : i32
    %c0_i32_2 = arith.constant 0 : i32
    return %c0_i32, %c0_i32_0, %c0_i32_1 : i32, i32, i32
  }
  func.func @transform_5(%arg0: i32) -> (i32, i32, i32) {
    %c0_i32 = arith.constant 0 : i32
    %c0_i32_0 = arith.constant 0 : i32
    %c0_i32_1 = arith.constant 0 : i32
    %c0_i32_2 = arith.constant 0 : i32
    return %c0_i32, %c0_i32_0, %c0_i32_1 : i32, i32, i32
  }
  func.func @transform_6(%arg0: i32) -> (i32, i32, i32) {
    %c0_i32 = arith.constant 0 : i32
    %c0_i32_0 = arith.constant 0 : i32
    %c0_i32_1 = arith.constant 0 : i32
    %c0_i32_2 = arith.constant 0 : i32
    return %c0_i32, %c0_i32_0, %c0_i32_1 : i32, i32, i32
  }
  func.func @transform_7(%arg0: i32) -> (i32, i32, i32) {
    %c0_i32 = arith.constant 0 : i32
    %c0_i32_0 = arith.constant 0 : i32
    %c0_i32_1 = arith.constant 0 : i32
    %c0_i32_2 = arith.constant 0 : i32
    return %c0_i32, %c0_i32_0, %c0_i32_1 : i32, i32, i32
  }
  func.func @transform_8(%arg0: i32) -> (i32, i32, i32) {
    %c0_i32 = arith.constant 0 : i32
    %c0_i32_0 = arith.constant 0 : i32
    %c0_i32_1 = arith.constant 0 : i32
    %c0_i32_2 = arith.constant 0 : i32
    return %c0_i32, %c0_i32_0, %c0_i32_1 : i32, i32, i32
  }
  func.func @transform_9(%arg0: i32) -> (i32, i32, i32) {
    %c0_i32 = arith.constant 0 : i32
    %c0_i32_0 = arith.constant 0 : i32
    %c0_i32_1 = arith.constant 0 : i32
    %c0_i32_2 = arith.constant 0 : i32
    return %c0_i32, %c0_i32_0, %c0_i32_1 : i32, i32, i32
  }
  func.func @transform_10(%arg0: i32) -> (i32, i32, i32) {
    %c0_i32 = arith.constant 0 : i32
    %c0_i32_0 = arith.constant 0 : i32
    %c0_i32_1 = arith.constant 0 : i32
    %c0_i32_2 = arith.constant 0 : i32
    return %c0_i32, %c0_i32_0, %c0_i32_1 : i32, i32, i32
  }
  func.func @transform_11(%arg0: i32) -> (i32, i32, i32) {
    %c0_i32 = arith.constant 0 : i32
    %c0_i32_0 = arith.constant 0 : i32
    %c0_i32_1 = arith.constant 0 : i32
    %c0_i32_2 = arith.constant 0 : i32
    return %c0_i32, %c0_i32_0, %c0_i32_1 : i32, i32, i32
  }
  func.func @transform_12(%arg0: i32) -> (i32, i32, i32) {
    %c0_i32 = arith.constant 0 : i32
    %c0_i32_0 = arith.constant 0 : i32
    %c0_i32_1 = arith.constant 0 : i32
    %c0_i32_2 = arith.constant 0 : i32
    return %c0_i32, %c0_i32_0, %c0_i32_1 : i32, i32, i32
  }
  func.func @transform_13(%arg0: i32) -> (i32, i32) {
    %c0_i32 = arith.constant 0 : i32
    %c0_i32_0 = arith.constant 0 : i32
    %c0_i32_1 = arith.constant 0 : i32
    return %c0_i32, %c0_i32_0 : i32, i32
  }
  func.func @transform_14(%arg0: i32) -> (i32, i32) {
    %c0_i32 = arith.constant 0 : i32
    %c0_i32_0 = arith.constant 0 : i32
    %c0_i32_1 = arith.constant 0 : i32
    return %c0_i32, %c0_i32_0 : i32, i32
  }
  func.func @transform_15(%arg0: i32) -> (i32, i32) {
    %c0_i32 = arith.constant 0 : i32
    %c0_i32_0 = arith.constant 0 : i32
    %c0_i32_1 = arith.constant 0 : i32
    return %c0_i32, %c0_i32_0 : i32, i32
  }
  func.func @transform_16(%arg0: i32) -> (i32, i32) {
    %c0_i32 = arith.constant 0 : i32
    %c0_i32_0 = arith.constant 0 : i32
    %c0_i32_1 = arith.constant 0 : i32
    return %c0_i32, %c0_i32_0 : i32, i32
  }
  func.func @transform_17(%arg0: i32) -> (i32, i32) {
    %c0_i32 = arith.constant 0 : i32
    %c0_i32_0 = arith.constant 0 : i32
    %c0_i32_1 = arith.constant 0 : i32
    return %c0_i32, %c0_i32_0 : i32, i32
  }
  func.func @transform_18(%arg0: i32) -> (i32, i32) {
    %c0_i32 = arith.constant 0 : i32
    %c0_i32_0 = arith.constant 0 : i32
    %c0_i32_1 = arith.constant 0 : i32
    return %c0_i32, %c0_i32_0 : i32, i32
  }
  func.func @transform_19(%arg0: i32) -> (i32, i32) {
    %c0_i32 = arith.constant 0 : i32
    %c0_i32_0 = arith.constant 0 : i32
    %c0_i32_1 = arith.constant 0 : i32
    return %c0_i32, %c0_i32_0 : i32, i32
  }
  func.func @transform_20(%arg0: i32) -> (i32, i32, i32) {
    %c0_i32 = arith.constant 0 : i32
    %c0_i32_0 = arith.constant 0 : i32
    %c0_i32_1 = arith.constant 0 : i32
    return %arg0, %c0_i32, %c0_i32_0 : i32, i32, i32
  }
}

</mosaic_0001>

<bundles_post_ra>
// kernel: forward.1
= control target key start
LH: loop header
LB: loop body
LE: loop exit
PB: predicated region body
PF: predicated region fallthrough
CT: control target
= control target key end

     0   :  { %s10252_s0 = inlined_call_operand.vmem [shape: f32[2,128,36], index: 0, kind: input, shape index: {}]   ;;  %s10253_s1 = inlined_call_operand.vmem [shape: bf16[36,256], index: 1, kind: input, shape index: {}]   ;;  %s10254_s2 = inlined_call_operand.vmem [shape: f32[1,256], index: 2, kind: input, shape index: {}]   ;;  %s10255_s3 = inlined_call_operand.vmem [shape: f32[1,256], index: 3, kind: input, shape index: {}]   ;;  %s10256_s4 = inlined_call_operand.vmem [shape: f32[12,1,128], index: 4, kind: input, shape index: {}]   ;;  %s10257_s5 = inlined_call_operand.vmem [shape: f32[12,1,128], index: 5, kind: input, shape index: {}]   ;;  %s10258_s6 = inlined_call_operand.vmem [shape: bf16[12,128,48], index: 6, kind: input, shape index: {}]   ;;  %s10259_s7 = inlined_call_operand.vmem [shape: f32[12,1,48], index: 7, kind: input, shape index: {}]   ;;  %s10260_s8 = inlined_call_operand.vmem [shape: f32[12,1,48], index: 8, kind: input, shape index: {}]   ;;  %s10261_s9 = inlined_call_operand.vmem [shape: bf16[36,48,128], index: 9, kind: input, shape index: {}]   ;;  %s10262_s10 = inlined_call_operand.vmem [shape: f32[3,1,128], index: 10, kind: input, shape index: {}]   ;;  %s10263_s11 = inlined_call_operand.vmem [shape: f32[3,1,128], index: 11, kind: input, shape index: {}]   ;;  %s10264_s12 = inlined_call_operand.vmem [shape: bf16[3,128,128], index: 12, kind: input, shape index: {}]   ;;  %s10265_s13 = inlined_call_operand.vmem [shape: bf16[32,128], index: 13, kind: input, shape index: {}]   ;;  %s10266_s14 = inlined_call_operand.vmem [shape: bf16[8,32], index: 14, kind: input, shape index: {}]   ;;  %s10267_s15 = inlined_call_operand.vmem [shape: bf16[8,8], index: 15, kind: input, shape index: {}]   ;;  %s10268_s16 = inlined_call_operand.vmem [shape: f32[1,128], index: 16, kind: input, shape index: {}]   ;;  %s10269_s17 = inlined_call_operand.vmem [shape: f32[1,128], index: 17, kind: input, shape index: {}]   ;;  %s10270_s18 = inlined_call_operand.vmem [shape: bf16[128,128], index: 18, kind: input, shape index: {}]   ;;  %s10271_s19 = inlined_call_operand.vmem [shape: f32[1,128], index: 19, kind: input, shape index: {}]   ;;  %s10272_s20 = inlined_call_operand.hbm [shape: f32[2,1,128], index: 20, kind: output, shape index: {}]  }
   0x1   :  { %10282 = sst [smem:[#allocation11_spill]] %s10252_s0 }
   0x2   :  { %10283 = sst [smem:[#allocation12_spill]] %s10253_s1 }
   0x3   :  { %10284 = sst [smem:[#allocation13_spill]] %s10254_s2 }
   0x4   :  { %10285 = sst [smem:[#allocation14_spill]] %s10255_s3 }
   0x5   :  { %10286 = sst [smem:[#allocation15_spill]] %s10256_s4 }
   0x6   :  { %10287 = sst [smem:[#allocation16_spill]] %s10257_s5 }
   0x7   :  { %10288 = sst [smem:[#allocation17_spill]] %s10258_s6 }
   0x8   :  { %25 = vsyncpa [#allocation3], 0 }
   0x9   :  { %27 = vsyncpa [#allocation3 + $0x1], 0  ;;  %s7929_s1 = smov 0   ;;  %s7931_s22 = smov 0  }
   0xa   :  { %s7933_s23 = smov 0   ;;  %s7935_s24 = smov 0  }
   0xb LB: > { %10289 = sst [smem:[#allocation5_spill]] %s7810_s1  ;;  %s7950_s2 = sadd.s32 4294967295, %s7822_s24   ;;  %s7822_s24 = sphi %s7935_s24, %s10308_s24   ;;  %s7818_s23 = sphi %s7933_s23, %s10310_s23   ;;  %s7814_s22 = sphi %s7931_s22, %s10312_s22   ;;  %s7810_s1 = sphi %s7929_s1, %s10311_s1  }
   0xc   : > { %10290 = sst [smem:[#allocation6_spill]] %s7818_s23  ;;  %s5846_s25 = sadd.s32 4294967294, %s7822_s24  }
   0xd   : > { %10291 = sst [smem:[#allocation7_spill]] %s7822_s24  ;;  %s7954_s3 = sadd.s32 1, %s7822_s24  }
   0xe   : > { %10292 = sst [smem:[#allocation8_spill]] %s7954_s3  ;;  %s465_s26 = sadd.s32 1, %s7818_s23 }
   0xf   : > { %s462_s27 = ssub.s32 %s7822_s24, %s7954_s3  ;;  %p475_p0 = scmp.ne.s32.totalorder %s7818_s23, %s7814_s22 }
  0x10   : > { %p463_p1 = scmp.eq.s32.totalorder %s462_s27, 0  ;;  %p476_p2 = scmp.eq.s32.totalorder %s7950_s2, 1 }
  0x11   : > { %p481_p3 = scmp.ne.s32.totalorder %s7814_s22, %s7810_s1  ;;  %p482_p4 = scmp.eq.s32.totalorder %s5846_s25, 1 }
  0x12   : > { %s7965_s28 = scalar_select %p463_p1, %s7818_s23, %s465_s26  }
  0x13   : > { %p7967_p5 = por %p476_p2, %p475_p0  ;;  %p7971_p6 = por %p482_p4, %p481_p3 }
  0x14   : > { %10293 = sst [smem:[#allocation9_spill]] %s7965_s28  ;;  %p5849_p7 = scmp.ge.s32.totalorder %s7822_s24, 1 }
  0x15   : > { %s10295_s29 = scalar_select %p7971_p6, 1, 0 }
  0x16   : > { %p565_p8 = scmp.lt.s32.totalorder %s7822_s24, 3 }
  0x17   : > { %10296 = sst [smem:[#allocation10_spill]] %s10295_s29 }
  0x18   : > { %p566_p9 = pnand %p5849_p7, %p565_p8 }
  0x19   : > { %s10297_s21 = sld [smem:[#allocation12_spill]] (!%p566_p9)  ;;  %p622_p10 = scmp.lt.s32.totalorder (!%p566_p9), %s7950_s2, 1 }
  0x1a   : > { %569 = sbr.rel (%p566_p9) target bundleno = 5294 (0x14ae), region = 100  ;;  %s10298_s28 = sld [smem:[#allocation11_spill]] (!%p566_p9) }
  0x1b   : > { %s10299_s6 = sld [smem:[#allocation17_spill]] (!%p566_p9)  ;;  %s620_s1 = sand.u32 (!%p566_p9), 1, %s7814_s22  }
  0x1c   : > { %s10301_s25 = sld [smem:[#allocation14_spill]] (!%p566_p9)  ;;  %s5787_s24 = scalar_lea.hbm (!%p566_p9), %s10272_s20, %s7950_s2 }
  0x1d   : > { %s10302_s23 = sld [smem:[#allocation15_spill]] (!%p566_p9)  ;;  %s5791_s30 = sshll.u32 (!%p566_p9), %s5787_s24, 4  ;;  %s5792_s30 = int_to_ptr.hbm [resolvable:$true] %s5791_s30 }
  0x1e   : > { %s10304_s5 = sld [smem:[#allocation16_spill]] (!%p566_p9)  ;;  %s5779_s0 = scalar_lea.sflag (!%p566_p9), [#allocation3], %s620_s1 }
  0x1f   : > { %v656_v0 = vld [vmem:[%s10297_s21 + $0x20] sm:$0x33]  ;;  %vm707_vm0 = vcmask 1041408   ;;  %v5862_v3 = vld [vmem:[%s10297_s21 + $0x10] sm:$0xf]  ;;  %s623_s29 = scalar_select %p622_p10, %s7950_s2, 1 }
  0x20   : > { %v670_v1 = vunpack.c.l.b16 %v656_v0  ;;  %v671_v2 = vunpack.c.h.b16 %v656_v0  ;;  %v7418_v4 = vld [vmem:[%s10297_s21 + $0x14] sm:$0xf0]  ;;  %v7417_v5 = vld [vmem:[%s10297_s21 + $0x14] sm:$0xf]  ;;  %v5864_v8 = vld [vmem:[%s10297_s21 + $0x18] sm:$0xf0] }
  0x21   : > { %v5854_v11 = vld [vmem:[%s10297_s21] sm:$0xf]  ;;  %s7414_s26 = sshll.u32 %s623_s29, 7  ;;  %v5863_v12 = vor.u32 %v7418_v4, %v5862_v3  ;;  %v5867_v13 = vor.u32 %v7417_v5, %v5864_v8  ;;  %v7416_v14 = vld [vmem:[%s10297_s21 + $0x4] sm:$0xf0]  ;;  %vm682_vm1 = vcmask 293888  }
  0x22   : > { %v676_v6 = vpack.c.b16 %v670_v1, %v670_v1  ;;  %v677_v7 = vpack.c.b16 %v671_v2, %v671_v2  ;;  %s8000_s27 = scalar_lea.vmem %s10298_s28, %s7414_s26  ;;  %v7415_v15 = vld [vmem:[%s10297_s21 + $0x4] sm:$0xf]  ;;  %v5856_v16 = vld [vmem:[%s10297_s21 + $0x8] sm:$0xf0]  ;;  %v5855_v19 = vor.u32 %v7416_v14, %v5854_v11  ;;  %v7426_v63 = vld [vmem:[%s10299_s6 + $0x38] sm:$0xff]  ;;  %vm1299_vm4 = vcmask 392192  }
  0x23   : > { %v628_v17 = vld [vmem:[%s8000_s27] sm:$0xff]  ;;  %v629_v18 = vld [vmem:[%s8000_s27 + $0x8] sm:$0xff]  ;;  %v5859_v20 = vor.u32 %v7415_v15, %v5856_v16  ;;  %v630_v22 = vld [vmem:[%s8000_s27 + $0x10] sm:$0xff]  ;;  %1162 = vmatpush.bf16.msra.mxu2 %v7426_v63  ;;  %s10303_s3 = smov %s10302_s23  ;;  %vm4085_vm8 = vcmask 261120   ;;  %vm4891_vm10 = vcmask 1043456   ;;  %vm4887_vm11 = vcmask 64512  }
  0x24   : > { %v709_v9 = vsel %vm707_vm0, %v676_v6, 0  ;;  %v712_v10 = vsel %vm707_vm0, %v677_v7, 0  ;;  %v644_v21 = vpack.c.bf16 %v629_v18, %v628_v17  ;;  %v631_v23 = vld [vmem:[%s8000_s27 + $0x18] sm:$0xff]  ;;  %v632_v25 = vld [vmem:[%s8000_s27 + $0x20] sm:$0xff]  ;;  %v633_v26 = vld [vmem:[%s8000_s27 + $0x28] sm:$0xff]  ;;  %s621_s28 = scalar_lea.vmem [#allocation2], %s620_s1 }
  0x25   : > { %719 = vmatpush.bf16.msra.mxu0 %v709_v9  ;;  %768 = vmatpush.bf16.msra.mxu1 %v712_v10  ;;  %v645_v24 = vpack.c.bf16 %v631_v23, %v630_v22  ;;  %v646_v27 = vpack.c.bf16 %v633_v26, %v632_v25  ;;  %v634_v28 = vld [vmem:[%s8000_s27 + $0x30] sm:$0xff]  ;;  %v635_v29 = vld [vmem:[%s8000_s27 + $0x38] sm:$0xff]  ;;  %v636_v31 = vld [vmem:[%s8000_s27 + $0x40] sm:$0xff]  ;;  %v920_v25 = vlaneseq }
  0x26   : > { %v647_v30 = vpack.c.bf16 %v635_v29, %v634_v28  ;;  %v637_v32 = vld [vmem:[%s8000_s27 + $0x48] sm:$0xff]  ;;  %v638_v34 = vld [vmem:[%s8000_s27 + $0x50] sm:$0xff]  ;;  %v639_v35 = vld [vmem:[%s8000_s27 + $0x58] sm:$0xff] }
  0x27   : > { %v648_v33 = vpack.c.bf16 %v637_v32, %v636_v31  ;;  %v649_v36 = vpack.c.bf16 %v639_v35, %v638_v34  ;;  %v640_v37 = vld [vmem:[%s8000_s27 + $0x60] sm:$0xff]  ;;  %v641_v38 = vld [vmem:[%s8000_s27 + $0x68] sm:$0xff]  ;;  %v642_v40 = vld [vmem:[%s8000_s27 + $0x70] sm:$0xff]  ;;  %v8137_v31 = vshrl.u32 %v920_v25, 7 }
  0x28   : > { %v650_v39 = vpack.c.bf16 %v641_v38, %v640_v37  ;;  %v643_v41 = vld [vmem:[%s8000_s27 + $0x78] sm:$0xff]  ;;  %v7425_v2 = vld [vmem:[%s10299_s6 + $0x30] sm:$0xff]  ;;  %v7424_v3 = vld [vmem:[%s10299_s6 + $0x28] sm:$0xff]  ;;  %s10300_s27 = sld [smem:[#allocation13_spill]] }
  0x29   : > { %720 = vmatpush.bf16.msra.mxu0 %v5863_v12  ;;  %769 = vmatpush.bf16.msra.mxu1 %v5867_v13  ;;  %v651_v42 = vpack.c.bf16 %v643_v41, %v642_v40  ;;  %v7423_v6 = vld [vmem:[%s10299_s6 + $0x20] sm:$0xff]  ;;  %v7422_v7 = vld [vmem:[%s10299_s6 + $0x18] sm:$0xff]  ;;  %v7421_v8 = vld [vmem:[%s10299_s6 + $0x10] sm:$0xff]  ;;  %vm969_vm2 = vcmp.lt.s32.totalorder %v8137_v31, 1  ;;  %vm937_vm3 = vcmp.eq.s32.totalorder %v8137_v31, 0  ;;  %vm1601_vm5 = vcmp.lt.s32.totalorder %v8137_v31, 7 }
  0x2a   : > { %1163 = vmatpush.bf16.msra.mxu2 %v7425_v2  ;;  %v7420_v11 = vld [vmem:[%s10299_s6 + $0x8] sm:$0xff]  ;;  %v7419_v13 = vld [vmem:[%s10299_s6] sm:$0xff]  ;;  %vm4406_vm9 = vcmp.ge.s32.totalorder %v8137_v31, 7  ;;  %vm5212_vm12 = vcmp.ge.s32.totalorder %v8137_v31, 1  ;;  %vm5689_vm13 = vcmp.lt.s32.totalorder %v8137_v31, 2 }
  0x2b   : > { %v850_v17 = vld [vmem:[%s10301_s25] sm:$0x3]  ;;  %s7780_s25 = scalar_lea.hbm %s10272_s20, 2 }
  0x2d   : > { %721 = vmatpush.bf16.msra.mxu0 %v5855_v19  ;;  %770 = vmatpush.bf16.msra.mxu1 %v5859_v20 }
  0x2e   : > { %1164 = vmatpush.bf16.msra.mxu2 %v7424_v3  ;;  %v812_v12 = vld [vmem:[%s10300_s27] sm:$0x3]  ;;  %s5789_s27 = sshll.u32 %s621_s28, 4  ;;  %s5790_s27 = int_to_ptr.vmem [resolvable:$true] %s5789_s27 }
  0x2f   : > { %v8114_v14 = vperm.slane %v812_v12, 1  ;;  %v8124_v19 = vperm.slane %v812_v12, 0 }
  0x30   : > { %5868 = vmatmul.msk.bf16.vlgmr.msra.gmra.mxu0 %vm682_vm1, %v644_v21  ;;  %5876 = vmatmul.msk.bf16.vlgmr.msra.gmra.mxu1 %vm682_vm1, %v644_v21  ;;  %v8127_v21 = vperm.slane %v850_v17, 1 }
  0x32   : > { %1165 = vmatpush.bf16.msra.mxu2 %v7423_v6 }
  0x36   : > { %1166 = vmatpush.bf16.msra.mxu2 %v7422_v7 }
  0x3a   : > { %1167 = vmatpush.bf16.msra.mxu2 %v7421_v8 }
  0x3e   : > { %1168 = vmatpush.bf16.msra.mxu2 %v7420_v11 }
  0x40   : > { %5869 = vmatmul.msk.bf16.gmra.mxu0 %vm682_vm1, %v645_v24  ;;  %5877 = vmatmul.msk.bf16.gmra.mxu1 %vm682_vm1, %v645_v24  ;;  %v8131_v24 = vperm.slane %v850_v17, 0 }
  0x42   : > { %1169 = vmatpush.bf16.msra.mxu2 %v7419_v13 }
  0x50   : > { %5870 = vmatmul.msk.bf16.gmra.mxu0 %vm682_vm1, %v646_v27  ;;  %5878 = vmatmul.msk.bf16.gmra.mxu1 %vm682_vm1, %v646_v27 }
  0x60   : > { %5871 = vmatmul.msk.bf16.gmra.mxu0 %vm682_vm1, %v647_v30  ;;  %5879 = vmatmul.msk.bf16.gmra.mxu1 %vm682_vm1, %v647_v30 }
  0x70   : > { %5872 = vmatmul.msk.bf16.gmra.mxu0 %vm682_vm1, %v648_v33  ;;  %5880 = vmatmul.msk.bf16.gmra.mxu1 %vm682_vm1, %v648_v33 }
  0x80   : > { %5873 = vmatmul.msk.bf16.gmra.mxu0 %vm682_vm1, %v649_v36  ;;  %5881 = vmatmul.msk.bf16.gmra.mxu1 %vm682_vm1, %v649_v36 }
  0x90   : > { %5874 = vmatmul.msk.bf16.gmra.mxu0 %vm682_vm1, %v650_v39  ;;  %5882 = vmatmul.msk.bf16.gmra.mxu1 %vm682_vm1, %v650_v39 }
  0xa0   : > { %5875 = vmatmul.msk.bf16.gmra.mxu0 %vm682_vm1, %v651_v42  ;;  %5883 = vmatmul.msk.bf16.gmra.mxu1 %vm682_vm1, %v651_v42 }
  0xad   : > { %v723_v43 = vpop.f32.mrf.mxu0  ;;  %v772_v44 = vpop.f32.mrf.mxu1 }
  0xae   : > { %v819_v20 = vmul.f32 %v8114_v14, %v772_v44  ;;  %v818_v33 = vmul.f32 %v8124_v19, %v723_v43 }
  0xb0   : > { %v857_v26 = vadd.f32 %v8127_v21, %v819_v20  ;;  %v856_v38 = vadd.f32 %v8131_v24, %v818_v33 }
  0xb2   : > { %v889_v34 = vmax.f32 %v857_v26, 0.0  ;;  %v888_v7 = vmax.f32 %v856_v38, 0.0 }
  0xb4   : > { %v953_v39 = vrot.slane %v889_v34, 7 }
  0xb5   : > { %v725_v45 = vpop.f32.mrf.mxu0  ;;  %v774_v46 = vpop.f32.mrf.mxu1 }
  0xb6   : > { %v821_v18 = vmul.f32 %v8114_v14, %v774_v46  ;;  %v820_v22 = vmul.f32 %v8124_v19, %v725_v45 }
  0xb8   : > { %v859_v23 = vadd.f32 %v8127_v21, %v821_v18  ;;  %v858_v29 = vadd.f32 %v8131_v24, %v820_v22 }
  0xba   : > { %v891_v30 = vmax.f32 %v859_v23, 0.0  ;;  %v890_v35 = vmax.f32 %v858_v29, 0.0 }
  0xbc   : > { %v954_v36 = vrot.slane %v891_v30, 7  ;;  %v1003_v44 = vmax.f32 %v890_v35, %v891_v30  ;;  %v8184_v30 = vld [vmem:[%s10304_s5] ss:$0 sm:$0xff] }
  0xbd   : > { %v8043_v47 = vpop.f32.mrf.mxu0  ;;  %v8045_v48 = vpop.f32.mrf.mxu1 }
  0xbe   : > { %v823_v46 = vmul.f32 %v8114_v14, %v8045_v48  ;;  %v984_v2 = vsel %vm969_vm2, %v953_v39, %v954_v36  ;;  %v822_v11 = vmul.f32 %v8124_v19, %v8043_v47  ;;  %v1002_v47 = vmax.f32 %v888_v7, %v889_v34 }
  0xbf   : > { %v8162_v13 = vmax.f32 %v1003_v44, %v984_v2 }
  0xc0   : > { %v861_v17 = vadd.f32 %v8127_v21, %v823_v46  ;;  %v860_v26 = vadd.f32 %v8131_v24, %v822_v11 }
  0xc2   : > { %v893_v33 = vmax.f32 %v861_v17, 0.0 }
  0xc5   : > { %v8047_v49 = vpop.f32.mrf.mxu0  ;;  %v8049_v50 = vpop.f32.mrf.mxu1 }
  0xc6   : > { %v825_v40 = vmul.f32 %v8114_v14, %v8049_v50  ;;  %v824_v63 = vmul.f32 %v8124_v19, %v8047_v49  ;;  %v8167_v49 = vld [vmem:[%s10302_s23] ss:$0 sm:$0xff] }
  0xc7   : > { %v1039_v29 = vmul.f32 %v8167_v49, %v8162_v13 }
  0xc8   : > { %v863_v8 = vadd.f32 %v8127_v21, %v825_v40  ;;  %v862_v18 = vadd.f32 %v8131_v24, %v824_v63 }
  0xc9   : > { %v1059_v44 = vadd.f32 %v8184_v30, %v1039_v29 }
  0xca   : > { %v895_v25 = vmax.f32 %v863_v8, 0.0  ;;  %v894_v38 = vmax.f32 %v862_v18, 0.0 }
  0xcb   : > { %v1075_v7 = vmax.f32 %v1059_v44, 0.0 }
  0xcc   : > { %v956_v40 = vrot.slane %v895_v25, 7 }
  0xcd   : > { %v8051_v51 = vpop.f32.mrf.mxu0  ;;  %v8053_v52 = vpop.f32.mrf.mxu1 }
  0xce   : > { %v827_v11 = vmul.f32 %v8114_v14, %v8053_v52 }
  0xd5   : > { %v8055_v53 = vpop.f32.mrf.mxu0  ;;  %v8057_v54 = vpop.f32.mrf.mxu1 }
  0xd6   : > { %v829_v63 = vmul.f32 %v8114_v14, %v8057_v54 }
  0xd8   : > { %v867_v54 = vadd.f32 %v8127_v21, %v829_v63 }
  0xdd   : > { %v8059_v55 = vpop.f32.mrf.mxu0  ;;  %v8061_v56 = vpop.f32.mrf.mxu1 }
  0xde   : > { %v831_v63 = vmul.f32 %v8114_v14, %v8061_v56 }
  0xe5   : > { %v8063_v57 = vpop.f32.mrf.mxu0  ;;  %v8065_v58 = vpop.f32.mrf.mxu1 }
  0xed   : > { %v8067_v59 = vpop.f32.mrf.mxu0  ;;  %v8069_v60 = vpop.f32.mrf.mxu1 }
  0xf5   : > { %v8071_v61 = vpop.f32.mrf.mxu0  ;;  %v8073_v62 = vpop.f32.mrf.mxu1 }
  0xfd   : > { %v8078_v0 = vpop.f32.mrf.mxu0  ;;  %v8080_v1 = vpop.f32.mrf.mxu1 }
 0x105   : > { %v8088_v4 = vpop.f32.mrf.mxu0  ;;  %v8090_v5 = vpop.f32.mrf.mxu1 }
 0x10d   : > { %v8101_v9 = vpop.f32.mrf.mxu0  ;;  %v8103_v10 = vpop.f32.mrf.mxu1 }
 0x115   : > { %v8116_v15 = vpop.f32.mrf.mxu0  ;;  %v8118_v16 = vpop.f32.mrf.mxu1 }
 0x11d   : > { %v8134_v27 = vpop.f32.mrf.mxu0  ;;  %v807_v28 = vpop.f32.mrf.mxu1 }
 0x11e   : > { %v847_v32 = vmul.f32 %v8114_v14, %v807_v28 }
 0x120   : > { %v8143_v37 = vadd.f32 %v8127_v21, %v847_v32 }
 0x122   : > { %v917_v3 = vmax.f32 %v8143_v37, 0.0  ;;  %v7429_v37 = vld [vmem:[%s10261_s9 + $0x10] sm:$0xff] }
 0x123   : > { %1329 = vmatpush.bf16.msra.mxu3 %v7429_v37 }
 0x124   : > { %v8173_v20 = vrot.slane %v917_v3, 7 }
 0x125   : > { %v760_v41 = vpop.f32.mrf.mxu0  ;;  %v809_v42 = vpop.f32.mrf.mxu1 }
 0x126   : > { %v848_v45 = vmul.f32 %v8124_v19, %v760_v41  ;;  %v849_v43 = vmul.f32 %v8114_v14, %v809_v42  ;;  %v892_v41 = vmax.f32 %v860_v26, 0.0 }
 0x128   : > { %v886_v50 = vadd.f32 %v8131_v24, %v848_v45  ;;  %v887_v6 = vadd.f32 %v8127_v21, %v849_v43  ;;  %v955_v45 = vrot.slane %v893_v33, 7  ;;  %v1005_v43 = vmax.f32 %v894_v38, %v895_v25 }
 0x12a   : > { %v918_v12 = vmax.f32 %v886_v50, 0.0  ;;  %v919_v48 = vmax.f32 %v887_v6, 0.0  ;;  %v982_v2 = vsel %vm969_vm2, %v955_v45, %v956_v40  ;;  %v1004_v50 = vmax.f32 %v892_v41, %v893_v33 }
 0x12b   : > { %v983_v8 = vsel %vm969_vm2, %v954_v36, %v955_v45  ;;  %v8209_v17 = vmax.f32 %v1005_v43, %v982_v2  ;;  %v832_v2 = vmul.f32 %v8124_v19, %v8063_v57 }
 0x12c   : > { %v968_v22 = vrot.slane %v919_v48, 7  ;;  %v1017_v23 = vmax.f32 %v918_v12, %v919_v48  ;;  %v828_v12 = vmul.f32 %v8124_v19, %v8055_v53  ;;  %v8212_v18 = vmax.f32 %v1004_v50, %v983_v8 }
 0x12d   : > { %v1041_v52 = vmul.f32 %v8167_v49, %v8209_v17  ;;  %v830_v8 = vmul.f32 %v8124_v19, %v8059_v55 }
 0x12e   : > { %v985_v28 = vsel %vm969_vm2, %v968_v22, %v953_v39  ;;  %v970_v32 = vsel %vm969_vm2, %v8173_v20, %v968_v22  ;;  %v826_v22 = vmul.f32 %v8124_v19, %v8051_v51  ;;  %v866_v36 = vadd.f32 %v8131_v24, %v828_v12 }
 0x12f   : > { %v986_v34 = vsel %vm937_vm3, 0.0, %v985_v28  ;;  %v8191_v35 = vmax.f32 %v1017_v23, %v970_v32  ;;  %v865_v23 = vadd.f32 %v8127_v21, %v827_v11  ;;  %v1040_v25 = vmul.f32 %v8167_v49, %v8212_v18 }
 0x130   : > { %v8193_v39 = vmax.f32 %v1002_v47, %v986_v34  ;;  %v899_v47 = vmax.f32 %v867_v54, 0.0  ;;  %v864_v53 = vadd.f32 %v8131_v24, %v826_v22  ;;  %v898_v28 = vmax.f32 %v866_v36, 0.0 }
 0x131   : > { %v897_v26 = vmax.f32 %v865_v23, 0.0  ;;  %v1061_v29 = vadd.f32 %v8184_v30, %v1041_v52  ;;  %v1060_v33 = vadd.f32 %v8184_v30, %v1040_v25  ;;  %v869_v11 = vadd.f32 %v8127_v21, %v831_v63 }
 0x132   : > { %v1038_v42 = vmul.f32 %v8167_v49, %v8193_v39  ;;  %v958_v32 = vrot.slane %v899_v47, 7  ;;  %v896_v51 = vmax.f32 %v864_v53, 0.0  ;;  %v1007_v38 = vmax.f32 %v898_v28, %v899_v47 }
 0x133   : > { %v957_v34 = vrot.slane %v897_v26, 7  ;;  %v1077_v41 = vmax.f32 %v1061_v29, 0.0  ;;  %v1076_v43 = vmax.f32 %v1060_v33, 0.0  ;;  %v868_v57 = vadd.f32 %v8131_v24, %v830_v8 }
 0x134   : > { %v1058_v46 = vadd.f32 %v8184_v30, %v1038_v42  ;;  %v833_v42 = vmul.f32 %v8114_v14, %v8065_v58  ;;  %v1006_v45 = vmax.f32 %v896_v51, %v897_v26  ;;  %v901_v54 = vmax.f32 %v869_v11, 0.0 }
 0x135   : > { %v980_v44 = vsel %vm969_vm2, %v957_v34, %v958_v32  ;;  %v1091_v50 = vpack.c.bf16 %v1077_v41, %v1076_v43  ;;  %v900_v55 = vmax.f32 %v868_v57, 0.0  ;;  %v837_v26 = vmul.f32 %v8114_v14, %v8073_v62 }
 0x136   : > { %v1074_v6 = vmax.f32 %v1058_v46, 0.0  ;;  %v981_v46 = vsel %vm969_vm2, %v956_v40, %v957_v34  ;;  %v870_v40 = vadd.f32 %v8131_v24, %v832_v2  ;;  %v959_v47 = vrot.slane %v901_v54, 7 }
 0x137   : > { %v8238_v58 = vmax.f32 %v1006_v45, %v981_v46  ;;  %v1008_v29 = vmax.f32 %v900_v55, %v901_v54  ;;  %v835_v34 = vmul.f32 %v8114_v14, %v8069_v60  ;;  %v834_v45 = vmul.f32 %v8124_v19, %v8067_v59 }
 0x138   : > { %v1090_v48 = vpack.c.bf16 %v1075_v7, %v1074_v6  ;;  %v8235_v6 = vmax.f32 %v1007_v38, %v980_v44  ;;  %v871_v7 = vadd.f32 %v8127_v21, %v833_v42  ;;  %v902_v22 = vmax.f32 %v870_v40, 0.0 }
 0x139   : > { %v979_v33 = vsel %vm969_vm2, %v958_v32, %v959_v47  ;;  %v836_v38 = vmul.f32 %v8124_v19, %v8071_v61  ;;  %v875_v44 = vadd.f32 %v8127_v21, %v837_v26  ;;  %v873_v43 = vadd.f32 %v8127_v21, %v835_v34 }
 0x13a   : > { %1170 = vmatmul.bf16.vlgmr.msra.gmra.mxu2 %v1090_v48  ;;  %v1043_v56 = vmul.f32 %v8167_v49, %v8235_v6  ;;  %v903_v12 = vmax.f32 %v871_v7, 0.0  ;;  %v1042_v48 = vmul.f32 %v8167_v49, %v8238_v58  ;;  %v8264_v62 = vmax.f32 %v1008_v29, %v979_v33 }
 0x13b   : > { %v874_v32 = vadd.f32 %v8131_v24, %v836_v38  ;;  %v907_v46 = vmax.f32 %v875_v44, 0.0  ;;  %v872_v61 = vadd.f32 %v8131_v24, %v834_v45  ;;  %v905_v2 = vmax.f32 %v873_v43, 0.0 }
 0x13c   : > { %v1063_v23 = vadd.f32 %v8184_v30, %v1043_v56  ;;  %v960_v36 = vrot.slane %v903_v12, 7  ;;  %v1062_v52 = vadd.f32 %v8184_v30, %v1042_v48  ;;  %v1009_v53 = vmax.f32 %v902_v22, %v903_v12 }
 0x13d   : > { %v1044_v63 = vmul.f32 %v8167_v49, %v8264_v62  ;;  %v962_v8 = vrot.slane %v907_v46, 7  ;;  %v904_v59 = vmax.f32 %v872_v61, 0.0  ;;  %v961_v40 = vrot.slane %v905_v2, 7 }
 0x13e   : > { %v1079_v25 = vmax.f32 %v1063_v23, 0.0  ;;  %v978_v28 = vsel %vm969_vm2, %v959_v47, %v960_v36  ;;  %v1078_v51 = vmax.f32 %v1062_v52, 0.0  ;;  %v841_v57 = vmul.f32 %v8114_v14, %v8090_v5 }
 0x13f   : > { %v8261_v42 = vmax.f32 %v1009_v53, %v978_v28  ;;  %v1064_v11 = vadd.f32 %v8184_v30, %v1044_v63  ;;  %v976_v48 = vsel %vm969_vm2, %v961_v40, %v962_v8  ;;  %v1010_v54 = vmax.f32 %v904_v59, %v905_v2 }
 0x140   : > { %v1092_v41 = vpack.c.bf16 %v1079_v25, %v1078_v51  ;;  %v977_v23 = vsel %vm969_vm2, %v960_v36, %v961_v40  ;;  %v839_v55 = vmul.f32 %v8114_v14, %v8080_v1  ;;  %v840_v52 = vmul.f32 %v8124_v19, %v8088_v4 }
 0x141   : > { %v1045_v60 = vmul.f32 %v8167_v49, %v8261_v42  ;;  %v1080_v22 = vmax.f32 %v1064_v11, 0.0  ;;  %v879_v25 = vadd.f32 %v8127_v21, %v841_v57  ;;  %v8290_v5 = vmax.f32 %v1010_v54, %v977_v23 }
 0x142   : > { %v838_v26 = vmul.f32 %v8124_v19, %v8078_v0  ;;  %v877_v28 = vadd.f32 %v8127_v21, %v839_v55  ;;  %v878_v36 = vadd.f32 %v8131_v24, %v840_v52 }
 0x143   : > { %v1065_v7 = vadd.f32 %v8184_v30, %v1045_v60  ;;  %v911_v29 = vmax.f32 %v879_v25, 0.0  ;;  %v1046_v51 = vmul.f32 %v8167_v49, %v8290_v5  ;;  %v845_v60 = vmul.f32 %v8114_v14, %v8118_v16 }
 0x144   : > { %v876_v4 = vadd.f32 %v8131_v24, %v838_v26  ;;  %v909_v33 = vmax.f32 %v877_v28, 0.0  ;;  %v910_v34 = vmax.f32 %v878_v36, 0.0 }
 0x145   : > { %v1081_v12 = vmax.f32 %v1065_v7, 0.0  ;;  %v1066_v44 = vadd.f32 %v8184_v30, %v1046_v51  ;;  %v844_v7 = vmul.f32 %v8124_v19, %v8116_v15  ;;  %v883_v40 = vadd.f32 %v8127_v21, %v845_v60 }
 0x146   : > { %v908_v0 = vmax.f32 %v876_v4, 0.0  ;;  %v963_v45 = vrot.slane %v909_v33, 7  ;;  %v1013_v43 = vmax.f32 %v910_v34, %v911_v29  ;;  %v846_v51 = vmul.f32 %v8124_v19, %v8134_v27 }
 0x147   : > { %v1093_v47 = vpack.c.bf16 %v1081_v12, %v1080_v22  ;;  %v1082_v63 = vmax.f32 %v1066_v44, 0.0 }
 0x148   : > { %v1012_v61 = vmax.f32 %v908_v0, %v909_v33  ;;  %v975_v2 = vsel %vm969_vm2, %v962_v8, %v963_v45  ;;  %v882_v8 = vadd.f32 %v8131_v24, %v844_v7  ;;  %v884_v34 = vadd.f32 %v8131_v24, %v846_v51  ;;  %v7434_v7 = vld [vmem:[%s10261_s9 + $0x38] sm:$0xff] }
 0x14a   : > { %1175 = vmatmul.bf16.gmra.mxu2 %v1091_v50  ;;  %v906_v50 = vmax.f32 %v874_v32, 0.0  ;;  %v8316_v16 = vmax.f32 %v1012_v61, %v975_v2  ;;  %v914_v54 = vmax.f32 %v882_v8, 0.0 }
 0x14c   : > { %v1011_v56 = vmax.f32 %v906_v50, %v907_v46  ;;  %v843_v50 = vmul.f32 %v8114_v14, %v8103_v10  ;;  %v915_v14 = vmax.f32 %v883_v40, 0.0  ;;  %v1048_v57 = vmul.f32 %v8167_v49, %v8316_v16  ;;  %v7427_v40 = vld [vmem:[%s10261_s9] sm:$0xff] }
 0x14e   : > { %v8287_v53 = vmax.f32 %v1011_v56, %v976_v48  ;;  %v842_v56 = vmul.f32 %v8124_v19, %v8101_v9  ;;  %v881_v12 = vadd.f32 %v8127_v21, %v843_v50  ;;  %v966_v23 = vrot.slane %v915_v14, 7  ;;  %v7431_v50 = vld [vmem:[%s10261_s9 + $0x20] sm:$0xff] }
 0x14f   : > { %v1068_v55 = vadd.f32 %v8184_v30, %v1048_v57  ;;  %v1015_v52 = vmax.f32 %v914_v54, %v915_v14 }
 0x150   : > { %v1047_v1 = vmul.f32 %v8167_v49, %v8287_v53  ;;  %v880_v15 = vadd.f32 %v8131_v24, %v842_v56  ;;  %v913_v48 = vmax.f32 %v881_v12, 0.0  ;;  %v971_v19 = vsel %vm969_vm2, %v966_v23, %v8173_v20  ;;  %v7435_v20 = vld [vmem:[%s10261_s9 + $0x40] sm:$0xff]  ;;  %v7430_v56 = vld [vmem:[%s10261_s9 + $0x18] sm:$0xff]  ;;  %v7433_v12 = vld [vmem:[%s10261_s9 + $0x30] sm:$0xff] }
 0x151   : > { %v1084_v28 = vmax.f32 %v1068_v55, 0.0  ;;  %v1053_v24 = vmul.f32 %v8167_v49, %v8191_v35  ;;  %1477 = vmatpush.bf16.msrb.mxu1 %v7435_v20 }
 0x152   : > { %v1067_v38 = vadd.f32 %v8184_v30, %v1047_v1  ;;  %v912_v9 = vmax.f32 %v880_v15, 0.0  ;;  %v965_v21 = vrot.slane %v913_v48, 7  ;;  %v8395_v15 = vld [vmem:[%s10260_s8] ss:$0 sm:$0xff] }
 0x153   : > { %v1073_v61 = vadd.f32 %v8184_v30, %v1053_v24 }
 0x154   : > { %v1083_v32 = vmax.f32 %v1067_v38, 0.0  ;;  %v972_v25 = vsel %vm969_vm2, %v965_v21, %v966_v23  ;;  %v1014_v26 = vmax.f32 %v912_v9, %v913_v48 }
 0x155   : > { %v1089_v2 = vmax.f32 %v1073_v61, 0.0  ;;  %1478 = vmatpush.bf16.msrb.mxu1 %v7434_v7 }
 0x156   : > { %v1094_v59 = vpack.c.bf16 %v1083_v32, %v1082_v63 }
 0x159   : > { %1479 = vmatpush.bf16.msrb.mxu1 %v7433_v12 }
 0x15a   : > { %1180 = vmatmul.bf16.gmra.mxu2 %v1092_v41  ;;  %v964_v41 = vrot.slane %v911_v29, 7  ;;  %v8333_v29 = vmax.f32 %v1015_v52, %v972_v25 }
 0x15c   : > { %v974_v46 = vsel %vm969_vm2, %v963_v45, %v964_v41  ;;  %v973_v36 = vsel %vm969_vm2, %v964_v41, %v965_v21  ;;  %v1051_v33 = vmul.f32 %v8167_v49, %v8333_v29  ;;  %v916_v41 = vmax.f32 %v884_v34, 0.0 }
 0x15d   : > { %v8313_v11 = vmax.f32 %v1013_v43, %v974_v46  ;;  %v8335_v4 = vmax.f32 %v1014_v26, %v973_v36 }
 0x15e   : > { %v1071_v0 = vadd.f32 %v8184_v30, %v1051_v33  ;;  %v1016_v43 = vmax.f32 %v916_v41, %v917_v3  ;;  %v7432_v3 = vld [vmem:[%s10261_s9 + $0x28] sm:$0xff] }
 0x15f   : > { %v1049_v10 = vmul.f32 %v8167_v49, %v8313_v11  ;;  %v1050_v38 = vmul.f32 %v8167_v49, %v8335_v4  ;;  %1403 = vmatpush.bf16.msrb.mxu0 %v7432_v3 }
 0x160   : > { %v1087_v45 = vmax.f32 %v1071_v0, 0.0  ;;  %v8351_v60 = vmax.f32 %v1016_v43, %v971_v19 }
 0x161   : > { %v1069_v22 = vadd.f32 %v8184_v30, %v1049_v10  ;;  %v1070_v44 = vadd.f32 %v8184_v30, %v1050_v38  ;;  %v8389_v10 = vld [vmem:[%s10259_s7] ss:$0 sm:$0xff] }
 0x162   : > { %v1052_v46 = vmul.f32 %v8167_v49, %v8351_v60  ;;  %v7428_v49 = vld [vmem:[%s10261_s9 + $0x8] sm:$0xff] }
 0x163   : > { %v1086_v32 = vmax.f32 %v1070_v44, 0.0  ;;  %1330 = vmatpush.bf16.msra.mxu3 %v7428_v49  ;;  %1404 = vmatpush.bf16.msrb.mxu0 %v7431_v50 }
 0x164   : > { %v1072_v63 = vadd.f32 %v8184_v30, %v1052_v46 }
 0x165   : > { %v1096_v27 = vpack.c.bf16 %v1087_v45, %v1086_v32 }
 0x167   : > { %1331 = vmatpush.bf16.msra.mxu3 %v7427_v40  ;;  %1405 = vmatpush.bf16.msrb.mxu0 %v7430_v56 }
 0x16a   : > { %1185 = vmatmul.bf16.gmra.mxu2 %v1093_v47  ;;  %v1085_v47 = vmax.f32 %v1069_v22, 0.0 }
 0x16c   : > { %v1095_v1 = vpack.c.bf16 %v1085_v47, %v1084_v28 }
 0x17a   : > { %1190 = vmatmul.bf16.gmra.mxu2 %v1094_v59  ;;  %v1088_v59 = vmax.f32 %v1072_v63, 0.0 }
 0x17c   : > { %v1097_v30 = vpack.c.bf16 %v1089_v2, %v1088_v59 }
 0x18a   : > { %1195 = vmatmul.bf16.gmra.mxu2 %v1095_v1 }
 0x19a   : > { %1200 = vmatmul.bf16.gmra.mxu2 %v1096_v27 }
 0x1aa   : > { %1205 = vmatmul.bf16.gmra.mxu2 %v1097_v30 }
 0x1bd   : > { %v1171_v8 = vpop.f32.mrf.mxu2 }
 0x1be   : > { %v1215_v14 = vmul.f32 %v8389_v10, %v1171_v8 }
 0x1c0   : > { %v1235_v48 = vadd.f32 %v8395_v15, %v1215_v14 }
 0x1c2   : > { %v1251_v23 = vmax.f32 %v1235_v48, 0.0 }
 0x1c5   : > { %v1173_v57 = vpop.f32.mrf.mxu2 }
 0x1c6   : > { %v1216_v54 = vmul.f32 %v8389_v10, %v1173_v57 }
 0x1c8   : > { %v1236_v22 = vadd.f32 %v8395_v15, %v1216_v54 }
 0x1ca   : > { %v1252_v9 = vmax.f32 %v1236_v22, 0.0 }
 0x1cc   : > { %v1267_v55 = vpack.c.bf16 %v1252_v9, %v1251_v23 }
 0x1cd   : > { %v1176_v21 = vpop.f32.mrf.mxu2 }
 0x1ce   : > { %5928 = vmatmul.msk.bf16.vlgmr.msra.gmra.mxu3 %vm1299_vm4, %v1267_v55  ;;  %5954 = vmatmul.msk.bf16.vlgmr.msrb.gmra.mxu0 %vm1299_vm4, %v1267_v55  ;;  %v1217_v52 = vmul.f32 %v8389_v10, %v1176_v21 }
 0x1cf   : > { %5980 = vmatmul.msk.bf16.vlgmr.msrb.gmra.mxu1 %vm1299_vm4, %v1267_v55 }
 0x1d0   : > { %v1237_v25 = vadd.f32 %v8395_v15, %v1217_v52 }
 0x1d2   : > { %v1253_v36 = vmax.f32 %v1237_v25, 0.0 }
 0x1d5   : > { %v1178_v47 = vpop.f32.mrf.mxu2 }
 0x1d6   : > { %v1218_v26 = vmul.f32 %v8389_v10, %v1178_v47 }
 0x1d8   : > { %v1238_v28 = vadd.f32 %v8395_v15, %v1218_v26 }
 0x1da   : > { %v1254_v1 = vmax.f32 %v1238_v28, 0.0 }
 0x1dc   : > { %v1268_v51 = vpack.c.bf16 %v1254_v1, %v1253_v36 }
 0x1dd   : > { %v1181_v33 = vpop.f32.mrf.mxu2 }
 0x1de   : > { %5929 = vmatmul.msk.bf16.gmra.mxu3 %vm1299_vm4, %v1268_v51  ;;  %5955 = vmatmul.msk.bf16.gmra.mxu0 %vm1299_vm4, %v1268_v51  ;;  %v1219_v34 = vmul.f32 %v8389_v10, %v1181_v33 }
 0x1df   : > { %5981 = vmatmul.msk.bf16.gmra.mxu1 %vm1299_vm4, %v1268_v51 }
 0x1e0   : > { %v1239_v0 = vadd.f32 %v8395_v15, %v1219_v34 }
 0x1e2   : > { %v1255_v45 = vmax.f32 %v1239_v0, 0.0 }
 0x1e5   : > { %v1183_v38 = vpop.f32.mrf.mxu2 }
 0x1e6   : > { %v1220_v41 = vmul.f32 %v8389_v10, %v1183_v38 }
 0x1e8   : > { %v1240_v44 = vadd.f32 %v8395_v15, %v1220_v41 }
 0x1ea   : > { %v1256_v43 = vmax.f32 %v1240_v44, 0.0 }
 0x1ec   : > { %v1269_v32 = vpack.c.bf16 %v1256_v43, %v1255_v45 }
 0x1ed   : > { %v1186_v19 = vpop.f32.mrf.mxu2 }
 0x1ee   : > { %5930 = vmatmul.msk.bf16.gmra.mxu3 %vm1299_vm4, %v1269_v32  ;;  %5956 = vmatmul.msk.bf16.gmra.mxu0 %vm1299_vm4, %v1269_v32  ;;  %v1221_v27 = vmul.f32 %v8389_v10, %v1186_v19 }
 0x1ef   : > { %5982 = vmatmul.msk.bf16.gmra.mxu1 %vm1299_vm4, %v1269_v32 }
 0x1f0   : > { %v1241_v46 = vadd.f32 %v8395_v15, %v1221_v27 }
 0x1f2   : > { %v1257_v3 = vmax.f32 %v1241_v46, 0.0 }
 0x1f5   : > { %v1188_v24 = vpop.f32.mrf.mxu2 }
 0x1f6   : > { %v1222_v61 = vmul.f32 %v8389_v10, %v1188_v24 }
 0x1f8   : > { %v1242_v37 = vadd.f32 %v8395_v15, %v1222_v61 }
 0x1fa   : > { %v1258_v20 = vmax.f32 %v1242_v37, 0.0 }
 0x1fc   : > { %v1270_v63 = vpack.c.bf16 %v1258_v20, %v1257_v3 }
 0x1fd   : > { %v1191_v2 = vpop.f32.mrf.mxu2 }
 0x1fe   : > { %5931 = vmatmul.msk.bf16.gmra.mxu3 %vm1299_vm4, %v1270_v63  ;;  %5957 = vmatmul.msk.bf16.gmra.mxu0 %vm1299_vm4, %v1270_v63  ;;  %v1223_v49 = vmul.f32 %v8389_v10, %v1191_v2 }
 0x1ff   : > { %5983 = vmatmul.msk.bf16.gmra.mxu1 %vm1299_vm4, %v1270_v63 }
 0x200   : > { %v1243_v7 = vadd.f32 %v8395_v15, %v1223_v49  ;;  %v7443_v49 = vld [vmem:[%s10299_s6 + $0x78] sm:$0xff] }
 0x201   : > { %1813 = vmatpush.bf16.msrb.mxu3 %v7443_v49 }
 0x202   : > { %v1259_v40 = vmax.f32 %v1243_v7, 0.0  ;;  %v7442_v7 = vld [vmem:[%s10299_s6 + $0x70] sm:$0xff] }
 0x205   : > { %v1193_v50 = vpop.f32.mrf.mxu2  ;;  %1814 = vmatpush.bf16.msrb.mxu3 %v7442_v7 }
 0x206   : > { %v1224_v59 = vmul.f32 %v8389_v10, %v1193_v50 }
 0x208   : > { %v1244_v30 = vadd.f32 %v8395_v15, %v1224_v59 }
 0x20a   : > { %v1260_v56 = vmax.f32 %v1244_v30, 0.0  ;;  %v7441_v30 = vld [vmem:[%s10299_s6 + $0x68] sm:$0xff] }
 0x20b   : > { %1815 = vmatpush.bf16.msrb.mxu3 %v7441_v30 }
 0x20c   : > { %v1271_v12 = vpack.c.bf16 %v1260_v56, %v1259_v40 }
 0x20d   : > { %v1196_v8 = vpop.f32.mrf.mxu2 }
 0x20e   : > { %5932 = vmatmul.msk.bf16.gmra.mxu3 %vm1299_vm4, %v1271_v12  ;;  %5958 = vmatmul.msk.bf16.gmra.mxu0 %vm1299_vm4, %v1271_v12  ;;  %v1225_v14 = vmul.f32 %v8389_v10, %v1196_v8 }
 0x20f   : > { %5984 = vmatmul.msk.bf16.gmra.mxu1 %vm1299_vm4, %v1271_v12  ;;  %v7440_v12 = vld [vmem:[%s10299_s6 + $0x60] sm:$0xff] }
 0x210   : > { %v1245_v48 = vadd.f32 %v8395_v15, %v1225_v14  ;;  %1816 = vmatpush.bf16.msrb.mxu3 %v7440_v12  ;;  %v7439_v14 = vld [vmem:[%s10299_s6 + $0x58] sm:$0xff] }
 0x212   : > { %v1261_v23 = vmax.f32 %v1245_v48, 0.0  ;;  %v7438_v48 = vld [vmem:[%s10299_s6 + $0x50] sm:$0xff] }
 0x214   : > { %1817 = vmatpush.bf16.msrb.mxu3 %v7439_v14 }
 0x215   : > { %v1198_v57 = vpop.f32.mrf.mxu2 }
 0x216   : > { %v1226_v54 = vmul.f32 %v8389_v10, %v1198_v57 }
 0x218   : > { %v1246_v22 = vadd.f32 %v8395_v15, %v1226_v54  ;;  %1818 = vmatpush.bf16.msrb.mxu3 %v7438_v48 }
 0x21a   : > { %v1262_v9 = vmax.f32 %v1246_v22, 0.0  ;;  %v7437_v22 = vld [vmem:[%s10299_s6 + $0x48] sm:$0xff] }
 0x21c   : > { %v1272_v55 = vpack.c.bf16 %v1262_v9, %v1261_v23  ;;  %1819 = vmatpush.bf16.msrb.mxu3 %v7437_v22  ;;  %v7436_v9 = vld [vmem:[%s10299_s6 + $0x40] sm:$0xff] }
 0x21d   : > { %v1201_v21 = vpop.f32.mrf.mxu2 }
 0x21e   : > { %5933 = vmatmul.msk.bf16.gmra.mxu3 %vm1299_vm4, %v1272_v55  ;;  %5959 = vmatmul.msk.bf16.gmra.mxu0 %vm1299_vm4, %v1272_v55  ;;  %v1227_v52 = vmul.f32 %v8389_v10, %v1201_v21 }
 0x21f   : > { %5985 = vmatmul.msk.bf16.gmra.mxu1 %vm1299_vm4, %v1272_v55 }
 0x220   : > { %v1247_v25 = vadd.f32 %v8395_v15, %v1227_v52  ;;  %1820 = vmatpush.bf16.msrb.mxu3 %v7436_v9 }
 0x222   : > { %v1263_v36 = vmax.f32 %v1247_v25, 0.0 }
 0x225   : > { %v1203_v47 = vpop.f32.mrf.mxu2 }
 0x226   : > { %v1228_v26 = vmul.f32 %v8389_v10, %v1203_v47 }
 0x228   : > { %v1248_v28 = vadd.f32 %v8395_v15, %v1228_v26 }
 0x22a   : > { %v1264_v1 = vmax.f32 %v1248_v28, 0.0 }
 0x22c   : > { %v1273_v51 = vpack.c.bf16 %v1264_v1, %v1263_v36 }
 0x22d   : > { %v1206_v33 = vpop.f32.mrf.mxu2 }
 0x22e   : > { %5934 = vmatmul.msk.bf16.gmra.mxu3 %vm1299_vm4, %v1273_v51  ;;  %5960 = vmatmul.msk.bf16.gmra.mxu0 %vm1299_vm4, %v1273_v51  ;;  %v1229_v34 = vmul.f32 %v8389_v10, %v1206_v33 }
 0x22f   : > { %5986 = vmatmul.msk.bf16.gmra.mxu1 %vm1299_vm4, %v1273_v51 }
 0x230   : > { %v1249_v0 = vadd.f32 %v8395_v15, %v1229_v34 }
 0x232   : > { %v1265_v45 = vmax.f32 %v1249_v0, 0.0 }
 0x235   : > { %v1208_v38 = vpop.f32.mrf.mxu2 }
 0x236   : > { %v1230_v41 = vmul.f32 %v8389_v10, %v1208_v38 }
 0x238   : > { %v1250_v44 = vadd.f32 %v8395_v15, %v1230_v41 }
 0x23a   : > { %v1266_v43 = vmax.f32 %v1250_v44, 0.0 }
 0x23c   : > { %v1274_v32 = vpack.c.bf16 %v1266_v43, %v1265_v45  ;;  %v8527_v45 = vld [vmem:[%s10303_s3 + $0x1] ss:$0 sm:$0xff] }
 0x23e   : > { %5935 = vmatmul.msk.bf16.gmra.mxu3 %vm1299_vm4, %v1274_v32  ;;  %5961 = vmatmul.msk.bf16.gmra.mxu0 %vm1299_vm4, %v1274_v32 }
 0x23f   : > { %5987 = vmatmul.msk.bf16.gmra.mxu1 %vm1299_vm4, %v1274_v32 }
 0x24b   : > { %v1407_v63 = vpop.f32.mrf.mxu0 }
 0x24c   : > { %v8468_v20 = vpop.f32.mrf.mxu1 }
 0x251   : > { %v1333_v19 = vpop.f32.mrf.mxu3 }
 0x252   : > { %v1521_v25 = vrot.slane %v1333_v19, 7  ;;  %v1634_v19 = vadd.f32 %v1407_v63, %v8193_v39 }
 0x253   : > { %v1409_v40 = vpop.f32.mrf.mxu0 }
 0x254   : > { %v1483_v50 = vpop.f32.mrf.mxu1  ;;  %v1635_v51 = vadd.f32 %v1409_v40, %v8162_v13 }
 0x255   : > { %v1586_v34 = vrot.slane %v1483_v50, 1  ;;  %v1585_v50 = vrot.slane %v8468_v20, 1 }
 0x257   : > { %v1616_v12 = vsel %vm1601_vm5, %v1585_v50, %v1586_v34 }
 0x259   : > { %v8452_v27 = vpop.f32.mrf.mxu3 }
 0x25a   : > { %v1522_v47 = vrot.slane %v8452_v27, 7 }
 0x25b   : > { %v1412_v57 = vpop.f32.mrf.mxu0 }
 0x25c   : > { %v8483_v56 = vpop.f32.mrf.mxu1  ;;  %v1551_v36 = vsel %vm969_vm2, %v1521_v25, %v1522_v47 }
 0x25d   : > { %v1587_v1 = vrot.slane %v8483_v56, 1  ;;  %v1651_v38 = vadd.f32 %v1635_v51, %v1551_v36  ;;  %v8550_v56 = vld [vmem:[%s10304_s5 + $0x1] ss:$0 sm:$0xff] }
 0x25f   : > { %v1615_v0 = vsel %vm1601_vm5, %v1586_v34, %v1587_v1 }
 0x260   : > { %v8522_v44 = vadd.f32 %v1651_v38, %v1615_v0 }
 0x261   : > { %v8454_v24 = vpop.f32.mrf.mxu3 }
 0x262   : > { %v1688_v40 = vmul.f32 %v8527_v45, %v8522_v44 }
 0x263   : > { %v1414_v55 = vpop.f32.mrf.mxu0 }
 0x264   : > { %v1488_v54 = vpop.f32.mrf.mxu1  ;;  %v1637_v9 = vadd.f32 %v1414_v55, %v8209_v17  ;;  %v1709_v36 = vadd.f32 %v8550_v56, %v1688_v40 }
 0x265   : > { %v1588_v34 = vrot.slane %v1488_v54, 1 }
 0x266   : > { %v1725_v55 = vmax.f32 %v1709_v36, 0.0 }
 0x269   : > { %v8456_v46 = vpop.f32.mrf.mxu3 }
 0x26a   : > { %v1524_v7 = vrot.slane %v8456_v46, 7  ;;  %v1523_v46 = vrot.slane %v8454_v24, 7  ;;  %v1636_v24 = vadd.f32 %v1412_v57, %v8212_v18 }
 0x26b   : > { %v8509_v26 = vpop.f32.mrf.mxu0 }
 0x26c   : > { %v8506_v52 = vpop.f32.mrf.mxu1  ;;  %v1549_v48 = vsel %vm969_vm2, %v1523_v46, %v1524_v7  ;;  %v1550_v51 = vsel %vm969_vm2, %v1522_v47, %v1523_v46 }
 0x26d   : > { %v1589_v22 = vrot.slane %v8506_v52, 1  ;;  %v1653_v38 = vadd.f32 %v1637_v9, %v1549_v48 }
 0x271   : > { %v8458_v61 = vpop.f32.mrf.mxu3 }
 0x273   : > { %v1419_v32 = vpop.f32.mrf.mxu0 }
 0x274   : > { %v8517_v33 = vpop.f32.mrf.mxu1  ;;  %v1639_v9 = vadd.f32 %v1419_v32, %v8235_v6 }
 0x279   : > { %v8460_v10 = vpop.f32.mrf.mxu3 }
 0x27a   : > { %v1526_v57 = vrot.slane %v8460_v10, 7 }
 0x27b   : > { %v1422_v52 = vpop.f32.mrf.mxu0 }
 0x27c   : > { %v8545_v39 = vpop.f32.mrf.mxu1 }
 0x27d   : > { %v1591_v48 = vrot.slane %v8545_v39, 1 }
 0x281   : > { %v8462_v15 = vpop.f32.mrf.mxu3 }
 0x289   : > { %v8464_v37 = vpop.f32.mrf.mxu3 }
 0x291   : > { %v8466_v3 = vpop.f32.mrf.mxu3 }
 0x299   : > { %v8470_v2 = vpop.f32.mrf.mxu3 }
 0x2a1   : > { %v8478_v59 = vpop.f32.mrf.mxu3 }
 0x2a9   : > { %v8488_v8 = vpop.f32.mrf.mxu3 }
 0x2b1   : > { %v8499_v23 = vpop.f32.mrf.mxu3 }
 0x2b9   : > { %v8504_v21 = vpop.f32.mrf.mxu3 }
 0x2c1   : > { %v8511_v28 = vpop.f32.mrf.mxu3 }
 0x2c2   : > { %v1535_v43 = vrot.slane %v8511_v28, 7 }
 0x2c9   : > { %v1370_v41 = vpop.f32.mrf.mxu3 }
 0x2ca   : > { %v1536_v13 = vrot.slane %v1370_v41, 7  ;;  %v1613_v41 = vsel %vm1601_vm5, %v1588_v34, %v1589_v22 }
 0x2cc   : > { %v8535_v27 = vsel %vm969_vm2, %v1535_v43, %v1536_v13  ;;  %v1552_v49 = vsel %vm969_vm2, %v1536_v13, %v1521_v25  ;;  %v1652_v13 = vadd.f32 %v1636_v24, %v1550_v51  ;;  %v1590_v51 = vrot.slane %v8517_v33, 1 }
 0x2cd   : > { %v1553_v30 = vsel %vm937_vm3, 0.0, %v1552_v49  ;;  %v8574_v49 = vadd.f32 %v1653_v38, %v1613_v41 }
 0x2ce   : > { %v1650_v63 = vadd.f32 %v1634_v19, %v1553_v30  ;;  %v1614_v19 = vsel %vm1601_vm5, %v1587_v1, %v1588_v34  ;;  %v1498_v30 = vpop.f32.mrf.mxu1  ;;  %v1611_v38 = vsel %vm1601_vm5, %v1590_v51, %v1591_v48  ;;  %v1612_v6 = vsel %vm1601_vm5, %v1589_v22, %v1590_v51 }
 0x2cf   : > { %v8576_v54 = vadd.f32 %v1652_v13, %v1614_v19  ;;  %v1690_v18 = vmul.f32 %v8527_v45, %v8574_v49 }
 0x2d0   : > { %v8557_v14 = vadd.f32 %v1650_v63, %v1616_v12  ;;  %v1525_v63 = vrot.slane %v8458_v61, 7  ;;  %v1424_v12 = vpop.f32.mrf.mxu0  ;;  %v1638_v61 = vadd.f32 %v8509_v26, %v8238_v58  ;;  %v1528_v26 = vrot.slane %v8464_v37, 7 }
 0x2d1   : > { %v1689_v40 = vmul.f32 %v8527_v45, %v8576_v54  ;;  %v1711_v1 = vadd.f32 %v8550_v56, %v1690_v18  ;;  %v1641_v18 = vadd.f32 %v1424_v12, %v8261_v42 }
 0x2d2   : > { %v1687_v25 = vmul.f32 %v8527_v45, %v8557_v14  ;;  %v1547_v46 = vsel %vm969_vm2, %v1525_v63, %v1526_v57  ;;  %v1548_v10 = vsel %vm969_vm2, %v1524_v7, %v1525_v63 }
 0x2d3   : > { %v1710_v36 = vadd.f32 %v8550_v56, %v1689_v40  ;;  %v1655_v34 = vadd.f32 %v1639_v9, %v1547_v46  ;;  %v1727_v24 = vmax.f32 %v1711_v1, 0.0  ;;  %v1592_v1 = vrot.slane %v1498_v30, 1 }
 0x2d4   : > { %v1708_v0 = vadd.f32 %v8550_v56, %v1687_v25  ;;  %v1640_v46 = vadd.f32 %v1422_v52, %v8264_v62  ;;  %v1530_v52 = vrot.slane %v8470_v2, 7 }
 0x2d5   : > { %v1726_v39 = vmax.f32 %v1710_v36, 0.0  ;;  %v8599_v32 = vadd.f32 %v1655_v34, %v1611_v38  ;;  %v1610_v42 = vsel %vm1601_vm5, %v1591_v48, %v1592_v1 }
 0x2d6   : > { %v1724_v17 = vmax.f32 %v1708_v0, 0.0  ;;  %v1501_v25 = vpop.f32.mrf.mxu1  ;;  %v1654_v0 = vadd.f32 %v1638_v61, %v1548_v10 }
 0x2d7   : > { %v1741_v41 = vpack.c.bf16 %v1727_v24, %v1726_v39  ;;  %v1692_v58 = vmul.f32 %v8527_v45, %v8599_v32  ;;  %v1529_v24 = vrot.slane %v8466_v3, 7 }
 0x2d8   : > { %v1740_v47 = vpack.c.bf16 %v1725_v55, %v1724_v17  ;;  %v1427_v13 = vpop.f32.mrf.mxu0  ;;  %v8601_v7 = vadd.f32 %v1654_v0, %v1612_v6  ;;  %v1527_v55 = vrot.slane %v8462_v15, 7 }
 0x2d9   : > { %v1713_v22 = vadd.f32 %v8550_v56, %v1692_v58  ;;  %v1543_v0 = vsel %vm969_vm2, %v1529_v24, %v1530_v52  ;;  %v1544_v2 = vsel %vm969_vm2, %v1528_v26, %v1529_v24 }
 0x2da   : > { %1821 = vmatmul.bf16.vlgmr.msrb.gmra.mxu3 %v1740_v47  ;;  %v1691_v17 = vmul.f32 %v8527_v45, %v8601_v7  ;;  %v1545_v19 = vsel %vm969_vm2, %v1527_v55, %v1528_v26  ;;  %v1593_v47 = vrot.slane %v1501_v25, 1  ;;  %v1546_v63 = vsel %vm969_vm2, %v1526_v57, %v1527_v55 }
 0x2db   : > { %v1657_v9 = vadd.f32 %v1641_v18, %v1545_v19  ;;  %v1729_v36 = vmax.f32 %v1713_v22, 0.0  ;;  %v1656_v10 = vadd.f32 %v1640_v46, %v1546_v63  ;;  %v1531_v46 = vrot.slane %v8478_v59, 7 }
 0x2dc   : > { %v1712_v40 = vadd.f32 %v8550_v56, %v1691_v17  ;;  %v1609_v15 = vsel %vm1601_vm5, %v1592_v1, %v1593_v47  ;;  %v1642_v17 = vadd.f32 %v1427_v13, %v8290_v5  ;;  %v1532_v13 = vrot.slane %v8488_v8, 7 }
 0x2dd   : > { %v8621_v12 = vadd.f32 %v1657_v9, %v1609_v15  ;;  %v8623_v34 = vadd.f32 %v1656_v10, %v1610_v42 }
 0x2de   : > { %v1503_v33 = vpop.f32.mrf.mxu1  ;;  %v1728_v61 = vmax.f32 %v1712_v40, 0.0  ;;  %v1658_v19 = vadd.f32 %v1642_v17, %v1544_v2  ;;  %v1541_v9 = vsel %vm969_vm2, %v1531_v46, %v1532_v13 }
 0x2df   : > { %v1694_v62 = vmul.f32 %v8527_v45, %v8621_v12  ;;  %v1693_v57 = vmul.f32 %v8527_v45, %v8623_v34  ;;  %v1594_v58 = vrot.slane %v1503_v33, 1 }
 0x2e0   : > { %v1429_v37 = vpop.f32.mrf.mxu0  ;;  %v1742_v25 = vpack.c.bf16 %v1729_v36, %v1728_v61  ;;  %v1542_v61 = vsel %vm969_vm2, %v1530_v52, %v1531_v46 }
 0x2e1   : > { %v1715_v48 = vadd.f32 %v8550_v56, %v1694_v62  ;;  %v1643_v6 = vadd.f32 %v1429_v37, %v8287_v53  ;;  %v1608_v40 = vsel %vm1601_vm5, %v1593_v47, %v1594_v58 }
 0x2e2   : > { %v8645_v37 = vadd.f32 %v1658_v19, %v1608_v40 }
 0x2e3   : > { %v1659_v55 = vadd.f32 %v1643_v6, %v1543_v0  ;;  %v1731_v22 = vmax.f32 %v1715_v48, 0.0 }
 0x2e4   : > { %v1695_v33 = vmul.f32 %v8527_v45, %v8645_v37 }
 0x2e6   : > { %v1506_v51 = vpop.f32.mrf.mxu1 }
 0x2e7   : > { %v1595_v39 = vrot.slane %v1506_v51, 1  ;;  %v1716_v51 = vadd.f32 %v8550_v56, %v1695_v33 }
 0x2e8   : > { %v1432_v30 = vpop.f32.mrf.mxu0 }
 0x2e9   : > { %v1607_v3 = vsel %vm1601_vm5, %v1594_v58, %v1595_v39  ;;  %v1644_v42 = vadd.f32 %v1432_v30, %v8316_v16  ;;  %v1732_v48 = vmax.f32 %v1716_v51, 0.0  ;;  %v1534_v30 = vrot.slane %v8504_v21, 7 }
 0x2ea   : > { %1826 = vmatmul.bf16.gmra.mxu3 %v1741_v41  ;;  %v1714_v41 = vadd.f32 %v8550_v56, %v1693_v57  ;;  %v8643_v53 = vadd.f32 %v1659_v55, %v1607_v3  ;;  %v1533_v58 = vrot.slane %v8499_v23, 7 }
 0x2eb   : > { %v1660_v24 = vadd.f32 %v1644_v42, %v1542_v61 }
 0x2ec   : > { %v1730_v18 = vmax.f32 %v1714_v41, 0.0  ;;  %v1696_v5 = vmul.f32 %v8527_v45, %v8643_v53  ;;  %v1539_v17 = vsel %vm969_vm2, %v1533_v58, %v1534_v30  ;;  %v1540_v19 = vsel %vm969_vm2, %v1532_v13, %v1533_v58  ;;  %v7451_v58 = vld [vmem:[%s10261_s9 + $0x80] sm:$0xff] }
 0x2ee   : > { %v1508_v38 = vpop.f32.mrf.mxu1  ;;  %v1743_v1 = vpack.c.bf16 %v1731_v22, %v1730_v18  ;;  %v1717_v47 = vadd.f32 %v8550_v56, %v1696_v5 }
 0x2ef   : > { %v1596_v8 = vrot.slane %v1508_v38, 1 }
 0x2f0   : > { %v1434_v63 = vpop.f32.mrf.mxu0  ;;  %v1733_v59 = vmax.f32 %v1717_v47, 0.0 }
 0x2f1   : > { %v1645_v10 = vadd.f32 %v1434_v63, %v8313_v11  ;;  %v1606_v0 = vsel %vm1601_vm5, %v1595_v39, %v1596_v8 }
 0x2f2   : > { %v1744_v6 = vpack.c.bf16 %v1733_v59, %v1732_v48  ;;  %v8667_v41 = vadd.f32 %v1660_v24, %v1606_v0 }
 0x2f4   : > { %v1697_v2 = vmul.f32 %v8527_v45, %v8667_v41 }
 0x2f6   : > { %v1511_v26 = vpop.f32.mrf.mxu1  ;;  %v1718_v3 = vadd.f32 %v8550_v56, %v1697_v2 }
 0x2f7   : > { %v1597_v15 = vrot.slane %v1511_v26, 1 }
 0x2f8   : > { %v1437_v36 = vpop.f32.mrf.mxu0  ;;  %v1734_v5 = vmax.f32 %v1718_v3, 0.0 }
 0x2f9   : > { %v1605_v57 = vsel %vm1601_vm5, %v1596_v8, %v1597_v15  ;;  %v1646_v18 = vadd.f32 %v1437_v36, %v8335_v4  ;;  %v7446_v4 = vld [vmem:[%s10261_s9 + $0x58] sm:$0xff] }
 0x2fa   : > { %1831 = vmatmul.bf16.gmra.mxu3 %v1742_v25  ;;  %v1661_v25 = vadd.f32 %v1645_v10, %v1541_v9  ;;  %1982 = vmatpush.bf16.msrb.mxu2 %v7446_v4 }
 0x2fb   : > { %v1662_v26 = vadd.f32 %v1646_v18, %v1540_v19  ;;  %v8756_v19 = vld [vmem:[%s10259_s7 + $0x1] ss:$0 sm:$0xff] }
 0x2fc   : > { %v8665_v11 = vadd.f32 %v1661_v25, %v1605_v57  ;;  %v1538_v25 = vsel %vm969_vm2, %v1534_v30, %v1535_v43  ;;  %v7452_v30 = vld [vmem:[%s10261_s9 + $0x88] sm:$0xff]  ;;  %v8762_v18 = vld [vmem:[%s10260_s8 + $0x1] ss:$0 sm:$0xff] }
 0x2fd   : > { %2130 = vmatpush.bf16.msra.mxu1 %v7452_v30 }
 0x2fe   : > { %v1513_v62 = vpop.f32.mrf.mxu1  ;;  %v1698_v16 = vmul.f32 %v8527_v45, %v8665_v11 }
 0x2ff   : > { %v1598_v21 = vrot.slane %v1513_v62, 1 }
 0x300   : > { %v1439_v52 = vpop.f32.mrf.mxu0  ;;  %v1719_v39 = vadd.f32 %v8550_v56, %v1698_v16  ;;  %v7449_v16 = vld [vmem:[%s10261_s9 + $0x70] sm:$0xff] }
 0x301   : > { %v1647_v22 = vadd.f32 %v1439_v52, %v8333_v29  ;;  %v1604_v33 = vsel %vm1601_vm5, %v1597_v15, %v1598_v21  ;;  %v8699_v15 = vadd.s32 120, %v8137_v31  ;;  %2056 = vmatpush.bf16.msra.mxu0 %v7449_v16  ;;  %2131 = vmatpush.bf16.msra.mxu1 %v7451_v58 }
 0x302   : > { %v1735_v63 = vmax.f32 %v1719_v39, 0.0  ;;  %v8689_v47 = vadd.f32 %v1662_v26, %v1604_v33 }
 0x303   : > { %v1663_v40 = vadd.f32 %v1647_v22, %v1539_v17  ;;  %vm1584_vm6 = vcmp.ge.s32.totalorder %v8699_v15, 127  ;;  %v7444_v17 = vld [vmem:[%s10261_s9 + $0x48] sm:$0xff]  ;;  %v7450_v22 = vld [vmem:[%s10261_s9 + $0x78] sm:$0xff] }
 0x304   : > { %v1745_v46 = vpack.c.bf16 %v1735_v63, %v1734_v5  ;;  %v1699_v36 = vmul.f32 %v8527_v45, %v8689_v47 }
 0x305   : > { %2132 = vmatpush.bf16.msra.mxu1 %v7450_v22 }
 0x306   : > { %v1516_v38 = vpop.f32.mrf.mxu1  ;;  %v1720_v42 = vadd.f32 %v8550_v56, %v1699_v36 }
 0x307   : > { %v1599_v55 = vrot.slane %v1516_v38, 1 }
 0x308   : > { %v1736_v48 = vmax.f32 %v1720_v42, 0.0 }
 0x309   : > { %v1603_v23 = vsel %vm1601_vm5, %v1598_v21, %v1599_v55 }
 0x30a   : > { %1836 = vmatmul.bf16.gmra.mxu3 %v1743_v1  ;;  %v1442_v1 = vpop.f32.mrf.mxu0  ;;  %v8687_v29 = vadd.f32 %v1663_v40, %v1603_v23 }
 0x30b   : > { %v1648_v62 = vadd.f32 %v1442_v1, %v8351_v60 }
 0x30c   : > { %v1700_v13 = vmul.f32 %v8527_v45, %v8687_v29 }
 0x30e   : > { %v1518_v9 = vpop.f32.mrf.mxu1  ;;  %v1721_v61 = vadd.f32 %v8550_v56, %v1700_v13 }
 0x30f   : > { %v1600_v51 = vrot.slane %v1518_v9, 1 }
 0x310   : > { %v1737_v24 = vmax.f32 %v1721_v61, 0.0 }
 0x311   : > { %v1617_v59 = vsel %vm1601_vm5, %v1600_v51, %v1585_v50  ;;  %v1602_v28 = vsel %vm1601_vm5, %v1599_v55, %v1600_v51  ;;  %v7447_v55 = vld [vmem:[%s10261_s9 + $0x60] sm:$0xff] }
 0x312   : > { %v1444_v10 = vpop.f32.mrf.mxu0  ;;  %v1633_v43 = vsel %vm1584_vm6, 0.0, %v1617_v59 }
 0x313   : > { %v1649_v8 = vadd.f32 %v1444_v10, %v8191_v35  ;;  %v1664_v35 = vadd.f32 %v1648_v62, %v1538_v25 }
 0x315   : > { %v1665_v57 = vadd.f32 %v1649_v8, %v8535_v27  ;;  %v8721_v60 = vadd.f32 %v1664_v35, %v1602_v28 }
 0x317   : > { %v8719_v0 = vadd.f32 %v1665_v57, %v1633_v43  ;;  %v1701_v27 = vmul.f32 %v8527_v45, %v8721_v60 }
 0x319   : > { %v1702_v20 = vmul.f32 %v8527_v45, %v8719_v0  ;;  %v1722_v52 = vadd.f32 %v8550_v56, %v1701_v27  ;;  %v7445_v45 = vld [vmem:[%s10261_s9 + $0x50] sm:$0xff] }
 0x31a   : > { %1841 = vmatmul.bf16.gmra.mxu3 %v1744_v6  ;;  %v1746_v6 = vpack.c.bf16 %v1737_v24, %v1736_v48  ;;  %1983 = vmatpush.bf16.msrb.mxu2 %v7445_v45 }
 0x31b   : > { %v1723_v50 = vadd.f32 %v8550_v56, %v1702_v20  ;;  %v1738_v2 = vmax.f32 %v1722_v52, 0.0  ;;  %v7448_v56 = vld [vmem:[%s10261_s9 + $0x68] sm:$0xff] }
 0x31c   : > { %2057 = vmatpush.bf16.msra.mxu0 %v7448_v56 }
 0x31d   : > { %v1739_v38 = vmax.f32 %v1723_v50, 0.0 }
 0x31e   : > { %1984 = vmatpush.bf16.msrb.mxu2 %v7444_v17 }
 0x31f   : > { %v1747_v39 = vpack.c.bf16 %v1739_v38, %v1738_v2 }
 0x320   : > { %2058 = vmatpush.bf16.msra.mxu0 %v7447_v55 }
 0x32a   : > { %1846 = vmatmul.bf16.gmra.mxu3 %v1745_v46 }
 0x33a   : > { %1851 = vmatmul.bf16.gmra.mxu3 %v1746_v6 }
 0x34a   : > { %1856 = vmatmul.bf16.gmra.mxu3 %v1747_v39 }
 0x35d   : > { %v1822_v3 = vpop.f32.mrf.mxu3 }
 0x35e   : > { %v1867_v21 = vmul.f32 %v8756_v19, %v1822_v3 }
 0x360   : > { %v1888_v63 = vadd.f32 %v8762_v18, %v1867_v21 }
 0x362   : > { %v1904_v26 = vmax.f32 %v1888_v63, 0.0 }
 0x365   : > { %v1824_v40 = vpop.f32.mrf.mxu3 }
 0x366   : > { %v1868_v1 = vmul.f32 %v8756_v19, %v1824_v40 }
 0x368   : > { %v1889_v23 = vadd.f32 %v8762_v18, %v1868_v1 }
 0x36a   : > { %v1905_v5 = vmax.f32 %v1889_v23, 0.0 }
 0x36c   : > { %v1920_v33 = vpack.c.bf16 %v1905_v5, %v1904_v26 }
 0x36d   : > { %v1827_v46 = vpop.f32.mrf.mxu3 }
 0x36e   : > { %6058 = vmatmul.msk.bf16.vlgmr.msrb.gmra.mxu2 %vm1299_vm4, %v1920_v33  ;;  %6084 = vmatmul.msk.bf16.vlgmr.msra.gmra.mxu0 %vm1299_vm4, %v1920_v33  ;;  %v1869_v4 = vmul.f32 %v8756_v19, %v1827_v46 }
 0x36f   : > { %6110 = vmatmul.msk.bf16.vlgmr.msra.gmra.mxu1 %vm1299_vm4, %v1920_v33 }
 0x370   : > { %v1890_v9 = vadd.f32 %v8762_v18, %v1869_v4 }
 0x372   : > { %v1906_v51 = vmax.f32 %v1890_v9, 0.0 }
 0x375   : > { %v1829_v13 = vpop.f32.mrf.mxu3 }
 0x376   : > { %v1870_v36 = vmul.f32 %v8756_v19, %v1829_v13 }
 0x378   : > { %v1891_v10 = vadd.f32 %v8762_v18, %v1870_v36 }
 0x37a   : > { %v1907_v61 = vmax.f32 %v1891_v10, 0.0 }
 0x37c   : > { %v1921_v8 = vpack.c.bf16 %v1907_v61, %v1906_v51 }
 0x37d   : > { %v1832_v42 = vpop.f32.mrf.mxu3 }
 0x37e   : > { %6059 = vmatmul.msk.bf16.gmra.mxu2 %vm1299_vm4, %v1921_v8  ;;  %6085 = vmatmul.msk.bf16.gmra.mxu0 %vm1299_vm4, %v1921_v8  ;;  %v1871_v25 = vmul.f32 %v8756_v19, %v1832_v42 }
 0x37f   : > { %6111 = vmatmul.msk.bf16.gmra.mxu1 %vm1299_vm4, %v1921_v8 }
 0x380   : > { %v1892_v59 = vadd.f32 %v8762_v18, %v1871_v25 }
 0x382   : > { %v1908_v35 = vmax.f32 %v1892_v59, 0.0 }
 0x385   : > { %v1834_v62 = vpop.f32.mrf.mxu3 }
 0x386   : > { %v1872_v57 = vmul.f32 %v8756_v19, %v1834_v62 }
 0x388   : > { %v1893_v24 = vadd.f32 %v8762_v18, %v1872_v57 }
 0x38a   : > { %v1909_v48 = vmax.f32 %v1893_v24, 0.0 }
 0x38c   : > { %v1922_v28 = vpack.c.bf16 %v1909_v48, %v1908_v35 }
 0x38d   : > { %v1837_v43 = vpop.f32.mrf.mxu3 }
 0x38e   : > { %6060 = vmatmul.msk.bf16.gmra.mxu2 %vm1299_vm4, %v1922_v28  ;;  %6086 = vmatmul.msk.bf16.gmra.mxu0 %vm1299_vm4, %v1922_v28  ;;  %v1873_v6 = vmul.f32 %v8756_v19, %v1837_v43 }
 0x38f   : > { %6112 = vmatmul.msk.bf16.gmra.mxu1 %vm1299_vm4, %v1922_v28 }
 0x390   : > { %v1894_v27 = vadd.f32 %v8762_v18, %v1873_v6 }
 0x392   : > { %v1910_v16 = vmax.f32 %v1894_v27, 0.0 }
 0x395   : > { %v1839_v20 = vpop.f32.mrf.mxu3 }
 0x396   : > { %v1874_v50 = vmul.f32 %v8756_v19, %v1839_v20 }
 0x398   : > { %v1895_v52 = vadd.f32 %v8762_v18, %v1874_v50 }
 0x39a   : > { %v1911_v30 = vmax.f32 %v1895_v52, 0.0 }
 0x39c   : > { %v1923_v38 = vpack.c.bf16 %v1911_v30, %v1910_v16 }
 0x39d   : > { %v1842_v2 = vpop.f32.mrf.mxu3 }
 0x39e   : > { %6061 = vmatmul.msk.bf16.gmra.mxu2 %vm1299_vm4, %v1923_v38  ;;  %6087 = vmatmul.msk.bf16.gmra.mxu0 %vm1299_vm4, %v1923_v38  ;;  %v1875_v45 = vmul.f32 %v8756_v19, %v1842_v2 }
 0x39f   : > { %6113 = vmatmul.msk.bf16.gmra.mxu1 %vm1299_vm4, %v1923_v38 }
 0x3a0   : > { %v1896_v58 = vadd.f32 %v8762_v18, %v1875_v45 }
 0x3a2   : > { %v1912_v55 = vmax.f32 %v1896_v58, 0.0 }
 0x3a5   : > { %v1844_v56 = vpop.f32.mrf.mxu3 }
 0x3a6   : > { %v1876_v39 = vmul.f32 %v8756_v19, %v1844_v56  ;;  %v7460_v56 = vld [vmem:[%s10299_s6 + $0xb8] sm:$0xff] }
 0x3a7   : > { %2449 = vmatpush.bf16.msra.mxu3 %v7460_v56 }
 0x3a8   : > { %v1897_v17 = vadd.f32 %v8762_v18, %v1876_v39  ;;  %v7459_v39 = vld [vmem:[%s10299_s6 + $0xb0] sm:$0xff] }
 0x3aa   : > { %v1913_v22 = vmax.f32 %v1897_v17, 0.0 }
 0x3ab   : > { %2450 = vmatpush.bf16.msra.mxu3 %v7459_v39 }
 0x3ac   : > { %v1924_v3 = vpack.c.bf16 %v1913_v22, %v1912_v55  ;;  %v7458_v55 = vld [vmem:[%s10299_s6 + $0xa8] sm:$0xff] }
 0x3ad   : > { %v1847_v21 = vpop.f32.mrf.mxu3 }
 0x3ae   : > { %6062 = vmatmul.msk.bf16.gmra.mxu2 %vm1299_vm4, %v1924_v3  ;;  %6088 = vmatmul.msk.bf16.gmra.mxu0 %vm1299_vm4, %v1924_v3  ;;  %v1877_v40 = vmul.f32 %v8756_v19, %v1847_v21  ;;  %v7457_v21 = vld [vmem:[%s10299_s6 + $0xa0] sm:$0xff] }
 0x3af   : > { %6114 = vmatmul.msk.bf16.gmra.mxu1 %vm1299_vm4, %v1924_v3  ;;  %2451 = vmatpush.bf16.msra.mxu3 %v7458_v55 }
 0x3b0   : > { %v1898_v1 = vadd.f32 %v8762_v18, %v1877_v40 }
 0x3b2   : > { %v1914_v5 = vmax.f32 %v1898_v1, 0.0 }
 0x3b3   : > { %2452 = vmatpush.bf16.msra.mxu3 %v7457_v21 }
 0x3b5   : > { %v1849_v63 = vpop.f32.mrf.mxu3 }
 0x3b6   : > { %v1878_v23 = vmul.f32 %v8756_v19, %v1849_v63  ;;  %v7456_v63 = vld [vmem:[%s10299_s6 + $0x98] sm:$0xff] }
 0x3b7   : > { %2453 = vmatpush.bf16.msra.mxu3 %v7456_v63 }
 0x3b8   : > { %v1899_v26 = vadd.f32 %v8762_v18, %v1878_v23  ;;  %v7455_v23 = vld [vmem:[%s10299_s6 + $0x90] sm:$0xff] }
 0x3ba   : > { %v1915_v33 = vmax.f32 %v1899_v26, 0.0 }
 0x3bb   : > { %2454 = vmatpush.bf16.msra.mxu3 %v7455_v23 }
 0x3bc   : > { %v1925_v46 = vpack.c.bf16 %v1915_v33, %v1914_v5  ;;  %v7454_v33 = vld [vmem:[%s10299_s6 + $0x88] sm:$0xff] }
 0x3bd   : > { %v1852_v4 = vpop.f32.mrf.mxu3 }
 0x3be   : > { %6063 = vmatmul.msk.bf16.gmra.mxu2 %vm1299_vm4, %v1925_v46  ;;  %6089 = vmatmul.msk.bf16.gmra.mxu0 %vm1299_vm4, %v1925_v46  ;;  %v1879_v13 = vmul.f32 %v8756_v19, %v1852_v4 }
 0x3bf   : > { %6115 = vmatmul.msk.bf16.gmra.mxu1 %vm1299_vm4, %v1925_v46  ;;  %2455 = vmatpush.bf16.msra.mxu3 %v7454_v33  ;;  %v7453_v46 = vld [vmem:[%s10299_s6 + $0x80] sm:$0xff] }
 0x3c0   : > { %v1900_v36 = vadd.f32 %v8762_v18, %v1879_v13 }
 0x3c2   : > { %v1916_v61 = vmax.f32 %v1900_v36, 0.0 }
 0x3c3   : > { %2456 = vmatpush.bf16.msra.mxu3 %v7453_v46 }
 0x3c5   : > { %v1854_v9 = vpop.f32.mrf.mxu3 }
 0x3c6   : > { %v1880_v10 = vmul.f32 %v8756_v19, %v1854_v9 }
 0x3c8   : > { %v1901_v51 = vadd.f32 %v8762_v18, %v1880_v10 }
 0x3ca   : > { %v1917_v8 = vmax.f32 %v1901_v51, 0.0 }
 0x3cc   : > { %v1926_v42 = vpack.c.bf16 %v1917_v8, %v1916_v61 }
 0x3cd   : > { %v1857_v25 = vpop.f32.mrf.mxu3 }
 0x3ce   : > { %6064 = vmatmul.msk.bf16.gmra.mxu2 %vm1299_vm4, %v1926_v42  ;;  %6090 = vmatmul.msk.bf16.gmra.mxu0 %vm1299_vm4, %v1926_v42  ;;  %v1881_v62 = vmul.f32 %v8756_v19, %v1857_v25 }
 0x3cf   : > { %6116 = vmatmul.msk.bf16.gmra.mxu1 %vm1299_vm4, %v1926_v42 }
 0x3d0   : > { %v1902_v57 = vadd.f32 %v8762_v18, %v1881_v62 }
 0x3d2   : > { %v1918_v48 = vmax.f32 %v1902_v57, 0.0 }
 0x3d5   : > { %v1859_v59 = vpop.f32.mrf.mxu3 }
 0x3d6   : > { %v1882_v24 = vmul.f32 %v8756_v19, %v1859_v59 }
 0x3d8   : > { %v1903_v35 = vadd.f32 %v8762_v18, %v1882_v24 }
 0x3da   : > { %v1919_v28 = vmax.f32 %v1903_v35, 0.0 }
 0x3dc   : > { %v1927_v43 = vpack.c.bf16 %v1919_v28, %v1918_v48  ;;  %v8891_v28 = vld [vmem:[%s10303_s3 + $0x2] ss:$0 sm:$0xff] }
 0x3de   : > { %6065 = vmatmul.msk.bf16.gmra.mxu2 %vm1299_vm4, %v1927_v43  ;;  %6091 = vmatmul.msk.bf16.gmra.mxu0 %vm1299_vm4, %v1927_v43 }
 0x3df   : > { %6117 = vmatmul.msk.bf16.gmra.mxu1 %vm1299_vm4, %v1927_v43 }
 0x3eb   : > { %v2060_v2 = vpop.f32.mrf.mxu0 }
 0x3ec   : > { %v8835_v38 = vpop.f32.mrf.mxu1 }
 0x3ed   : > { %v2222_v39 = vrot.slane %v8835_v38, 1 }
 0x3f1   : > { %v1986_v6 = vpop.f32.mrf.mxu2 }
 0x3f2   : > { %v2174_v10 = vrot.slane %v1986_v6, 7 }
 0x3f3   : > { %v2062_v22 = vpop.f32.mrf.mxu0 }
 0x3f4   : > { %v2136_v58 = vpop.f32.mrf.mxu1  ;;  %v2271_v25 = vadd.f32 %v2062_v22, %v8522_v44  ;;  %v2270_v44 = vadd.f32 %v2060_v2, %v8557_v14  ;;  %v8912_v14 = vld [vmem:[%s10304_s5 + $0x2] ss:$0 sm:$0xff] }
 0x3f5   : > { %v2223_v59 = vrot.slane %v2136_v58, 1 }
 0x3f7   : > { %v2252_v63 = vsel %vm1601_vm5, %v2222_v39, %v2223_v59 }
 0x3f9   : > { %v8819_v20 = vpop.f32.mrf.mxu2 }
 0x3fa   : > { %v2175_v36 = vrot.slane %v8819_v20, 7 }
 0x3fb   : > { %v2065_v1 = vpop.f32.mrf.mxu0 }
 0x3fc   : > { %v8850_v3 = vpop.f32.mrf.mxu1  ;;  %v2204_v8 = vsel %vm969_vm2, %v2174_v10, %v2175_v36 }
 0x3fd   : > { %v2224_v42 = vrot.slane %v8850_v3, 1  ;;  %v2287_v57 = vadd.f32 %v2271_v25, %v2204_v8 }
 0x3ff   : > { %v2251_v24 = vsel %vm1601_vm5, %v2223_v59, %v2224_v42 }
 0x400   : > { %v8886_v48 = vadd.f32 %v2287_v57, %v2251_v24 }
 0x401   : > { %v8821_v27 = vpop.f32.mrf.mxu2 }
 0x402   : > { %v2324_v3 = vmul.f32 %v8891_v28, %v8886_v48 }
 0x403   : > { %v2067_v4 = vpop.f32.mrf.mxu0 }
 0x404   : > { %v2141_v26 = vpop.f32.mrf.mxu1  ;;  %v2273_v8 = vadd.f32 %v2067_v4, %v8574_v49 }
 0x405   : > { %v2225_v59 = vrot.slane %v2141_v26, 1 }
 0x407   : > { %v2250_v49 = vsel %vm1601_vm5, %v2224_v42, %v2225_v59 }
 0x409   : > { %v8823_v50 = vpop.f32.mrf.mxu2 }
 0x40a   : > { %v2177_v55 = vrot.slane %v8823_v50, 7  ;;  %v2176_v50 = vrot.slane %v8821_v27, 7  ;;  %v2272_v27 = vadd.f32 %v2065_v1, %v8576_v54 }
 0x40b   : > { %v2070_v51 = vpop.f32.mrf.mxu0 }
 0x40c   : > { %v8873_v9 = vpop.f32.mrf.mxu1  ;;  %v2202_v33 = vsel %vm969_vm2, %v2176_v50, %v2177_v55  ;;  %v2203_v57 = vsel %vm969_vm2, %v2175_v36, %v2176_v50 }
 0x40d   : > { %v2226_v46 = vrot.slane %v8873_v9, 1  ;;  %v2289_v24 = vadd.f32 %v2273_v8, %v2202_v33 }
 0x411   : > { %v8825_v52 = vpop.f32.mrf.mxu2 }
 0x413   : > { %v2072_v20 = vpop.f32.mrf.mxu0 }
 0x414   : > { %v8882_v62 = vpop.f32.mrf.mxu1  ;;  %v2275_v8 = vadd.f32 %v2072_v20, %v8599_v32 }
 0x419   : > { %v8827_v19 = vpop.f32.mrf.mxu2 }
 0x41a   : > { %v2179_v1 = vrot.slane %v8827_v19, 7 }
 0x41b   : > { %v2075_v9 = vpop.f32.mrf.mxu0 }
 0x41c   : > { %v8914_v2 = vpop.f32.mrf.mxu1 }
 0x421   : > { %v8829_v18 = vpop.f32.mrf.mxu2 }
 0x423   : > { %v2077_v50 = vpop.f32.mrf.mxu0 }
 0x429   : > { %v8831_v16 = vpop.f32.mrf.mxu2 }
 0x431   : > { %v8833_v30 = vpop.f32.mrf.mxu2 }
 0x439   : > { %v8837_v45 = vpop.f32.mrf.mxu2 }
 0x441   : > { %v8845_v17 = vpop.f32.mrf.mxu2 }
 0x449   : > { %v8855_v40 = vpop.f32.mrf.mxu2 }
 0x451   : > { %v8863_v5 = vpop.f32.mrf.mxu2 }
 0x459   : > { %v8871_v13 = vpop.f32.mrf.mxu2 }
 0x461   : > { %v8876_v61 = vpop.f32.mrf.mxu2 }
 0x462   : > { %v2188_v43 = vrot.slane %v8876_v61, 7 }
 0x469   : > { %v2023_v35 = vpop.f32.mrf.mxu2 }
 0x46a   : > { %v2189_v6 = vrot.slane %v2023_v35, 7 }
 0x46c   : > { %v8899_v56 = vsel %vm969_vm2, %v2188_v43, %v2189_v6  ;;  %v2205_v58 = vsel %vm969_vm2, %v2189_v6, %v2174_v10  ;;  %v2345_v10 = vadd.f32 %v8912_v14, %v2324_v3  ;;  %v2249_v6 = vsel %vm1601_vm5, %v2225_v59, %v2226_v46  ;;  %v2151_v3 = vpop.f32.mrf.mxu1 }
 0x46d   : > { %v2206_v22 = vsel %vm937_vm3, 0.0, %v2205_v58  ;;  %v2288_v58 = vadd.f32 %v2272_v27, %v2203_v57  ;;  %v8938_v4 = vadd.f32 %v2289_v24, %v2249_v6  ;;  %v2227_v59 = vrot.slane %v8882_v62, 1 }
 0x46e   : > { %v2286_v21 = vadd.f32 %v2270_v44, %v2206_v22  ;;  %v2361_v44 = vmax.f32 %v2345_v10, 0.0  ;;  %v2228_v10 = vrot.slane %v8914_v2, 1  ;;  %v2181_v62 = vrot.slane %v8831_v16, 7 }
 0x46f   : > { %v8940_v26 = vadd.f32 %v2288_v58, %v2250_v49  ;;  %v2326_v54 = vmul.f32 %v8891_v28, %v8938_v4  ;;  %v2248_v32 = vsel %vm1601_vm5, %v2226_v46, %v2227_v59  ;;  %v2080_v58 = vpop.f32.mrf.mxu0  ;;  %v2180_v49 = vrot.slane %v8829_v18, 7 }
 0x470   : > { %v8921_v23 = vadd.f32 %v2286_v21, %v2252_v63  ;;  %v2178_v63 = vrot.slane %v8825_v52, 7  ;;  %v2274_v52 = vadd.f32 %v2070_v51, %v8601_v7 }
 0x471   : > { %v2325_v21 = vmul.f32 %v8891_v28, %v8940_v26  ;;  %v2347_v42 = vadd.f32 %v8912_v14, %v2326_v54 }
 0x472   : > { %v2323_v25 = vmul.f32 %v8891_v28, %v8921_v23  ;;  %v2200_v33 = vsel %vm969_vm2, %v2178_v63, %v2179_v1  ;;  %v2201_v19 = vsel %vm969_vm2, %v2177_v55, %v2178_v63 }
 0x473   : > { %v2346_v57 = vadd.f32 %v8912_v14, %v2325_v21  ;;  %v2291_v27 = vadd.f32 %v2275_v8, %v2200_v33  ;;  %v2363_v24 = vmax.f32 %v2347_v42, 0.0  ;;  %v2290_v6 = vadd.f32 %v2274_v52, %v2201_v19 }
 0x474   : > { %v2344_v35 = vadd.f32 %v8912_v14, %v2323_v25  ;;  %v2154_v25 = vpop.f32.mrf.mxu1  ;;  %v2277_v21 = vadd.f32 %v2077_v50, %v8621_v12  ;;  %v2199_v42 = vsel %vm969_vm2, %v2179_v1, %v2180_v49  ;;  %v2229_v33 = vrot.slane %v2151_v3, 1 }
 0x475   : > { %v2230_v54 = vrot.slane %v2154_v25, 1  ;;  %v2276_v8 = vadd.f32 %v2075_v9, %v8623_v34  ;;  %v2183_v9 = vrot.slane %v8837_v45, 7 }
 0x476   : > { %v2360_v22 = vmax.f32 %v2344_v35, 0.0  ;;  %v2247_v35 = vsel %vm1601_vm5, %v2227_v59, %v2228_v10  ;;  %v2246_v12 = vsel %vm1601_vm5, %v2228_v10, %v2229_v33 }
 0x477   : > { %v8962_v20 = vadd.f32 %v2291_v27, %v2247_v35  ;;  %v2082_v16 = vpop.f32.mrf.mxu0  ;;  %v2245_v18 = vsel %vm1601_vm5, %v2229_v33, %v2230_v54  ;;  %v2292_v59 = vadd.f32 %v2276_v8, %v2199_v42  ;;  %v2182_v35 = vrot.slane %v8833_v30, 7 }
 0x478   : > { %v2376_v36 = vpack.c.bf16 %v2361_v44, %v2360_v22  ;;  %v2362_v44 = vmax.f32 %v2346_v57, 0.0  ;;  %v8964_v22 = vadd.f32 %v2290_v6, %v2248_v32 }
 0x479   : > { %v2328_v7 = vmul.f32 %v8891_v28, %v8962_v20  ;;  %v2197_v45 = vsel %vm969_vm2, %v2181_v62, %v2182_v35 }
 0x47a   : > { %2457 = vmatmul.bf16.vlgmr.msra.gmra.mxu3 %v2376_v36  ;;  %v2377_v2 = vpack.c.bf16 %v2363_v24, %v2362_v44  ;;  %v2327_v55 = vmul.f32 %v8891_v28, %v8964_v22  ;;  %v2198_v36 = vsel %vm969_vm2, %v2180_v49, %v2181_v62  ;;  %v8986_v24 = vadd.f32 %v2292_v59, %v2246_v12 }
 0x47b   : > { %v2349_v46 = vadd.f32 %v8912_v14, %v2328_v7  ;;  %v2293_v57 = vadd.f32 %v2277_v21, %v2198_v36  ;;  %v2196_v44 = vsel %vm969_vm2, %v2182_v35, %v2183_v9  ;;  %v2278_v49 = vadd.f32 %v2080_v58, %v8645_v37 }
 0x47c   : > { %v2156_v51 = vpop.f32.mrf.mxu1  ;;  %v2348_v63 = vadd.f32 %v8912_v14, %v2327_v55  ;;  %v2329_v1 = vmul.f32 %v8891_v28, %v8986_v24  ;;  %v2185_v58 = vrot.slane %v8855_v40, 7 }
 0x47d   : > { %v2365_v19 = vmax.f32 %v2349_v46, 0.0  ;;  %v8984_v50 = vadd.f32 %v2293_v57, %v2245_v18  ;;  %v2231_v55 = vrot.slane %v2156_v51, 1  ;;  %v2294_v21 = vadd.f32 %v2278_v49, %v2197_v45 }
 0x47e   : > { %v2364_v27 = vmax.f32 %v2348_v63, 0.0  ;;  %v2350_v7 = vadd.f32 %v8912_v14, %v2329_v1  ;;  %v2184_v57 = vrot.slane %v8845_v17, 7  ;;  %v2186_v49 = vrot.slane %v8863_v5, 7 }
 0x47f   : > { %v2330_v34 = vmul.f32 %v8891_v28, %v8984_v50  ;;  %v2085_v3 = vpop.f32.mrf.mxu0  ;;  %v2244_v42 = vsel %vm1601_vm5, %v2230_v54, %v2231_v55 }
 0x480   : > { %v2378_v25 = vpack.c.bf16 %v2365_v19, %v2364_v27  ;;  %v2366_v63 = vmax.f32 %v2350_v7, 0.0  ;;  %v9008_v8 = vadd.f32 %v2294_v21, %v2244_v42  ;;  %v2194_v19 = vsel %vm969_vm2, %v2184_v57, %v2185_v58 }
 0x481   : > { %v2351_v10 = vadd.f32 %v8912_v14, %v2330_v34  ;;  %v2195_v12 = vsel %vm969_vm2, %v2183_v9, %v2184_v57 }
 0x482   : > { %v2331_v51 = vmul.f32 %v8891_v28, %v9008_v8 }
 0x483   : > { %v2367_v36 = vmax.f32 %v2351_v10, 0.0 }
 0x484   : > { %v2159_v52 = vpop.f32.mrf.mxu1  ;;  %v2352_v27 = vadd.f32 %v8912_v14, %v2331_v51 }
 0x485   : > { %v2232_v32 = vrot.slane %v2159_v52, 1 }
 0x487   : > { %v2243_v30 = vsel %vm1601_vm5, %v2231_v55, %v2232_v32  ;;  %v2087_v33 = vpop.f32.mrf.mxu0 }
 0x488   : > { %v2281_v52 = vadd.f32 %v2087_v33, %v8665_v11 }
 0x48a   : > { %2462 = vmatmul.bf16.gmra.mxu3 %v2377_v2  ;;  %v2279_v2 = vadd.f32 %v2082_v16, %v8643_v53  ;;  %v2379_v16 = vpack.c.bf16 %v2367_v36, %v2366_v63  ;;  %v2297_v34 = vadd.f32 %v2281_v52, %v2194_v19  ;;  %v2193_v63 = vsel %vm969_vm2, %v2185_v58, %v2186_v49  ;;  %v7466_v58 = vld [vmem:[%s10261_s9 + $0xb8] sm:$0xff] }
 0x48b   : > { %2692 = vmatpush.bf16.msrb.mxu0 %v7466_v58 }
 0x48c   : > { %v2161_v6 = vpop.f32.mrf.mxu1  ;;  %v2295_v46 = vadd.f32 %v2279_v2, %v2196_v44  ;;  %v2368_v44 = vmax.f32 %v2352_v27, 0.0 }
 0x48d   : > { %v2233_v40 = vrot.slane %v2161_v6, 1 }
 0x48e   : > { %v9006_v53 = vadd.f32 %v2295_v46, %v2243_v30 }
 0x48f   : > { %v2090_v18 = vpop.f32.mrf.mxu0  ;;  %v2242_v2 = vsel %vm1601_vm5, %v2232_v32, %v2233_v40 }
 0x490   : > { %v2332_v37 = vmul.f32 %v8891_v28, %v9006_v53  ;;  %v2282_v42 = vadd.f32 %v2090_v18, %v8689_v47  ;;  %v7463_v47 = vld [vmem:[%s10261_s9 + $0xa0] sm:$0xff]  ;;  %v7469_v18 = vld [vmem:[%s10261_s9 + $0xd0] sm:$0xff] }
 0x491   : > { %2618 = vmatpush.bf16.msra.mxu2 %v7463_v47  ;;  %2766 = vmatpush.bf16.msrb.mxu1 %v7469_v18 }
 0x492   : > { %v2353_v54 = vadd.f32 %v8912_v14, %v2332_v37  ;;  %v2298_v37 = vadd.f32 %v2282_v42, %v2193_v63  ;;  %v9115_v63 = vld [vmem:[%s10259_s7 + $0x2] ss:$0 sm:$0xff] }
 0x493   : > { %v9121_v42 = vld [vmem:[%s10260_s8 + $0x2] ss:$0 sm:$0xff] }
 0x494   : > { %v2164_v62 = vpop.f32.mrf.mxu1  ;;  %v2369_v17 = vmax.f32 %v2353_v54, 0.0 }
 0x495   : > { %v2234_v59 = vrot.slane %v2164_v62, 1 }
 0x496   : > { %v2380_v7 = vpack.c.bf16 %v2369_v17, %v2368_v44 }
 0x497   : > { %v2241_v35 = vsel %vm1601_vm5, %v2233_v40, %v2234_v59  ;;  %v2092_v9 = vpop.f32.mrf.mxu0 }
 0x498   : > { %v9028_v11 = vadd.f32 %v2297_v34, %v2241_v35  ;;  %v2283_v30 = vadd.f32 %v2092_v9, %v8687_v29 }
 0x49a   : > { %2467 = vmatmul.bf16.gmra.mxu3 %v2378_v25  ;;  %v2280_v25 = vadd.f32 %v2085_v3, %v8667_v41  ;;  %v2334_v41 = vmul.f32 %v8891_v28, %v9028_v11  ;;  %v2187_v3 = vrot.slane %v8871_v13, 7 }
 0x49c   : > { %v2166_v1 = vpop.f32.mrf.mxu1  ;;  %v2296_v10 = vadd.f32 %v2280_v25, %v2195_v12  ;;  %v2355_v32 = vadd.f32 %v8912_v14, %v2334_v41  ;;  %v2192_v46 = vsel %vm969_vm2, %v2186_v49, %v2187_v3  ;;  %v2191_v17 = vsel %vm969_vm2, %v2187_v3, %v2188_v43  ;;  %v7462_v49 = vld [vmem:[%s10261_s9 + $0x98] sm:$0xff] }
 0x49d   : > { %v2235_v13 = vrot.slane %v2166_v1, 1  ;;  %v2299_v33 = vadd.f32 %v2283_v30, %v2192_v46  ;;  %v7468_v46 = vld [vmem:[%s10261_s9 + $0xc8] sm:$0xff]  ;;  %2619 = vmatpush.bf16.msra.mxu2 %v7462_v49  ;;  %v7467_v30 = vld [vmem:[%s10261_s9 + $0xc0] sm:$0xff] }
 0x49e   : > { %v9030_v45 = vadd.f32 %v2296_v10, %v2242_v2  ;;  %2767 = vmatpush.bf16.msrb.mxu1 %v7468_v46 }
 0x49f   : > { %v2095_v62 = vpop.f32.mrf.mxu0  ;;  %v2240_v57 = vsel %vm1601_vm5, %v2234_v59, %v2235_v13 }
 0x4a0   : > { %v2333_v55 = vmul.f32 %v8891_v28, %v9030_v45  ;;  %v9052_v19 = vadd.f32 %v2298_v37, %v2240_v57  ;;  %v2284_v35 = vadd.f32 %v2095_v62, %v8721_v60 }
 0x4a2   : > { %v2354_v21 = vadd.f32 %v8912_v14, %v2333_v55  ;;  %v2335_v27 = vmul.f32 %v8891_v28, %v9052_v19  ;;  %2768 = vmatpush.bf16.msrb.mxu1 %v7467_v30 }
 0x4a4   : > { %v2169_v6 = vpop.f32.mrf.mxu1  ;;  %v2370_v51 = vmax.f32 %v2354_v21, 0.0  ;;  %v2356_v1 = vadd.f32 %v8912_v14, %v2335_v27 }
 0x4a5   : > { %v2236_v36 = vrot.slane %v2169_v6, 1 }
 0x4a6   : > { %v2372_v9 = vmax.f32 %v2356_v1, 0.0 }
 0x4a7   : > { %v2239_v5 = vsel %vm1601_vm5, %v2235_v13, %v2236_v36  ;;  %v2097_v12 = vpop.f32.mrf.mxu0 }
 0x4a8   : > { %v9050_v29 = vadd.f32 %v2299_v33, %v2239_v5  ;;  %v2285_v34 = vadd.f32 %v2097_v12, %v8719_v0 }
 0x4aa   : > { %2472 = vmatmul.bf16.gmra.mxu3 %v2379_v16  ;;  %v2371_v16 = vmax.f32 %v2355_v32, 0.0  ;;  %v2336_v59 = vmul.f32 %v8891_v28, %v9050_v29  ;;  %v2301_v44 = vadd.f32 %v2285_v34, %v8899_v56  ;;  %v7465_v32 = vld [vmem:[%s10261_s9 + $0xb0] sm:$0xff] }
 0x4ab   : > { %2693 = vmatpush.bf16.msrb.mxu0 %v7465_v32 }
 0x4ac   : > { %v2381_v54 = vpack.c.bf16 %v2371_v16, %v2370_v51  ;;  %v2171_v52 = vpop.f32.mrf.mxu1  ;;  %v2357_v25 = vadd.f32 %v8912_v14, %v2336_v59 }
 0x4ad   : > { %v2237_v40 = vrot.slane %v2171_v52, 1 }
 0x4ae   : > { %v2373_v2 = vmax.f32 %v2357_v25, 0.0 }
 0x4af   : > { %v2253_v10 = vsel %vm1601_vm5, %v2237_v40, %v2222_v39  ;;  %v2238_v0 = vsel %vm1601_vm5, %v2236_v36, %v2237_v40 }
 0x4b0   : > { %v2269_v61 = vsel %vm1584_vm6, 0.0, %v2253_v10  ;;  %v2382_v43 = vpack.c.bf16 %v2373_v2, %v2372_v9 }
 0x4b1   : > { %v9084_v41 = vadd.f32 %v2301_v44, %v2269_v61 }
 0x4b3   : > { %v2338_v38 = vmul.f32 %v8891_v28, %v9084_v41 }
 0x4b5   : > { %v2359_v39 = vadd.f32 %v8912_v14, %v2338_v38 }
 0x4b7   : > { %v2375_v6 = vmax.f32 %v2359_v39, 0.0 }
 0x4ba   : > { %2477 = vmatmul.bf16.gmra.mxu3 %v2380_v7  ;;  %v2300_v7 = vadd.f32 %v2284_v35, %v2191_v17 }
 0x4bc   : > { %v9086_v60 = vadd.f32 %v2300_v7, %v2238_v0 }
 0x4be   : > { %v2337_v56 = vmul.f32 %v8891_v28, %v9086_v60  ;;  %v7461_v28 = vld [vmem:[%s10261_s9 + $0x90] sm:$0xff] }
 0x4bf   : > { %2620 = vmatpush.bf16.msra.mxu2 %v7461_v28 }
 0x4c0   : > { %v2358_v3 = vadd.f32 %v8912_v14, %v2337_v56  ;;  %v7464_v14 = vld [vmem:[%s10261_s9 + $0xa8] sm:$0xff] }
 0x4c1   : > { %2694 = vmatpush.bf16.msrb.mxu0 %v7464_v14 }
 0x4c2   : > { %v2374_v55 = vmax.f32 %v2358_v3, 0.0 }
 0x4c4   : > { %v2383_v36 = vpack.c.bf16 %v2375_v6, %v2374_v55 }
 0x4ca   : > { %2482 = vmatmul.bf16.gmra.mxu3 %v2381_v54 }
 0x4da   : > { %2487 = vmatmul.bf16.gmra.mxu3 %v2382_v43 }
 0x4ea   : > { %2492 = vmatmul.bf16.gmra.mxu3 %v2383_v36 }
 0x4fd   : > { %v2458_v21 = vpop.f32.mrf.mxu3 }
 0x4fe   : > { %v2503_v13 = vmul.f32 %v9115_v63, %v2458_v21 }
 0x500   : > { %v2524_v16 = vadd.f32 %v9121_v42, %v2503_v13 }
 0x502   : > { %v2540_v37 = vmax.f32 %v2524_v16, 0.0 }
 0x505   : > { %v2460_v33 = vpop.f32.mrf.mxu3 }
 0x506   : > { %v2504_v62 = vmul.f32 %v9115_v63, %v2460_v33 }
 0x508   : > { %v2525_v5 = vadd.f32 %v9121_v42, %v2504_v62 }
 0x50a   : > { %v2541_v51 = vmax.f32 %v2525_v5, 0.0 }
 0x50c   : > { %v2556_v57 = vpack.c.bf16 %v2541_v51, %v2540_v37 }
 0x50d   : > { %v2463_v54 = vpop.f32.mrf.mxu3 }
 0x50e   : > { %6188 = vmatmul.msk.bf16.vlgmr.msra.gmra.mxu2 %vm1299_vm4, %v2556_v57  ;;  %6214 = vmatmul.msk.bf16.vlgmr.msrb.gmra.mxu0 %vm1299_vm4, %v2556_v57  ;;  %v2505_v47 = vmul.f32 %v9115_v63, %v2463_v54 }
 0x50f   : > { %6240 = vmatmul.msk.bf16.vlgmr.msrb.gmra.mxu1 %vm1299_vm4, %v2556_v57 }
 0x510   : > { %v2526_v18 = vadd.f32 %v9121_v42, %v2505_v47 }
 0x512   : > { %v2542_v27 = vmax.f32 %v2526_v18, 0.0 }
 0x515   : > { %v2465_v58 = vpop.f32.mrf.mxu3 }
 0x516   : > { %v2506_v59 = vmul.f32 %v9115_v63, %v2465_v58 }
 0x518   : > { %v2527_v52 = vadd.f32 %v9121_v42, %v2506_v59 }
 0x51a   : > { %v2543_v12 = vmax.f32 %v2527_v52, 0.0 }
 0x51c   : > { %v2557_v40 = vpack.c.bf16 %v2543_v12, %v2542_v27 }
 0x51d   : > { %v2468_v25 = vpop.f32.mrf.mxu3 }
 0x51e   : > { %6189 = vmatmul.msk.bf16.gmra.mxu2 %vm1299_vm4, %v2557_v40  ;;  %6215 = vmatmul.msk.bf16.gmra.mxu0 %vm1299_vm4, %v2557_v40  ;;  %v2507_v34 = vmul.f32 %v9115_v63, %v2468_v25 }
 0x51f   : > { %6241 = vmatmul.msk.bf16.gmra.mxu1 %vm1299_vm4, %v2557_v40 }
 0x520   : > { %v2528_v17 = vadd.f32 %v9121_v42, %v2507_v34 }
 0x522   : > { %v2544_v44 = vmax.f32 %v2528_v17, 0.0 }
 0x525   : > { %v2470_v1 = vpop.f32.mrf.mxu3 }
 0x526   : > { %v2508_v35 = vmul.f32 %v9115_v63, %v2470_v1 }
 0x528   : > { %v2529_v10 = vadd.f32 %v9121_v42, %v2508_v35 }
 0x52a   : > { %v2545_v2 = vmax.f32 %v2529_v10, 0.0 }
 0x52c   : > { %v2558_v7 = vpack.c.bf16 %v2545_v2, %v2544_v44 }
 0x52d   : > { %v2473_v9 = vpop.f32.mrf.mxu3 }
 0x52e   : > { %6190 = vmatmul.msk.bf16.gmra.mxu2 %vm1299_vm4, %v2558_v7  ;;  %6216 = vmatmul.msk.bf16.gmra.mxu0 %vm1299_vm4, %v2558_v7  ;;  %v2509_v0 = vmul.f32 %v9115_v63, %v2473_v9 }
 0x52f   : > { %6242 = vmatmul.msk.bf16.gmra.mxu1 %vm1299_vm4, %v2558_v7 }
 0x530   : > { %v2530_v43 = vadd.f32 %v9121_v42, %v2509_v0 }
 0x532   : > { %v2546_v39 = vmax.f32 %v2530_v43, 0.0 }
 0x535   : > { %v2475_v61 = vpop.f32.mrf.mxu3 }
 0x536   : > { %v2510_v38 = vmul.f32 %v9115_v63, %v2475_v61 }
 0x538   : > { %v2531_v56 = vadd.f32 %v9121_v42, %v2510_v38 }
 0x53a   : > { %v2547_v3 = vmax.f32 %v2531_v56, 0.0 }
 0x53c   : > { %v2559_v6 = vpack.c.bf16 %v2547_v3, %v2546_v39 }
 0x53d   : > { %v2478_v55 = vpop.f32.mrf.mxu3 }
 0x53e   : > { %6191 = vmatmul.msk.bf16.gmra.mxu2 %vm1299_vm4, %v2559_v6  ;;  %6217 = vmatmul.msk.bf16.gmra.mxu0 %vm1299_vm4, %v2559_v6  ;;  %v2511_v49 = vmul.f32 %v9115_v63, %v2478_v55 }
 0x53f   : > { %6243 = vmatmul.msk.bf16.gmra.mxu1 %vm1299_vm4, %v2559_v6 }
 0x540   : > { %v2532_v46 = vadd.f32 %v9121_v42, %v2511_v49 }
 0x542   : > { %v2548_v14 = vmax.f32 %v2532_v46, 0.0 }
 0x545   : > { %v2480_v32 = vpop.f32.mrf.mxu3 }
 0x546   : > { %v2512_v36 = vmul.f32 %v9115_v63, %v2480_v32 }
 0x548   : > { %v2533_v28 = vadd.f32 %v9121_v42, %v2512_v36 }
 0x54a   : > { %v2549_v30 = vmax.f32 %v2533_v28, 0.0 }
 0x54c   : > { %v2560_v21 = vpack.c.bf16 %v2549_v30, %v2548_v14 }
 0x54d   : > { %v2483_v13 = vpop.f32.mrf.mxu3 }
 0x54e   : > { %6192 = vmatmul.msk.bf16.gmra.mxu2 %vm1299_vm4, %v2560_v21  ;;  %6218 = vmatmul.msk.bf16.gmra.mxu0 %vm1299_vm4, %v2560_v21  ;;  %v2513_v33 = vmul.f32 %v9115_v63, %v2483_v13 }
 0x54f   : > { %6244 = vmatmul.msk.bf16.gmra.mxu1 %vm1299_vm4, %v2560_v21 }
 0x550   : > { %v2534_v62 = vadd.f32 %v9121_v42, %v2513_v33 }
 0x552   : > { %v2550_v51 = vmax.f32 %v2534_v62, 0.0 }
 0x555   : > { %v2485_v16 = vpop.f32.mrf.mxu3 }
 0x556   : > { %v2514_v5 = vmul.f32 %v9115_v63, %v2485_v16 }
 0x558   : > { %v2535_v37 = vadd.f32 %v9121_v42, %v2514_v5 }
 0x55a   : > { %v2551_v57 = vmax.f32 %v2535_v37, 0.0 }
 0x55c   : > { %v2561_v54 = vpack.c.bf16 %v2551_v57, %v2550_v51 }
 0x55d   : > { %v2488_v47 = vpop.f32.mrf.mxu3 }
 0x55e   : > { %6193 = vmatmul.msk.bf16.gmra.mxu2 %vm1299_vm4, %v2561_v54  ;;  %6219 = vmatmul.msk.bf16.gmra.mxu0 %vm1299_vm4, %v2561_v54  ;;  %v2515_v58 = vmul.f32 %v9115_v63, %v2488_v47 }
 0x55f   : > { %6245 = vmatmul.msk.bf16.gmra.mxu1 %vm1299_vm4, %v2561_v54 }
 0x560   : > { %v2536_v59 = vadd.f32 %v9121_v42, %v2515_v58 }
 0x562   : > { %v2552_v12 = vmax.f32 %v2536_v59, 0.0 }
 0x565   : > { %v2490_v18 = vpop.f32.mrf.mxu3 }
 0x566   : > { %v2516_v52 = vmul.f32 %v9115_v63, %v2490_v18 }
 0x568   : > { %v2537_v27 = vadd.f32 %v9121_v42, %v2516_v52 }
 0x56a   : > { %v2553_v40 = vmax.f32 %v2537_v27, 0.0 }
 0x56c   : > { %v2562_v25 = vpack.c.bf16 %v2553_v40, %v2552_v12 }
 0x56d   : > { %v2493_v34 = vpop.f32.mrf.mxu3 }
 0x56e   : > { %6194 = vmatmul.msk.bf16.gmra.mxu2 %vm1299_vm4, %v2562_v25  ;;  %6220 = vmatmul.msk.bf16.gmra.mxu0 %vm1299_vm4, %v2562_v25  ;;  %v2517_v1 = vmul.f32 %v9115_v63, %v2493_v34 }
 0x56f   : > { %6246 = vmatmul.msk.bf16.gmra.mxu1 %vm1299_vm4, %v2562_v25 }
 0x570   : > { %v2538_v35 = vadd.f32 %v9121_v42, %v2517_v1 }
 0x572   : > { %v2554_v2 = vmax.f32 %v2538_v35, 0.0 }
 0x575   : > { %v2495_v17 = vpop.f32.mrf.mxu3 }
 0x576   : > { %v2518_v10 = vmul.f32 %v9115_v63, %v2495_v17 }
 0x578   : > { %v2539_v44 = vadd.f32 %v9121_v42, %v2518_v10 }
 0x57a   : > { %v2555_v7 = vmax.f32 %v2539_v44, 0.0 }
 0x57c   : > { %v2563_v9 = vpack.c.bf16 %v2555_v7, %v2554_v2 }
 0x57e   : > { %6195 = vmatmul.msk.bf16.gmra.mxu2 %vm1299_vm4, %v2563_v9  ;;  %6221 = vmatmul.msk.bf16.gmra.mxu0 %vm1299_vm4, %v2563_v9 }
 0x57f   : > { %6247 = vmatmul.msk.bf16.gmra.mxu1 %vm1299_vm4, %v2563_v9 }
 0x58b   : > { %v9178_v0 = vpop.f32.mrf.mxu0 }
 0x58c   : > { %v9180_v61 = vpop.f32.mrf.mxu1 }
 0x591   : > { %v9182_v43 = vpop.f32.mrf.mxu2 }
 0x592   : > { %v2810_v42 = vrot.slane %v9182_v43, 7 }
 0x593   : > { %v2698_v38 = vpop.f32.mrf.mxu0 }
 0x594   : > { %v9184_v56 = vpop.f32.mrf.mxu1  ;;  %v2907_v3 = vadd.f32 %v2698_v38, %v8886_v48 }
 0x595   : > { %v2859_v32 = vrot.slane %v9184_v56, 1 }
 0x599   : > { %v2624_v63 = vpop.f32.mrf.mxu2 }
 0x59a   : > { %v2811_v39 = vrot.slane %v2624_v63, 7 }
 0x59b   : > { %v2701_v6 = vpop.f32.mrf.mxu0 }
 0x59c   : > { %v2840_v55 = vsel %vm969_vm2, %v2810_v42, %v2811_v39  ;;  %v2775_v49 = vpop.f32.mrf.mxu1  ;;  %v2908_v21 = vadd.f32 %v2701_v6, %v8940_v26  ;;  %v9208_v26 = vld [vmem:[%s10262_s10] ss:$0 sm:$0xff] }
 0x59d   : > { %v2923_v46 = vadd.f32 %v2907_v3, %v2840_v55  ;;  %v2860_v36 = vrot.slane %v2775_v49, 1 }
 0x59f   : > { %v2887_v28 = vsel %vm1601_vm5, %v2859_v32, %v2860_v36 }
 0x5a0   : > { %v9197_v14 = vadd.f32 %v2923_v46, %v2887_v28 }
 0x5a1   : > { %v2627_v30 = vpop.f32.mrf.mxu2 }
 0x5a2   : > { %v2812_v48 = vrot.slane %v2627_v30, 7 }
 0x5a3   : > { %v2703_v13 = vpop.f32.mrf.mxu0 }
 0x5a4   : > { %v2839_v33 = vsel %vm969_vm2, %v2811_v39, %v2812_v48  ;;  %v2777_v16 = vpop.f32.mrf.mxu1  ;;  %v2909_v47 = vadd.f32 %v2703_v13, %v8938_v4  ;;  %v9218_v4 = vld [vmem:[%s10263_s11] ss:$0 sm:$0xff] }
 0x5a5   : > { %v2924_v62 = vadd.f32 %v2908_v21, %v2839_v33  ;;  %v2861_v5 = vrot.slane %v2777_v16, 1 }
 0x5a7   : > { %v2886_v37 = vsel %vm1601_vm5, %v2860_v36, %v2861_v5 }
 0x5a8   : > { %v2940_v51 = vadd.f32 %v2924_v62, %v2886_v37 }
 0x5a9   : > { %v2629_v57 = vpop.f32.mrf.mxu2 }
 0x5aa   : > { %v2813_v54 = vrot.slane %v2629_v57, 7  ;;  %v2960_v12 = vmul.f32 %v9208_v26, %v2940_v51 }
 0x5ab   : > { %v2706_v58 = vpop.f32.mrf.mxu0 }
 0x5ac   : > { %v2838_v18 = vsel %vm969_vm2, %v2812_v48, %v2813_v54  ;;  %v2780_v59 = vpop.f32.mrf.mxu1  ;;  %v2980_v35 = vadd.f32 %v9218_v4, %v2960_v12  ;;  %v2910_v10 = vadd.f32 %v2706_v58, %v8964_v22 }
 0x5ad   : > { %v2925_v52 = vadd.f32 %v2909_v47, %v2838_v18  ;;  %v2862_v27 = vrot.slane %v2780_v59, 1 }
 0x5ae   : > { %v2996_v39 = vmax.f32 %v2980_v35, 0.0 }
 0x5af   : > { %v2885_v40 = vsel %vm1601_vm5, %v2861_v5, %v2862_v27 }
 0x5b0   : > { %v2941_v25 = vadd.f32 %v2925_v52, %v2885_v40 }
 0x5b1   : > { %v2632_v34 = vpop.f32.mrf.mxu2 }
 0x5b2   : > { %v2961_v1 = vmul.f32 %v9208_v26, %v2941_v25  ;;  %v2814_v17 = vrot.slane %v2632_v34, 7 }
 0x5b3   : > { %v2708_v44 = vpop.f32.mrf.mxu0 }
 0x5b4   : > { %v2837_v2 = vsel %vm969_vm2, %v2813_v54, %v2814_v17  ;;  %v2782_v7 = vpop.f32.mrf.mxu1  ;;  %v2981_v9 = vadd.f32 %v9218_v4, %v2961_v1  ;;  %v2911_v22 = vadd.f32 %v2708_v44, %v8962_v20 }
 0x5b5   : > { %v2926_v38 = vadd.f32 %v2910_v10, %v2837_v2  ;;  %v2863_v63 = vrot.slane %v2782_v7, 1 }
 0x5b6   : > { %v2997_v3 = vmax.f32 %v2981_v9, 0.0 }
 0x5b7   : > { %v2884_v6 = vsel %vm1601_vm5, %v2862_v27, %v2863_v63 }
 0x5b8   : > { %v2942_v55 = vadd.f32 %v2926_v38, %v2884_v6  ;;  %v9228_v49 = vpack.c.bf16 %v2997_v3, %v2996_v39 }
 0x5b9   : > { %v2634_v46 = vpop.f32.mrf.mxu2 }
 0x5ba   : > { %v2815_v36 = vrot.slane %v2634_v46, 7  ;;  %v2962_v33 = vmul.f32 %v9208_v26, %v2942_v55 }
 0x5bb   : > { %v2711_v28 = vpop.f32.mrf.mxu0 }
 0x5bc   : > { %v2836_v30 = vsel %vm969_vm2, %v2814_v17, %v2815_v36  ;;  %v2785_v48 = vpop.f32.mrf.mxu1  ;;  %v2982_v57 = vadd.f32 %v9218_v4, %v2962_v33  ;;  %v2912_v20 = vadd.f32 %v2711_v28, %v8986_v24 }
 0x5bd   : > { %v2927_v21 = vadd.f32 %v2911_v22, %v2836_v30  ;;  %v2864_v13 = vrot.slane %v2785_v48, 1 }
 0x5be   : > { %v2998_v27 = vmax.f32 %v2982_v57, 0.0 }
 0x5bf   : > { %v2883_v16 = vsel %vm1601_vm5, %v2863_v63, %v2864_v13 }
 0x5c0   : > { %v2943_v62 = vadd.f32 %v2927_v21, %v2883_v16 }
 0x5c1   : > { %v2637_v5 = vpop.f32.mrf.mxu2 }
 0x5c2   : > { %v2963_v37 = vmul.f32 %v9208_v26, %v2943_v62  ;;  %v2816_v51 = vrot.slane %v2637_v5, 7 }
 0x5c3   : > { %v2713_v54 = vpop.f32.mrf.mxu0 }
 0x5c4   : > { %v2835_v47 = vsel %vm969_vm2, %v2815_v36, %v2816_v51  ;;  %v2787_v58 = vpop.f32.mrf.mxu1  ;;  %v2983_v18 = vadd.f32 %v9218_v4, %v2963_v37  ;;  %v2913_v24 = vadd.f32 %v2713_v54, %v8984_v50 }
 0x5c5   : > { %v2928_v59 = vadd.f32 %v2912_v20, %v2835_v47  ;;  %v2865_v52 = vrot.slane %v2787_v58, 1 }
 0x5c6   : > { %v2999_v12 = vmax.f32 %v2983_v18, 0.0 }
 0x5c7   : > { %v2882_v40 = vsel %vm1601_vm5, %v2864_v13, %v2865_v52 }
 0x5c8   : > { %v2944_v25 = vadd.f32 %v2928_v59, %v2882_v40  ;;  %v9244_v34 = vpack.c.bf16 %v2999_v12, %v2998_v27 }
 0x5c9   : > { %v2639_v1 = vpop.f32.mrf.mxu2 }
 0x5ca   : > { %v2817_v17 = vrot.slane %v2639_v1, 7  ;;  %v2964_v9 = vmul.f32 %v9208_v26, %v2944_v25 }
 0x5cb   : > { %v2716_v35 = vpop.f32.mrf.mxu0 }
 0x5cc   : > { %v2834_v10 = vsel %vm969_vm2, %v2816_v51, %v2817_v17  ;;  %v2790_v44 = vpop.f32.mrf.mxu1  ;;  %v2984_v55 = vadd.f32 %v9218_v4, %v2964_v9  ;;  %v2914_v50 = vadd.f32 %v2716_v35, %v9008_v8 }
 0x5cd   : > { %v2929_v2 = vadd.f32 %v2913_v24, %v2834_v10  ;;  %v2866_v7 = vrot.slane %v2790_v44, 1 }
 0x5ce   : > { %v3000_v21 = vmax.f32 %v2984_v55, 0.0 }
 0x5cf   : > { %v2881_v38 = vsel %vm1601_vm5, %v2865_v52, %v2866_v7 }
 0x5d0   : > { %v2945_v63 = vadd.f32 %v2929_v2, %v2881_v38 }
 0x5d1   : > { %v2642_v39 = vpop.f32.mrf.mxu2 }
 0x5d2   : > { %v2965_v3 = vmul.f32 %v9208_v26, %v2945_v63  ;;  %v2818_v6 = vrot.slane %v2642_v39, 7 }
 0x5d3   : > { %v2718_v46 = vpop.f32.mrf.mxu0 }
 0x5d4   : > { %v2833_v36 = vsel %vm969_vm2, %v2817_v17, %v2818_v6  ;;  %v2792_v22 = vpop.f32.mrf.mxu1  ;;  %v2985_v28 = vadd.f32 %v9218_v4, %v2965_v3  ;;  %v2915_v8 = vadd.f32 %v2718_v46, %v9006_v53 }
 0x5d5   : > { %v2930_v30 = vadd.f32 %v2914_v50, %v2833_v36  ;;  %v2867_v48 = vrot.slane %v2792_v22, 1 }
 0x5d6   : > { %v3001_v13 = vmax.f32 %v2985_v28, 0.0 }
 0x5d7   : > { %v2880_v33 = vsel %vm1601_vm5, %v2866_v7, %v2867_v48 }
 0x5d8   : > { %v2946_v16 = vadd.f32 %v2930_v30, %v2880_v33  ;;  %v9260_v62 = vpack.c.bf16 %v3001_v13, %v3000_v21 }
 0x5d9   : > { %v2644_v5 = vpop.f32.mrf.mxu2 }
 0x5da   : > { %v2819_v37 = vrot.slane %v2644_v5, 7  ;;  %v2966_v58 = vmul.f32 %v9208_v26, %v2946_v16 }
 0x5db   : > { %v2721_v51 = vpop.f32.mrf.mxu0 }
 0x5dc   : > { %v2832_v57 = vsel %vm969_vm2, %v2818_v6, %v2819_v37  ;;  %v9265_v20 = vpop.f32.mrf.mxu1  ;;  %v2986_v27 = vadd.f32 %v9218_v4, %v2966_v58 }
 0x5dd   : > { %v2931_v54 = vadd.f32 %v2915_v8, %v2832_v57  ;;  %v2868_v47 = vrot.slane %v9265_v20, 1 }
 0x5de   : > { %v3002_v1 = vmax.f32 %v2986_v27, 0.0 }
 0x5df   : > { %v2879_v18 = vsel %vm1601_vm5, %v2867_v48, %v2868_v47 }
 0x5e0   : > { %v2947_v59 = vadd.f32 %v2931_v54, %v2879_v18  ;;  %v2858_v18 = vrot.slane %v9180_v61, 1 }
 0x5e1   : > { %v2647_v52 = vpop.f32.mrf.mxu2 }
 0x5e2   : > { %v2967_v53 = vmul.f32 %v9208_v26, %v2947_v59  ;;  %v2820_v21 = vrot.slane %v2647_v52, 7 }
 0x5e3   : > { %v2723_v12 = vpop.f32.mrf.mxu0 }
 0x5e4   : > { %v9275_v40 = vpop.f32.mrf.mxu1  ;;  %v2987_v25 = vadd.f32 %v9218_v4, %v2967_v53  ;;  %v2831_v27 = vsel %vm969_vm2, %v2819_v37, %v2820_v21 }
 0x5e5   : > { %v2869_v61 = vrot.slane %v9275_v40, 1 }
 0x5e6   : > { %v3003_v17 = vmax.f32 %v2987_v25, 0.0 }
 0x5e8   : > { %v9278_v24 = vpack.c.bf16 %v3003_v17, %v3002_v1  ;;  %v2916_v1 = vadd.f32 %v2721_v51, %v9030_v45 }
 0x5e9   : > { %v2649_v35 = vpop.f32.mrf.mxu2 }
 0x5ea   : > { %v2821_v36 = vrot.slane %v2649_v35, 7 }
 0x5eb   : > { %v2726_v10 = vpop.f32.mrf.mxu0 }
 0x5ec   : > { %v2800_v44 = vpop.f32.mrf.mxu1  ;;  %v2918_v57 = vadd.f32 %v2726_v10, %v9052_v19 }
 0x5ed   : > { %v2870_v59 = vrot.slane %v2800_v44, 1 }
 0x5f1   : > { %v2652_v2 = vpop.f32.mrf.mxu2 }
 0x5f2   : > { %v2822_v55 = vrot.slane %v2652_v2, 7 }
 0x5f3   : > { %v2728_v7 = vpop.f32.mrf.mxu0 }
 0x5f4   : > { %v2802_v9 = vpop.f32.mrf.mxu1  ;;  %v2919_v13 = vadd.f32 %v2728_v7, %v9050_v29  ;;  %v2829_v5 = vsel %vm969_vm2, %v2821_v36, %v2822_v55  ;;  %v2830_v29 = vsel %vm969_vm2, %v2820_v21, %v2821_v36  ;;  %v2932_v7 = vadd.f32 %v2916_v1, %v2831_v27  ;;  %v7474_v27 = vld [vmem:[%s10264_s12 + $0x10] sm:$0xff] }
 0x5f5   : > { %v2871_v8 = vrot.slane %v2802_v9, 1  ;;  %v2934_v19 = vadd.f32 %v2918_v57, %v2829_v5 }
 0x5f7   : > { %v2876_v17 = vsel %vm1601_vm5, %v2870_v59, %v2871_v8 }
 0x5f9   : > { %v2654_v38 = vpop.f32.mrf.mxu2 }
 0x5fa   : > { %v2823_v3 = vrot.slane %v2654_v38, 7  ;;  %v2959_v38 = vmul.f32 %v9208_v26, %v9197_v14 }
 0x5fb   : > { %v2731_v39 = vpop.f32.mrf.mxu0 }
 0x5fc   : > { %v2805_v63 = vpop.f32.mrf.mxu1  ;;  %v2920_v46 = vadd.f32 %v2731_v39, %v9086_v60  ;;  %v2828_v22 = vsel %vm969_vm2, %v2822_v55, %v2823_v3  ;;  %v2906_v60 = vadd.f32 %v9178_v0, %v8921_v23  ;;  %v2917_v23 = vadd.f32 %v2723_v12, %v9028_v11 }
 0x5fd   : > { %v2872_v28 = vrot.slane %v2805_v63, 1  ;;  %v2935_v54 = vadd.f32 %v2919_v13, %v2828_v22  ;;  %v2877_v11 = vsel %vm1601_vm5, %v2869_v61, %v2870_v59  ;;  %v2950_v12 = vadd.f32 %v2934_v19, %v2876_v17  ;;  %v7472_v19 = vld [vmem:[%s10264_s12] sm:$0xff] }
 0x5fe   : > { %v2933_v10 = vadd.f32 %v2917_v23, %v2830_v29  ;;  %v2878_v63 = vsel %vm1601_vm5, %v2868_v47, %v2869_v61  ;;  %v2979_v36 = vadd.f32 %v9218_v4, %v2959_v38  ;;  %v7473_v23 = vld [vmem:[%s10264_s12 + $0x8] sm:$0xff]  ;;  %v7484_v17 = vld [vmem:[%s10299_s6 + $0xe0] sm:$0xff] }
 0x5ff   : > { %v2875_v52 = vsel %vm1601_vm5, %v2871_v8, %v2872_v28  ;;  %v2948_v14 = vadd.f32 %v2932_v7, %v2878_v63  ;;  %v2970_v47 = vmul.f32 %v9208_v26, %v2950_v12  ;;  %v7485_v61 = vld [vmem:[%s10299_s6 + $0xe8] sm:$0xff]  ;;  %v7483_v7 = vld [vmem:[%s10299_s6 + $0xd8] sm:$0xff] }
 0x600   : > { %v2951_v44 = vadd.f32 %v2935_v54, %v2875_v52 }
 0x601   : > { %v2657_v6 = vpop.f32.mrf.mxu2  ;;  %v2990_v21 = vadd.f32 %v9218_v4, %v2970_v47  ;;  %v2968_v13 = vmul.f32 %v9208_v26, %v2948_v14 }
 0x602   : > { %v2824_v50 = vrot.slane %v2657_v6, 7  ;;  %v2971_v6 = vmul.f32 %v9208_v26, %v2951_v44 }
 0x603   : > { %v2733_v53 = vpop.f32.mrf.mxu0  ;;  %v3006_v54 = vmax.f32 %v2990_v21, 0.0  ;;  %v7491_v21 = vld [vmem:[%s10261_s9 + $0xf0] sm:$0xff] }
 0x604   : > { %v2827_v30 = vsel %vm969_vm2, %v2823_v3, %v2824_v50  ;;  %v2807_v48 = vpop.f32.mrf.mxu1  ;;  %v2921_v2 = vadd.f32 %v2733_v53, %v9084_v41  ;;  %v2949_v3 = vadd.f32 %v2933_v10, %v2877_v11  ;;  %v2991_v22 = vadd.f32 %v9218_v4, %v2971_v6  ;;  %v7478_v53 = vld [vmem:[%s10264_s12 + $0x30] sm:$0xff] }
 0x605   : > { %v2936_v33 = vadd.f32 %v2920_v46, %v2827_v30  ;;  %v2873_v16 = vrot.slane %v2807_v48, 1  ;;  %v7482_v11 = vld [vmem:[%s10299_s6 + $0xd0] sm:$0xff] }
 0x606   : > { %v2969_v56 = vmul.f32 %v9208_v26, %v2949_v3  ;;  %v3007_v8 = vmax.f32 %v2991_v22, 0.0  ;;  %v7493_v22 = vld [vmem:[%s10261_s9 + $0x100] sm:$0xff] }
 0x607   : > { %v2874_v58 = vsel %vm1601_vm5, %v2872_v28, %v2873_v16  ;;  %v2889_v37 = vsel %vm1601_vm5, %v2873_v16, %v2858_v18  ;;  %v2995_v16 = vmax.f32 %v2979_v36, 0.0 }
 0x608   : > { %v2952_v0 = vadd.f32 %v2936_v33, %v2874_v58  ;;  %v2905_v43 = vsel %vm1584_vm6, 0.0, %v2889_v37  ;;  %v2988_v58 = vadd.f32 %v9218_v4, %v2968_v13 }
 0x609   : > { %v2659_v25 = vpop.f32.mrf.mxu2 }
 0x60a   : > { %v2825_v35 = vrot.slane %v2659_v25, 7  ;;  %v2972_v40 = vmul.f32 %v9208_v26, %v2952_v0  ;;  %v3004_v59 = vmax.f32 %v2988_v58, 0.0  ;;  %v7487_v0 = vld [vmem:[%s10299_s6 + $0xf8] sm:$0xff]  ;;  %v7486_v25 = vld [vmem:[%s10299_s6 + $0xf0] sm:$0xff] }
 0x60b   : > { %v7495_v58 = vld [vmem:[%s10261_s9 + $0x110] sm:$0xff] }
 0x60c   : > { %v2826_v45 = vsel %vm969_vm2, %v2824_v50, %v2825_v35  ;;  %v2841_v51 = vsel %vm969_vm2, %v2825_v35, %v2810_v42  ;;  %v2888_v42 = vsel %vm1601_vm5, %v2858_v18, %v2859_v32  ;;  %v2992_v46 = vadd.f32 %v9218_v4, %v2972_v40  ;;  %v7718_v40 = vld [vmem:[%s10303_s3 + $0x3] ss:$0 sm:$0xff] }
 0x60d   : > { %v2842_v41 = vsel %vm937_vm3, 0.0, %v2841_v51  ;;  %v2937_v9 = vadd.f32 %v2921_v2, %v2826_v45  ;;  %v3020_v18 = vpack.c.bf16 %v3007_v8, %v3006_v54  ;;  %v7481_v45 = vld [vmem:[%s10299_s6 + $0xc8] sm:$0xff]  ;;  %v7480_v51 = vld [vmem:[%s10299_s6 + $0xc0] sm:$0xff]  ;;  %v7496_v8 = vld [vmem:[%s10261_s9 + $0x118] sm:$0xff] }
 0x60e   : > { %v2922_v39 = vadd.f32 %v2906_v60, %v2842_v41  ;;  %v3008_v30 = vmax.f32 %v2992_v46, 0.0  ;;  %v2989_v60 = vadd.f32 %v9218_v4, %v2969_v56 }
 0x60f   : > { %v2953_v55 = vadd.f32 %v2937_v9, %v2905_v43  ;;  %v7719_v9 = vld [vmem:[%s10304_s5 + $0x3] ss:$0 sm:$0xff] }
 0x610   : > { %v2938_v50 = vadd.f32 %v2922_v39, %v2888_v42  ;;  %v3005_v29 = vmax.f32 %v2989_v60, 0.0 }
 0x611   : > { %v2973_v20 = vmul.f32 %v9208_v26, %v2953_v55 }
 0x612   : > { %v2958_v15 = vmul.f32 %v9208_v26, %v2938_v50  ;;  %v3019_v52 = vpack.c.bf16 %v3005_v29, %v3004_v59  ;;  %v7479_v26 = vld [vmem:[%s10264_s12 + $0x38] sm:$0xff] }
 0x613   : > { %v2993_v32 = vadd.f32 %v9218_v4, %v2973_v20  ;;  %3119 = vmatpush.bf16.msra.mxu0 %v7479_v26  ;;  %7657 = vmatpush.bf16.msrb.mxu2 %v7479_v26 }
 0x614   : > { %v2978_v28 = vadd.f32 %v9218_v4, %v2958_v15  ;;  %v7477_v4 = vld [vmem:[%s10264_s12 + $0x28] sm:$0xff] }
 0x615   : > { %v3009_v48 = vmax.f32 %v2993_v32, 0.0  ;;  %v7490_v32 = vld [vmem:[%s10261_s9 + $0xe8] sm:$0xff] }
 0x616   : > { %v2994_v33 = vmax.f32 %v2978_v28, 0.0  ;;  %v7489_v28 = vld [vmem:[%s10261_s9 + $0xe0] sm:$0xff] }
 0x617   : > { %v3021_v5 = vpack.c.bf16 %v3009_v48, %v3008_v30  ;;  %3120 = vmatpush.bf16.msra.mxu0 %v7478_v53  ;;  %7658 = vmatpush.bf16.msrb.mxu2 %v7478_v53  ;;  %v7492_v30 = vld [vmem:[%s10261_s9 + $0xf8] sm:$0xff] }
 0x618   : > { %v3014_v57 = vpack.c.bf16 %v2995_v16, %v2994_v33  ;;  %v7488_v48 = vld [vmem:[%s10261_s9 + $0xd8] sm:$0xff]  ;;  %v7720_v33 = vld [vmem:[%s10259_s7 + $0x3] ss:$0 sm:$0xff] }
 0x619   : > { %3034 = vmatpush.bf16.msrb.mxu3 %v3021_v5  ;;  %v7721_v5 = vld [vmem:[%s10260_s8 + $0x3] ss:$0 sm:$0xff] }
 0x61b   : > { %3121 = vmatpush.bf16.msra.mxu0 %v7477_v4  ;;  %7659 = vmatpush.bf16.msrb.mxu2 %v7477_v4 }
 0x61d   : > { %3035 = vmatpush.bf16.msrb.mxu3 %v3020_v18 }
 0x621   : > { %3036 = vmatpush.bf16.msrb.mxu3 %v3019_v52  ;;  %v7494_v52 = vld [vmem:[%s10261_s9 + $0x108] sm:$0xff] }
 0x625   : > { %3037 = vmatpush.bf16.msrb.mxu3 %v9278_v24  ;;  %v7470_v24 = vld [vmem:[%s10265_s13] sm:$0xff] }
 0x629   : > { %3038 = vmatpush.bf16.msrb.mxu3 %v9260_v62  ;;  %v7476_v62 = vld [vmem:[%s10264_s12 + $0x20] sm:$0xff] }
 0x62a   : > { %3122 = vmatpush.bf16.msra.mxu0 %v7476_v62  ;;  %7660 = vmatpush.bf16.msrb.mxu2 %v7476_v62 }
 0x62d   : > { %3039 = vmatpush.bf16.msrb.mxu3 %v9244_v34  ;;  %v7475_v34 = vld [vmem:[%s10264_s12 + $0x18] sm:$0xff] }
 0x62e   : > { %3123 = vmatpush.bf16.msra.mxu0 %v7475_v34  ;;  %7661 = vmatpush.bf16.msrb.mxu2 %v7475_v34 }
 0x631   : > { %3040 = vmatpush.bf16.msrb.mxu3 %v9228_v49  ;;  %v7471_v49 = vld [vmem:[%s10265_s13 + $0x8] sm:$0xff] }
 0x632   : > { %3124 = vmatpush.bf16.msra.mxu0 %v7474_v27  ;;  %7662 = vmatpush.bf16.msrb.mxu2 %v7474_v27 }
 0x635   : > { %3041 = vmatpush.bf16.msrb.mxu3 %v3014_v57 }
 0x636   : > { %3125 = vmatpush.bf16.msra.mxu0 %v7473_v23  ;;  %7663 = vmatpush.bf16.msrb.mxu2 %v7473_v23 }
 0x638   : > { %3042 = vmatmul.bf16.vlgmr.msrb.gmra.mxu3 %v7470_v24 }
 0x639   : > { %3227 = vmatpush.bf16.msra.mxu3 %v7487_v0  ;;  %v7504_v0 = vld [vmem:[%s10299_s6 + $0x138] sm:$0xff] }
 0x63a   : > { %3126 = vmatpush.bf16.msra.mxu0 %v7472_v19  ;;  %7664 = vmatpush.bf16.msrb.mxu2 %v7472_v19 }
 0x63d   : > { %3228 = vmatpush.bf16.msra.mxu3 %v7486_v25 }
 0x63e   : > { %3306 = vmatpush.bf16.msra.mxu2 %v7490_v32 }
 0x641   : > { %3229 = vmatpush.bf16.msra.mxu3 %v7485_v61  ;;  %v7502_v61 = vld [vmem:[%s10299_s6 + $0x128] sm:$0xff] }
 0x642   : > { %3307 = vmatpush.bf16.msra.mxu2 %v7489_v28 }
 0x645   : > { %3230 = vmatpush.bf16.msra.mxu3 %v7484_v17 }
 0x646   : > { %3308 = vmatpush.bf16.msra.mxu2 %v7488_v48  ;;  %v7723_v48 = vld [vmem:[%s10304_s5 + $0x4] ss:$0 sm:$0xff] }
 0x648   : > { %3047 = vmatmul.bf16.gmra.mxu3 %v7471_v49 }
 0x649   : > { %3231 = vmatpush.bf16.msra.mxu3 %v7483_v7 }
 0x64d   : > { %3232 = vmatpush.bf16.msra.mxu3 %v7482_v11 }
 0x651   : > { %3233 = vmatpush.bf16.msra.mxu3 %v7481_v45  ;;  %v7497_v45 = vld [vmem:[%s10299_s6 + $0x100] sm:$0xff] }
 0x655   : > { %3234 = vmatpush.bf16.msra.mxu3 %v7480_v51 }
 0x659   : > { %3350 = vmatpush.bf16.msrb.mxu3 %v7493_v22 }
 0x65d   : > { %3351 = vmatpush.bf16.msrb.mxu3 %v7492_v30 }
 0x661   : > { %3352 = vmatpush.bf16.msrb.mxu3 %v7491_v21 }
 0x6bb   : > { %v3043_v1 = vpop.f32.mrf.mxu3 }
 0x6c3   : > { %v3045_v35 = vpop.f32.mrf.mxu3 }
 0x6c4   : > { %v3053_v10 = vpack.c.bf16 %v3045_v35, %v3043_v1  ;;  %v7503_v1 = vld [vmem:[%s10299_s6 + $0x130] sm:$0xff]  ;;  %v7501_v35 = vld [vmem:[%s10299_s6 + $0x120] sm:$0xff] }
 0x6c6   : > { %3127 = vmatmul.bf16.vlgmr.msra.gmra.mxu0 %v3053_v10  ;;  %v7500_v10 = vld [vmem:[%s10299_s6 + $0x118] sm:$0xff] }
 0x6cb   : > { %v3048_v44 = vpop.f32.mrf.mxu3 }
 0x6d3   : > { %v3050_v2 = vpop.f32.mrf.mxu3 }
 0x6d4   : > { %v3054_v37 = vpack.c.bf16 %v3050_v2, %v3048_v44  ;;  %v7499_v2 = vld [vmem:[%s10299_s6 + $0x110] sm:$0xff] }
 0x6d6   : > { %3132 = vmatmul.bf16.vlgmr.msrb.gmra.mxu2 %v3054_v37  ;;  %v7498_v37 = vld [vmem:[%s10299_s6 + $0x108] sm:$0xff] }
 0x6d7   : > { %3394 = vmatpush.bf16.msrb.mxu2 %v7496_v8 }
 0x6db   : > { %3395 = vmatpush.bf16.msrb.mxu2 %v7495_v58 }
 0x6df   : > { %3396 = vmatpush.bf16.msrb.mxu2 %v7494_v52 }
 0x743   : > { %v9403_v12 = vpop.f32.mrf.mxu0 }
 0x744   : > { %v3143_v41 = vmul.f32 %v7718_v40, %v9403_v12 }
 0x746   : > { %v3152_v63 = vadd.f32 %v7719_v9, %v3143_v41 }
 0x748   : > { %v3156_v42 = vmax.f32 %v3152_v63, 0.0 }
 0x74b   : > { %v9412_v38 = vpop.f32.mrf.mxu0 }
 0x74c   : > { %v3144_v43 = vmul.f32 %v7718_v40, %v9412_v38 }
 0x74e   : > { %v3153_v39 = vadd.f32 %v7719_v9, %v3144_v43 }
 0x750   : > { %v3157_v3 = vmax.f32 %v3153_v39, 0.0 }
 0x752   : > { %v3160_v6 = vpack.c.bf16 %v3157_v3, %v3156_v42 }
 0x754   : > { %3235 = vmatmul.bf16.vlgmr.msra.gmra.mxu3 %v3160_v6 }
 0x755   : > { %3537 = vmatpush.bf16.msra.mxu3 %v7504_v0 }
 0x759   : > { %v9415_v55 = vpop.f32.mrf.mxu2  ;;  %3538 = vmatpush.bf16.msra.mxu3 %v7503_v1 }
 0x75a   : > { %v3145_v50 = vmul.f32 %v7718_v40, %v9415_v55 }
 0x75c   : > { %v3154_v20 = vadd.f32 %v7719_v9, %v3145_v50 }
 0x75d   : > { %3539 = vmatpush.bf16.msra.mxu3 %v7502_v61 }
 0x75e   : > { %v3158_v15 = vmax.f32 %v3154_v20, 0.0 }
 0x761   : > { %v9418_v14 = vpop.f32.mrf.mxu2  ;;  %3540 = vmatpush.bf16.msra.mxu3 %v7501_v35  ;;  %v7507_v35 = vld [vmem:[%s10261_s9 + $0x130] sm:$0xff] }
 0x762   : > { %v3146_v46 = vmul.f32 %v7718_v40, %v9418_v14 }
 0x764   : > { %v3155_v47 = vadd.f32 %v7719_v9, %v3146_v46 }
 0x765   : > { %3541 = vmatpush.bf16.msra.mxu3 %v7500_v10  ;;  %v7510_v10 = vld [vmem:[%s10261_s9 + $0x148] sm:$0xff] }
 0x766   : > { %v3159_v36 = vmax.f32 %v3155_v47, 0.0  ;;  %3660 = vmatpush.bf16.msrb.mxu0 %v7510_v10 }
 0x768   : > { %v3161_v56 = vpack.c.bf16 %v3159_v36, %v3158_v15 }
 0x769   : > { %3542 = vmatpush.bf16.msra.mxu3 %v7499_v2  ;;  %v7509_v2 = vld [vmem:[%s10261_s9 + $0x140] sm:$0xff] }
 0x76a   : > { %3240 = vmatmul.bf16.gmra.mxu3 %v3161_v56  ;;  %v7722_v56 = vld [vmem:[%s10303_s3 + $0x4] ss:$0 sm:$0xff]  ;;  %3661 = vmatpush.bf16.msrb.mxu0 %v7509_v2 }
 0x76d   : > { %3543 = vmatpush.bf16.msra.mxu3 %v7498_v37  ;;  %v7512_v37 = vld [vmem:[%s10261_s9 + $0x158] sm:$0xff] }
 0x771   : > { %3544 = vmatpush.bf16.msra.mxu3 %v7497_v45  ;;  %v7511_v45 = vld [vmem:[%s10261_s9 + $0x150] sm:$0xff] }
 0x7d7   : > { %v3236_v13 = vpop.f32.mrf.mxu3 }
 0x7d8   : > { %v3251_v16 = vmul.f32 %v7720_v33, %v3236_v13 }
 0x7da   : > { %v3260_v57 = vadd.f32 %v7721_v5, %v3251_v16  ;;  %v9508_v16 = vadd.s32 24, %v8137_v31  ;;  %v5715_v31 = vld [vmem:[%s10271_s19] sm:$0x1] }
 0x7dc   : > { %v3264_v29 = vmax.f32 %v3260_v57, 0.0  ;;  %vm3423_vm7 = vcmp.ge.s32.totalorder %v9508_v16, 31 }
 0x7df   : > { %v3238_v60 = vpop.f32.mrf.mxu3 }
 0x7e0   : > { %v3252_v54 = vmul.f32 %v7720_v33, %v3238_v60 }
 0x7e2   : > { %v3261_v18 = vadd.f32 %v7721_v5, %v3252_v54 }
 0x7e4   : > { %v3265_v59 = vmax.f32 %v3261_v18, 0.0 }
 0x7e6   : > { %v3268_v26 = vpack.c.bf16 %v3265_v59, %v3264_v29 }
 0x7e8   : > { %6358 = vmatmul.msk.bf16.vlgmr.msra.gmra.mxu2 %vm1299_vm4, %v3268_v26  ;;  %6378 = vmatmul.msk.bf16.vlgmr.msrb.gmra.mxu3 %vm1299_vm4, %v3268_v26 }
 0x7e9   : > { %3616 = vmatpush.bf16.msra.mxu2 %v7507_v35 }
 0x7ed   : > { %v3241_v53 = vpop.f32.mrf.mxu3 }
 0x7ee   : > { %v3253_v4 = vmul.f32 %v7720_v33, %v3241_v53 }
 0x7f0   : > { %v3262_v24 = vadd.f32 %v7721_v5, %v3253_v4 }
 0x7f2   : > { %v3266_v27 = vmax.f32 %v3262_v24, 0.0 }
 0x7f5   : > { %v3243_v62 = vpop.f32.mrf.mxu3 }
 0x7f6   : > { %v3254_v34 = vmul.f32 %v7720_v33, %v3243_v62 }
 0x7f8   : > { %v3263_v49 = vadd.f32 %v7721_v5, %v3254_v34 }
 0x7fa   : > { %v3267_v23 = vmax.f32 %v3263_v49, 0.0 }
 0x7fc   : > { %v3269_v19 = vpack.c.bf16 %v3267_v23, %v3266_v27 }
 0x7fe   : > { %6359 = vmatmul.msk.bf16.gmra.mxu2 %vm1299_vm4, %v3269_v19  ;;  %6379 = vmatmul.msk.bf16.gmra.mxu3 %vm1299_vm4, %v3269_v19 }
 0x80e   : > { %6398 = vmatmul.msk.bf16.vlgmr.msrb.gmra.mxu2 %vm1299_vm4, %v3268_v26 }
 0x81e   : > { %6399 = vmatmul.msk.bf16.gmra.mxu2 %vm1299_vm4, %v3269_v19 }
 0x86b   : > { %v3310_v25 = vpop.f32.mrf.mxu2  ;;  %v3354_v7 = vpop.f32.mrf.mxu3 }
 0x86c   : > { %v3408_v9 = vrot.slane %v3310_v25, 7  ;;  %v3436_v6 = vadd.f32 %v3354_v7, %v9403_v12  ;;  %v7505_v7 = vld [vmem:[%s10261_s9 + $0x120] sm:$0xff] }
 0x873   : > { %v3312_v17 = vpop.f32.mrf.mxu2  ;;  %v3356_v40 = vpop.f32.mrf.mxu3 }
 0x874   : > { %v3409_v20 = vrot.slane %v3312_v17, 7  ;;  %v3437_v15 = vadd.f32 %v3356_v40, %v9412_v38  ;;  %v7513_v17 = vld [vmem:[%s10261_s9 + $0x160] sm:$0xff] }
 0x875   : > { %3704 = vmatpush.bf16.msra.mxu1 %v7513_v17  ;;  %v7724_v40 = vld [vmem:[%s10259_s7 + $0x4] ss:$0 sm:$0xff] }
 0x876   : > { %v3414_v32 = vsel %vm969_vm2, %v3408_v9, %v3409_v20 }
 0x877   : > { %v3441_v12 = vadd.f32 %v3437_v15, %v3414_v32 }
 0x879   : > { %3705 = vmatpush.bf16.msra.mxu1 %v7512_v37  ;;  %v7727_v37 = vld [vmem:[%s10304_s5 + $0x5] ss:$0 sm:$0xff] }
 0x87d   : > { %3706 = vmatpush.bf16.msra.mxu1 %v7511_v45 }
 0x881   : > { %v3315_v44 = vpop.f32.mrf.mxu2  ;;  %v3359_v50 = vpop.f32.mrf.mxu3 }
 0x882   : > { %v3410_v21 = vrot.slane %v3315_v44, 7  ;;  %v3438_v5 = vadd.f32 %v3359_v50, %v9415_v55  ;;  %v7506_v44 = vld [vmem:[%s10261_s9 + $0x128] sm:$0xff] }
 0x883   : > { %3617 = vmatpush.bf16.msra.mxu2 %v7506_v44 }
 0x884   : > { %v3413_v57 = vsel %vm969_vm2, %v3409_v20, %v3410_v21 }
 0x885   : > { %v3442_v52 = vadd.f32 %v3438_v5, %v3413_v57 }
 0x887   : > { %3618 = vmatpush.bf16.msra.mxu2 %v7505_v7 }
 0x889   : > { %v3317_v11 = vpop.f32.mrf.mxu2  ;;  %v3361_v13 = vpop.f32.mrf.mxu3 }
 0x88a   : > { %v3411_v41 = vrot.slane %v3317_v11, 7  ;;  %v3439_v54 = vadd.f32 %v3361_v13, %v9418_v14  ;;  %v7508_v11 = vld [vmem:[%s10261_s9 + $0x138] sm:$0xff] }
 0x88b   : > { %3662 = vmatpush.bf16.msrb.mxu0 %v7508_v11  ;;  %v7517_v13 = vld [vmem:[%s10299_s6 + $0x158] sm:$0xff] }
 0x88c   : > { %v3415_v63 = vsel %vm969_vm2, %v3411_v41, %v3408_v9  ;;  %v3412_v58 = vsel %vm969_vm2, %v3410_v21, %v3411_v41  ;;  %v7725_v9 = vld [vmem:[%s10260_s8 + $0x4] ss:$0 sm:$0xff]  ;;  %v7519_v21 = vld [vmem:[%s10299_s6 + $0x168] sm:$0xff] }
 0x88d   : > { %v3416_v39 = vsel %vm937_vm3, 0.0, %v3415_v63  ;;  %v3443_v55 = vadd.f32 %v3439_v54, %v3412_v58  ;;  %v7515_v54 = vld [vmem:[%s10299_s6 + $0x148] sm:$0xff] }
 0x88e   : > { %v3440_v47 = vadd.f32 %v3436_v6, %v3416_v39 }
 0x891   : > { %v3398_v51 = vpop.f32.mrf.mxu2 }
 0x892   : > { %v3424_v42 = vrot.slane %v3398_v51, 1 }
 0x899   : > { %v3400_v43 = vpop.f32.mrf.mxu2 }
 0x89a   : > { %v3425_v3 = vrot.slane %v3400_v43, 1 }
 0x89c   : > { %v3430_v46 = vsel %vm1601_vm5, %v3424_v42, %v3425_v3 }
 0x89d   : > { %v9492_v36 = vadd.f32 %v3440_v47, %v3430_v46 }
 0x89f   : > { %v3453_v30 = vmul.f32 %v7722_v56, %v9492_v36 }
 0x8a1   : > { %v3403_v22 = vpop.f32.mrf.mxu2  ;;  %v3462_v8 = vadd.f32 %v7723_v48, %v3453_v30  ;;  %v7521_v30 = vld [vmem:[%s10299_s6 + $0x178] sm:$0xff] }
 0x8a2   : > { %v3426_v28 = vrot.slane %v3403_v22, 1  ;;  %3843 = vmatpush.bf16.msrb.mxu3 %v7521_v30 }
 0x8a3   : > { %v3466_v26 = vmax.f32 %v3462_v8, 0.0  ;;  %v7516_v8 = vld [vmem:[%s10299_s6 + $0x150] sm:$0xff] }
 0x8a4   : > { %v3429_v38 = vsel %vm1601_vm5, %v3425_v3, %v3426_v28 }
 0x8a5   : > { %v9505_v33 = vadd.f32 %v3441_v12, %v3429_v38  ;;  %v7518_v38 = vld [vmem:[%s10299_s6 + $0x160] sm:$0xff] }
 0x8a7   : > { %v3454_v60 = vmul.f32 %v7722_v56, %v9505_v33 }
 0x8a9   : > { %v3463_v18 = vadd.f32 %v7723_v48, %v3454_v60  ;;  %v3405_v29 = vpop.f32.mrf.mxu2 }
 0x8aa   : > { %v3427_v59 = vrot.slane %v3405_v29, 1 }
 0x8ab   : > { %v3467_v53 = vmax.f32 %v3463_v18, 0.0  ;;  %v7514_v18 = vld [vmem:[%s10299_s6 + $0x140] sm:$0xff] }
 0x8ac   : > { %v3428_v4 = vsel %vm1601_vm5, %v3426_v28, %v3427_v59  ;;  %v3431_v62 = vsel %vm1601_vm5, %v3427_v59, %v3424_v42 }
 0x8ad   : > { %v3435_v14 = vsel %vm3423_vm7, 0.0, %v3431_v62  ;;  %v9524_v24 = vadd.f32 %v3442_v52, %v3428_v4  ;;  %v3470_v34 = vpack.c.bf16 %v3467_v53, %v3466_v26 }
 0x8ae   : > { %v9526_v49 = vadd.f32 %v3443_v55, %v3435_v14 }
 0x8af   : > { %3545 = vmatmul.bf16.vlgmr.msra.gmra.mxu3 %v3470_v34  ;;  %v3455_v27 = vmul.f32 %v7722_v56, %v9524_v24 }
 0x8b0   : > { %v3456_v23 = vmul.f32 %v7722_v56, %v9526_v49 }
 0x8b1   : > { %v3464_v19 = vadd.f32 %v7723_v48, %v3455_v27 }
 0x8b2   : > { %v3465_v0 = vadd.f32 %v7723_v48, %v3456_v23  ;;  %v7520_v48 = vld [vmem:[%s10299_s6 + $0x170] sm:$0xff] }
 0x8b3   : > { %v3468_v25 = vmax.f32 %v3464_v19, 0.0  ;;  %3844 = vmatpush.bf16.msrb.mxu3 %v7520_v48 }
 0x8b4   : > { %v3469_v1 = vmax.f32 %v3465_v0, 0.0 }
 0x8b6   : > { %v3471_v61 = vpack.c.bf16 %v3469_v1, %v3468_v25  ;;  %v7726_v1 = vld [vmem:[%s10303_s3 + $0x5] ss:$0 sm:$0xff] }
 0x8b7   : > { %3845 = vmatpush.bf16.msrb.mxu3 %v7519_v21 }
 0x8bb   : > { %3846 = vmatpush.bf16.msrb.mxu3 %v7518_v38 }
 0x8bf   : > { %3550 = vmatmul.bf16.gmra.mxu3 %v3471_v61 }
 0x8c0   : > { %3847 = vmatpush.bf16.msrb.mxu3 %v7517_v13  ;;  %v7524_v13 = vld [vmem:[%s10261_s9 + $0x178] sm:$0xff] }
 0x8c1   : > { %3922 = vmatpush.bf16.msrb.mxu2 %v7524_v13 }
 0x8c4   : > { %3848 = vmatpush.bf16.msrb.mxu3 %v7516_v8  ;;  %v7530_v8 = vld [vmem:[%s10261_s9 + $0x1a8] sm:$0xff] }
 0x8c5   : > { %4010 = vmatpush.bf16.msrb.mxu1 %v7530_v8  ;;  %v7535_v8 = vld [vmem:[%s10264_s12 + $0x60] sm:$0xff] }
 0x8c8   : > { %3849 = vmatpush.bf16.msrb.mxu3 %v7515_v54  ;;  %v7529_v54 = vld [vmem:[%s10261_s9 + $0x1a0] sm:$0xff] }
 0x8c9   : > { %4011 = vmatpush.bf16.msrb.mxu1 %v7529_v54 }
 0x8cc   : > { %3850 = vmatpush.bf16.msrb.mxu3 %v7514_v18  ;;  %v7525_v18 = vld [vmem:[%s10261_s9 + $0x180] sm:$0xff] }
 0x932   : > { %v3546_v51 = vpop.f32.mrf.mxu3 }
 0x933   : > { %v3561_v41 = vmul.f32 %v7724_v40, %v3546_v51 }
 0x935   : > { %v3570_v43 = vadd.f32 %v7725_v9, %v3561_v41 }
 0x937   : > { %v3574_v3 = vmax.f32 %v3570_v43, 0.0 }
 0x93a   : > { %v3548_v63 = vpop.f32.mrf.mxu3 }
 0x93b   : > { %v3562_v39 = vmul.f32 %v7724_v40, %v3548_v63 }
 0x93d   : > { %v3571_v42 = vadd.f32 %v7725_v9, %v3562_v39 }
 0x93f   : > { %v3575_v6 = vmax.f32 %v3571_v42, 0.0 }
 0x941   : > { %v3578_v50 = vpack.c.bf16 %v3575_v6, %v3574_v3 }
 0x942   : > { %v3551_v20 = vpop.f32.mrf.mxu3 }
 0x943   : > { %6470 = vmatmul.msk.bf16.vlgmr.msra.gmra.mxu2 %vm1299_vm4, %v3578_v50  ;;  %6490 = vmatmul.msk.bf16.vlgmr.msrb.gmra.mxu0 %vm1299_vm4, %v3578_v50  ;;  %v3563_v46 = vmul.f32 %v7724_v40, %v3551_v20 }
 0x944   : > { %6510 = vmatmul.msk.bf16.vlgmr.msra.gmra.mxu1 %vm1299_vm4, %v3578_v50 }
 0x945   : > { %v3572_v15 = vadd.f32 %v7725_v9, %v3563_v46 }
 0x947   : > { %v3576_v22 = vmax.f32 %v3572_v15, 0.0 }
 0x94a   : > { %v3553_v47 = vpop.f32.mrf.mxu3 }
 0x94b   : > { %v3564_v56 = vmul.f32 %v7724_v40, %v3553_v47 }
 0x94d   : > { %v3573_v32 = vadd.f32 %v7725_v9, %v3564_v56 }
 0x94f   : > { %v3577_v28 = vmax.f32 %v3573_v32, 0.0 }
 0x951   : > { %v3579_v12 = vpack.c.bf16 %v3577_v28, %v3576_v22 }
 0x953   : > { %6471 = vmatmul.msk.bf16.gmra.mxu2 %vm1299_vm4, %v3579_v12  ;;  %6491 = vmatmul.msk.bf16.gmra.mxu0 %vm1299_vm4, %v3579_v12 }
 0x954   : > { %6511 = vmatmul.msk.bf16.gmra.mxu1 %vm1299_vm4, %v3579_v12 }
 0x9c0   : > { %v3664_v60 = vpop.f32.mrf.mxu0 }
 0x9c1   : > { %v3708_v5 = vpop.f32.mrf.mxu1  ;;  %v3742_v17 = vadd.f32 %v3664_v60, %v9492_v36  ;;  %v7523_v60 = vld [vmem:[%s10261_s9 + $0x170] sm:$0xff] }
 0x9c2   : > { %3923 = vmatpush.bf16.msrb.mxu2 %v7523_v60 }
 0x9c6   : > { %v3620_v57 = vpop.f32.mrf.mxu2 }
 0x9c7   : > { %v3718_v53 = vrot.slane %v3620_v57, 7  ;;  %v7526_v57 = vld [vmem:[%s10261_s9 + $0x188] sm:$0xff] }
 0x9c8   : > { %v3666_v59 = vpop.f32.mrf.mxu0 }
 0x9c9   : > { %v3710_v58 = vpop.f32.mrf.mxu1  ;;  %v3743_v14 = vadd.f32 %v3666_v59, %v9505_v33  ;;  %v3730_v33 = vrot.slane %v3708_v5, 1  ;;  %v7527_v5 = vld [vmem:[%s10261_s9 + $0x190] sm:$0xff] }
 0x9ca   : > { %v3731_v34 = vrot.slane %v3710_v58, 1  ;;  %3966 = vmatpush.bf16.msra.mxu0 %v7527_v5  ;;  %v7522_v58 = vld [vmem:[%s10261_s9 + $0x168] sm:$0xff] }
 0x9cb   : > { %3924 = vmatpush.bf16.msrb.mxu2 %v7522_v58 }
 0x9cc   : > { %v3736_v11 = vsel %vm1601_vm5, %v3730_v33, %v3731_v34 }
 0x9ce   : > { %v3622_v29 = vpop.f32.mrf.mxu2  ;;  %3967 = vmatpush.bf16.msra.mxu0 %v7526_v57 }
 0x9cf   : > { %v3719_v52 = vrot.slane %v3622_v29, 7  ;;  %v7528_v29 = vld [vmem:[%s10261_s9 + $0x198] sm:$0xff] }
 0x9d0   : > { %v3669_v27 = vpop.f32.mrf.mxu0  ;;  %4012 = vmatpush.bf16.msrb.mxu1 %v7528_v29 }
 0x9d1   : > { %v3713_v26 = vpop.f32.mrf.mxu1  ;;  %v3724_v4 = vsel %vm969_vm2, %v3718_v53, %v3719_v52  ;;  %v3744_v42 = vadd.f32 %v3669_v27, %v9524_v24 }
 0x9d2   : > { %v3732_v62 = vrot.slane %v3713_v26, 1  ;;  %v3747_v23 = vadd.f32 %v3743_v14, %v3724_v4  ;;  %3968 = vmatpush.bf16.msra.mxu0 %v7525_v18 }
 0x9d4   : > { %v3735_v19 = vsel %vm1601_vm5, %v3731_v34, %v3732_v62 }
 0x9d5   : > { %v9598_v25 = vadd.f32 %v3747_v23, %v3735_v19 }
 0x9d6   : > { %v3625_v55 = vpop.f32.mrf.mxu2 }
 0x9d7   : > { %v3760_v2 = vmul.f32 %v7726_v1, %v9598_v25  ;;  %v3720_v45 = vrot.slane %v3625_v55, 7 }
 0x9d8   : > { %v3671_v36 = vpop.f32.mrf.mxu0 }
 0x9d9   : > { %v3715_v10 = vpop.f32.mrf.mxu1  ;;  %v3769_v9 = vadd.f32 %v7727_v37, %v3760_v2  ;;  %v3745_v63 = vadd.f32 %v3671_v36, %v9526_v49  ;;  %v3723_v39 = vsel %vm969_vm2, %v3719_v52, %v3720_v45  ;;  %v7728_v52 = vld [vmem:[%s10259_s7 + $0x5] ss:$0 sm:$0xff] }
 0x9da   : > { %v3733_v51 = vrot.slane %v3715_v10, 1  ;;  %v3748_v46 = vadd.f32 %v3744_v42, %v3723_v39  ;;  %v7537_v42 = vld [vmem:[%s10264_s12 + $0x70] sm:$0xff] }
 0x9db   : > { %v3773_v20 = vmax.f32 %v3769_v9, 0.0  ;;  %v7538_v9 = vld [vmem:[%s10264_s12 + $0x78] sm:$0xff] }
 0x9dc   : > { %v3737_v3 = vsel %vm1601_vm5, %v3733_v51, %v3730_v33  ;;  %v3734_v15 = vsel %vm1601_vm5, %v3732_v62, %v3733_v51  ;;  %4168 = vmatpush.bf16.msra.mxu2 %v7538_v9  ;;  %v7542_v9 = vld [vmem:[%s10299_s6 + $0x198] sm:$0xff] }
 0x9dd   : > { %v3741_v49 = vsel %vm3423_vm7, 0.0, %v3737_v3  ;;  %v9631_v22 = vadd.f32 %v3748_v46, %v3734_v15 }
 0x9de   : > { %v3627_v0 = vpop.f32.mrf.mxu2 }
 0x9df   : > { %v3721_v61 = vrot.slane %v3627_v0, 7  ;;  %v3761_v28 = vmul.f32 %v7726_v1, %v9631_v22 }
 0x9e0   : > { %4169 = vmatpush.bf16.msra.mxu2 %v7537_v42 }
 0x9e1   : > { %v3725_v35 = vsel %vm969_vm2, %v3721_v61, %v3718_v53  ;;  %v3722_v41 = vsel %vm969_vm2, %v3720_v45, %v3721_v61  ;;  %v3770_v30 = vadd.f32 %v7727_v37, %v3761_v28  ;;  %v7729_v53 = vld [vmem:[%s10260_s8 + $0x5] ss:$0 sm:$0xff] }
 0x9e2   : > { %v3726_v44 = vsel %vm937_vm3, 0.0, %v3725_v35  ;;  %v3749_v6 = vadd.f32 %v3745_v63, %v3722_v41 }
 0x9e3   : > { %v3746_v7 = vadd.f32 %v3742_v17, %v3726_v44  ;;  %v3774_v21 = vmax.f32 %v3770_v30, 0.0 }
 0x9e4   : > { %v9629_v56 = vadd.f32 %v3749_v6, %v3741_v49 }
 0x9e5   : > { %v9614_v40 = vadd.f32 %v3746_v7, %v3736_v11 }
 0x9e6   : > { %v3762_v24 = vmul.f32 %v7726_v1, %v9629_v56 }
 0x9e7   : > { %v3759_v43 = vmul.f32 %v7726_v1, %v9614_v40 }
 0x9e8   : > { %v3771_v12 = vadd.f32 %v7727_v37, %v3762_v24 }
 0x9e9   : > { %v3768_v50 = vadd.f32 %v7727_v37, %v3759_v43 }
 0x9ea   : > { %v3775_v48 = vmax.f32 %v3771_v12, 0.0 }
 0x9eb   : > { %v3772_v47 = vmax.f32 %v3768_v50, 0.0 }
 0x9ec   : > { %v3777_v38 = vpack.c.bf16 %v3775_v48, %v3774_v21 }
 0x9ed   : > { %v3776_v32 = vpack.c.bf16 %v3773_v20, %v3772_v47 }
 0x9ef   : > { %3851 = vmatmul.bf16.vlgmr.msrb.gmra.mxu3 %v3776_v32  ;;  %v7536_v32 = vld [vmem:[%s10264_s12 + $0x68] sm:$0xff] }
 0x9f0   : > { %4170 = vmatpush.bf16.msra.mxu2 %v7536_v32 }
 0x9f4   : > { %4171 = vmatpush.bf16.msra.mxu2 %v7535_v8  ;;  %v7734_v8 = vld [vmem:[%s10259_s7 + $0x6] ss:$0 sm:$0xff] }
 0x9ff   : > { %3856 = vmatmul.bf16.gmra.mxu3 %v3777_v38 }
 0xa72   : > { %v3852_v59 = vpop.f32.mrf.mxu3 }
 0xa73   : > { %v3867_v26 = vmul.f32 %v7728_v52, %v3852_v59 }
 0xa75   : > { %v3876_v4 = vadd.f32 %v7729_v53, %v3867_v26 }
 0xa77   : > { %v3880_v34 = vmax.f32 %v3876_v4, 0.0 }
 0xa7a   : > { %v3854_v55 = vpop.f32.mrf.mxu3 }
 0xa7b   : > { %v3868_v62 = vmul.f32 %v7728_v52, %v3854_v55 }
 0xa7d   : > { %v3877_v14 = vadd.f32 %v7729_v53, %v3868_v62  ;;  %v7731_v62 = vld [vmem:[%s10263_s11 + $0x1] ss:$0 sm:$0xff] }
 0xa7f   : > { %v3881_v27 = vmax.f32 %v3877_v14, 0.0 }
 0xa81   : > { %v3884_v23 = vpack.c.bf16 %v3881_v27, %v3880_v34 }
 0xa82   : > { %v3857_v19 = vpop.f32.mrf.mxu3 }
 0xa83   : > { %6582 = vmatmul.msk.bf16.vlgmr.msrb.gmra.mxu2 %vm1299_vm4, %v3884_v23  ;;  %6602 = vmatmul.msk.bf16.vlgmr.msra.gmra.mxu0 %vm1299_vm4, %v3884_v23  ;;  %v3869_v0 = vmul.f32 %v7728_v52, %v3857_v19  ;;  %v7533_v19 = vld [vmem:[%s10264_s12 + $0x50] sm:$0xff] }
 0xa84   : > { %6622 = vmatmul.msk.bf16.vlgmr.msrb.gmra.mxu1 %vm1299_vm4, %v3884_v23 }
 0xa85   : > { %v3878_v61 = vadd.f32 %v7729_v53, %v3869_v0 }
 0xa87   : > { %v3882_v33 = vmax.f32 %v3878_v61, 0.0 }
 0xa8a   : > { %v3859_v1 = vpop.f32.mrf.mxu3 }
 0xa8b   : > { %v3870_v17 = vmul.f32 %v7728_v52, %v3859_v1 }
 0xa8d   : > { %v3879_v35 = vadd.f32 %v7729_v53, %v3870_v17 }
 0xa8f   : > { %v3883_v10 = vmax.f32 %v3879_v35, 0.0 }
 0xa91   : > { %v3885_v44 = vpack.c.bf16 %v3883_v10, %v3882_v33  ;;  %v7532_v33 = vld [vmem:[%s10264_s12 + $0x48] sm:$0xff] }
 0xa93   : > { %6583 = vmatmul.msk.bf16.gmra.mxu2 %vm1299_vm4, %v3885_v44  ;;  %6603 = vmatmul.msk.bf16.gmra.mxu0 %vm1299_vm4, %v3885_v44 }
 0xa94   : > { %6623 = vmatmul.msk.bf16.gmra.mxu1 %vm1299_vm4, %v3885_v44 }
 0xb00   : > { %v3970_v2 = vpop.f32.mrf.mxu0 }
 0xb01   : > { %v4014_v37 = vpop.f32.mrf.mxu1  ;;  %v4048_v54 = vadd.f32 %v3970_v2, %v9614_v40  ;;  %v7534_v40 = vld [vmem:[%s10264_s12 + $0x58] sm:$0xff] }
 0xb02   : > { %v4036_v30 = vrot.slane %v4014_v37, 1  ;;  %4172 = vmatpush.bf16.msra.mxu2 %v7534_v40  ;;  %v7558_v40 = vld [vmem:[%s10299_s6 + $0x1d0] sm:$0xff] }
 0xb06   : > { %v3926_v7 = vpop.f32.mrf.mxu2  ;;  %4173 = vmatpush.bf16.msra.mxu2 %v7533_v19 }
 0xb07   : > { %v4024_v6 = vrot.slane %v3926_v7, 7  ;;  %v4082_v7 = vld [vmem:[%s10266_s14] sm:$0xf] }
 0xb08   : > { %v3972_v11 = vpop.f32.mrf.mxu0 }
 0xb09   : > { %v4016_v45 = vpop.f32.mrf.mxu1  ;;  %v4049_v24 = vadd.f32 %v3972_v11, %v9598_v25  ;;  %v7730_v25 = vld [vmem:[%s10262_s10 + $0x1] ss:$0 sm:$0xff] }
 0xb0a   : > { %v4037_v28 = vrot.slane %v4016_v45, 1  ;;  %4174 = vmatpush.bf16.msra.mxu2 %v7532_v33  ;;  %v7531_v11 = vld [vmem:[%s10264_s12 + $0x40] sm:$0xff]  ;;  %v7546_v45 = vld [vmem:[%s10299_s6 + $0x1b8] sm:$0xff] }
 0xb0b   : > { %4260 = vmatpush.bf16.msrb.mxu0 %v7546_v45 }
 0xb0c   : > { %v4042_v55 = vsel %vm1601_vm5, %v4036_v30, %v4037_v28 }
 0xb0e   : > { %v3928_v36 = vpop.f32.mrf.mxu2  ;;  %4175 = vmatpush.bf16.msra.mxu2 %v7531_v11 }
 0xb0f   : > { %v4025_v43 = vrot.slane %v3928_v36, 7  ;;  %v7545_v36 = vld [vmem:[%s10299_s6 + $0x1b0] sm:$0xff] }
 0xb10   : > { %v3975_v41 = vpop.f32.mrf.mxu0  ;;  %4261 = vmatpush.bf16.msrb.mxu0 %v7545_v36 }
 0xb11   : > { %v4019_v51 = vpop.f32.mrf.mxu1  ;;  %v4050_v3 = vadd.f32 %v3975_v41, %v9631_v22  ;;  %v4030_v49 = vsel %vm969_vm2, %v4024_v6, %v4025_v43  ;;  %v7543_v41 = vld [vmem:[%s10299_s6 + $0x1a0] sm:$0xff] }
 0xb12   : > { %v4038_v46 = vrot.slane %v4019_v51, 1  ;;  %v4053_v48 = vadd.f32 %v4049_v24, %v4030_v49  ;;  %v7544_v51 = vld [vmem:[%s10299_s6 + $0x1a8] sm:$0xff] }
 0xb14   : > { %v4041_v13 = vsel %vm1601_vm5, %v4037_v28, %v4038_v46  ;;  %4262 = vmatpush.bf16.msrb.mxu0 %v7544_v51 }
 0xb15   : > { %v4057_v29 = vadd.f32 %v4053_v48, %v4041_v13  ;;  %v7547_v48 = vld [vmem:[%s10261_s9 + $0x1b0] sm:$0xff]  ;;  %v7554_v13 = vld [vmem:[%s10261_s9 + $0x1e8] sm:$0xff] }
 0xb16   : > { %v3931_v63 = vpop.f32.mrf.mxu2 }
 0xb17   : > { %v4026_v39 = vrot.slane %v3931_v63, 7  ;;  %v4066_v34 = vmul.f32 %v7730_v25, %v4057_v29  ;;  %v7541_v63 = vld [vmem:[%s10299_s6 + $0x190] sm:$0xff] }
 0xb18   : > { %v3977_v12 = vpop.f32.mrf.mxu0  ;;  %4263 = vmatpush.bf16.msrb.mxu0 %v7543_v41  ;;  %v7565_v41 = vld [vmem:[%s10261_s9 + $0x200] sm:$0xff] }
 0xb19   : > { %v4029_v50 = vsel %vm969_vm2, %v4025_v43, %v4026_v39  ;;  %v4021_v20 = vpop.f32.mrf.mxu1  ;;  %v4051_v60 = vadd.f32 %v3977_v12, %v9629_v56  ;;  %v4075_v35 = vadd.f32 %v7731_v62, %v4066_v34  ;;  %v7548_v12 = vld [vmem:[%s10261_s9 + $0x1b8] sm:$0xff]  ;;  %v7569_v34 = vld [vmem:[%s10261_s9 + $0x220] sm:$0xff] }
 0xb1a   : > { %v4054_v47 = vadd.f32 %v4050_v3, %v4029_v50  ;;  %v4039_v15 = vrot.slane %v4021_v20, 1  ;;  %v7540_v3 = vld [vmem:[%s10299_s6 + $0x188] sm:$0xff]  ;;  %v7549_v50 = vld [vmem:[%s10261_s9 + $0x1c0] sm:$0xff]  ;;  %v7552_v20 = vld [vmem:[%s10261_s9 + $0x1d8] sm:$0xff] }
 0xb1b   : > { %v4079_v2 = vmax.f32 %v4075_v35, 0.0  ;;  %4358 = vmatpush.bf16.msra.mxu1 %v7552_v20  ;;  %v7738_v20 = vld [vmem:[%s10259_s7 + $0x7] ss:$0 sm:$0xff] }
 0xb1c   : > { %v4040_v22 = vsel %vm1601_vm5, %v4038_v46, %v4039_v15  ;;  %v4043_v57 = vsel %vm1601_vm5, %v4039_v15, %v4036_v30  ;;  %4264 = vmatpush.bf16.msrb.mxu0 %v7542_v9  ;;  %v7732_v46 = vld [vmem:[%s10303_s3 + $0x6] ss:$0 sm:$0xff]  ;;  %v7551_v30 = vld [vmem:[%s10261_s9 + $0x1d0] sm:$0xff]  ;;  %v7568_v9 = vld [vmem:[%s10261_s9 + $0x218] sm:$0xff] }
 0xb1d   : > { %v4058_v21 = vadd.f32 %v4054_v47, %v4040_v22  ;;  %v4047_v56 = vsel %vm3423_vm7, 0.0, %v4043_v57  ;;  %v7733_v47 = vld [vmem:[%s10304_s5 + $0x6] ss:$0 sm:$0xff] }
 0xb1e   : > { %v3933_v38 = vpop.f32.mrf.mxu2 }
 0xb1f   : > { %v4027_v5 = vrot.slane %v3933_v38, 7  ;;  %v4067_v59 = vmul.f32 %v7730_v25, %v4058_v21  ;;  %4359 = vmatpush.bf16.msra.mxu1 %v7551_v30  ;;  %v7550_v21 = vld [vmem:[%s10261_s9 + $0x1c8] sm:$0xff]  ;;  %v7555_v38 = vld [vmem:[%s10261_s9 + $0x1f0] sm:$0xff] }
 0xb20   : > { %4265 = vmatpush.bf16.msrb.mxu0 %v7541_v63  ;;  %v7571_v63 = vld [vmem:[%s10261_s9 + $0x230] sm:$0xff] }
 0xb21   : > { %v4028_v58 = vsel %vm969_vm2, %v4026_v39, %v4027_v5  ;;  %v4031_v18 = vsel %vm969_vm2, %v4027_v5, %v4024_v6  ;;  %v4076_v23 = vadd.f32 %v7731_v62, %v4067_v59  ;;  %v7539_v6 = vld [vmem:[%s10299_s6 + $0x180] sm:$0xff]  ;;  %v7563_v59 = vld [vmem:[%s10299_s6 + $0x1f8] sm:$0xff]  ;;  %v7575_v30 = vld [vmem:[%s10299_s6 + $0x210] sm:$0xff] }
 0xb22   : > { %v4032_v52 = vsel %vm937_vm3, 0.0, %v4031_v18  ;;  %v4055_v26 = vadd.f32 %v4051_v60, %v4028_v58  ;;  %v7553_v5 = vld [vmem:[%s10261_s9 + $0x1e0] sm:$0xff]  ;;  %4491 = vmatpush.bf16.msrb.mxu2 %v7563_v59 }
 0xb23   : > { %v4052_v53 = vadd.f32 %v4048_v54, %v4032_v52  ;;  %v4080_v61 = vmax.f32 %v4076_v23, 0.0  ;;  %4360 = vmatpush.bf16.msra.mxu1 %v7550_v21  ;;  %v7562_v52 = vld [vmem:[%s10299_s6 + $0x1f0] sm:$0xff]  ;;  %v7573_v21 = vld [vmem:[%s10299_s6 + $0x200] sm:$0xff] }
 0xb24   : > { %v4059_v4 = vadd.f32 %v4055_v26, %v4047_v56  ;;  %4266 = vmatpush.bf16.msrb.mxu0 %v7540_v3  ;;  %v7561_v26 = vld [vmem:[%s10299_s6 + $0x1e8] sm:$0xff]  ;;  %v7560_v56 = vld [vmem:[%s10299_s6 + $0x1e0] sm:$0xff]  ;;  %v7580_v3 = vld [vmem:[%s10299_s6 + $0x238] sm:$0xff] }
 0xb25   : > { %v4056_v14 = vadd.f32 %v4052_v53, %v4042_v55  ;;  %v7559_v53 = vld [vmem:[%s10299_s6 + $0x1d8] sm:$0xff]  ;;  %v7557_v55 = vld [vmem:[%s10299_s6 + $0x1c8] sm:$0xff] }
 0xb26   : > { %v4068_v27 = vmul.f32 %v7730_v25, %v4059_v4  ;;  %4492 = vmatpush.bf16.msrb.mxu2 %v7562_v52 }
 0xb27   : > { %v4065_v16 = vmul.f32 %v7730_v25, %v4056_v14  ;;  %v7735_v25 = vld [vmem:[%s10260_s8 + $0x6] ss:$0 sm:$0xff]  ;;  %v7566_v14 = vld [vmem:[%s10261_s9 + $0x208] sm:$0xff]  ;;  %4589 = vmatpush.bf16.msrb.mxu1 %v7569_v34 }
 0xb28   : > { %v4077_v0 = vadd.f32 %v7731_v62, %v4068_v27  ;;  %4267 = vmatpush.bf16.msrb.mxu0 %v7539_v6  ;;  %v7572_v27 = vld [vmem:[%s10261_s9 + $0x238] sm:$0xff]  ;;  %v7579_v6 = vld [vmem:[%s10299_s6 + $0x230] sm:$0xff] }
 0xb29   : > { %v4074_v1 = vadd.f32 %v7731_v62, %v4065_v16  ;;  %v7556_v62 = vld [vmem:[%s10299_s6 + $0x1c0] sm:$0xff] }
 0xb2a   : > { %v4081_v17 = vmax.f32 %v4077_v0, 0.0  ;;  %4493 = vmatpush.bf16.msrb.mxu2 %v7561_v26  ;;  %v7740_v26 = vld [vmem:[%s10303_s3 + $0x8] ss:$0 sm:$0xff] }
 0xb2b   : > { %v4078_v44 = vmax.f32 %v4074_v1, 0.0  ;;  %4590 = vmatpush.bf16.msrb.mxu1 %v7568_v9 }
 0xb2c   : > { %v4084_v10 = vpack.c.bf16 %v4081_v17, %v4080_v61  ;;  %4551 = vmatpush.bf16.msra.mxu0 %v7566_v14 }
 0xb2d   : > { %v4083_v37 = vpack.c.bf16 %v4079_v2, %v4078_v44 }
 0xb2e   : > { %4095 = vmatpush.bf16.msra.mxu3 %v4084_v10  ;;  %4494 = vmatpush.bf16.msrb.mxu2 %v7560_v56  ;;  %v7736_v10 = vld [vmem:[%s10303_s3 + $0x7] ss:$0 sm:$0xff] }
 0xb30   : > { %4552 = vmatpush.bf16.msra.mxu0 %v7565_v41 }
 0xb32   : > { %4096 = vmatpush.bf16.msra.mxu3 %v4083_v37  ;;  %4495 = vmatpush.bf16.msrb.mxu2 %v7559_v53  ;;  %v7737_v37 = vld [vmem:[%s10304_s5 + $0x7] ss:$0 sm:$0xff] }
 0xb35   : > { %6626 = vmatmul.msk.bf16.vlgmr.msra.gmra.mxu3 %vm4085_vm8, %v4082_v7 }
 0xb36   : > { %4320 = vmatpush.bf16.msrb.mxu3 %v7549_v50  ;;  %4496 = vmatpush.bf16.msrb.mxu2 %v7558_v40  ;;  %v7578_v50 = vld [vmem:[%s10299_s6 + $0x228] sm:$0xff] }
 0xb37   : > { %v7741_v40 = vld [vmem:[%s10304_s5 + $0x8] ss:$0 sm:$0xff] }
 0xb3a   : > { %4321 = vmatpush.bf16.msrb.mxu3 %v7548_v12  ;;  %4497 = vmatpush.bf16.msrb.mxu2 %v7557_v55  ;;  %v7576_v12 = vld [vmem:[%s10299_s6 + $0x218] sm:$0xff] }
 0xb3e   : > { %4322 = vmatpush.bf16.msrb.mxu3 %v7547_v48  ;;  %4498 = vmatpush.bf16.msrb.mxu2 %v7556_v62  ;;  %v7574_v48 = vld [vmem:[%s10299_s6 + $0x208] sm:$0xff] }
 0xb42   : > { %4396 = vmatpush.bf16.msra.mxu3 %v7555_v38  ;;  %v7583_v38 = vld [vmem:[%s10261_s9 + $0x250] sm:$0xff] }
 0xb46   : > { %4397 = vmatpush.bf16.msra.mxu3 %v7554_v13  ;;  %v7586_v13 = vld [vmem:[%s10261_s9 + $0x268] sm:$0xff] }
 0xb4a   : > { %4398 = vmatpush.bf16.msra.mxu3 %v7553_v5  ;;  %v7589_v5 = vld [vmem:[%s10261_s9 + $0x280] sm:$0xff] }
 0xbb8   : > { %v4098_v43 = vpop.f32.mrf.mxu3 }
 0xbb9   : > { %v4102_v39 = vpack.c.bf16 %v4098_v43, %v4098_v43  ;;  %v7564_v43 = vld [vmem:[%s10261_s9 + $0x1f8] sm:$0xff] }
 0xbba   : > { %4553 = vmatpush.bf16.msra.mxu0 %v7564_v43 }
 0xbbb   : > { %4176 = vmatmul.bf16.vlgmr.msra.gmra.mxu2 %v4102_v39  ;;  %v7567_v39 = vld [vmem:[%s10261_s9 + $0x210] sm:$0xff] }
 0xbbc   : > { %4591 = vmatpush.bf16.msrb.mxu1 %v7567_v39  ;;  %4857 = vmatpush.bf16.msra.mxu2 %v7589_v5  ;;  %v7593_v39 = vld [vmem:[%s10264_s12 + $0x98] sm:$0xff] }
 0xbbd   : > { %v7605_v5 = vld [vmem:[%s10299_s6 + $0x278] sm:$0xff] }
 0xbc0   : > { %v4100_v42 = vpop.f32.mrf.mxu3 }
 0xbc1   : > { %v7570_v42 = vld [vmem:[%s10261_s9 + $0x228] sm:$0xff] }
 0xc3e   : > { %v4177_v15 = vpop.f32.mrf.mxu2 }
 0xc3f   : > { %v4186_v49 = vmul.f32 %v7732_v46, %v4177_v15  ;;  %v7739_v46 = vld [vmem:[%s10260_s8 + $0x7] ss:$0 sm:$0xff] }
 0xc41   : > { %v4192_v32 = vadd.f32 %v7733_v47, %v4186_v49 }
 0xc43   : > { %v4193_v24 = vmax.f32 %v4192_v32, 0.0 }
 0xc45   : > { %v4194_v22 = vpack.c.bf16 %v4193_v24, %v4193_v24 }
 0xc46   : > { %v4179_v28 = vpop.f32.mrf.mxu2 }
 0xc47   : > { %4268 = vmatmul.bf16.vlgmr.msrb.gmra.mxu0 %v4194_v22  ;;  %v7577_v28 = vld [vmem:[%s10299_s6 + $0x220] sm:$0xff] }
 0xc48   : > { %4721 = vmatpush.bf16.msrb.mxu0 %v7580_v3 }
 0xc4c   : > { %4722 = vmatpush.bf16.msrb.mxu0 %v7579_v6 }
 0xc50   : > { %4723 = vmatpush.bf16.msrb.mxu0 %v7578_v50 }
 0xc54   : > { %4724 = vmatpush.bf16.msrb.mxu0 %v7577_v28 }
 0xc58   : > { %4725 = vmatpush.bf16.msrb.mxu0 %v7576_v12  ;;  %v7591_v12 = vld [vmem:[%s10264_s12 + $0x88] sm:$0xff] }
 0xc5c   : > { %4726 = vmatpush.bf16.msrb.mxu0 %v7575_v30 }
 0xc60   : > { %4727 = vmatpush.bf16.msrb.mxu0 %v7574_v48 }
 0xc64   : > { %4728 = vmatpush.bf16.msrb.mxu0 %v7573_v21 }
 0xcc4   : > { %v4269_v60 = vpop.f32.mrf.mxu0 }
 0xcc5   : > { %v4278_v57 = vmul.f32 %v7734_v8, %v4269_v60 }
 0xcc7   : > { %v4284_v54 = vadd.f32 %v7735_v25, %v4278_v57 }
 0xcc9   : > { %v4285_v58 = vmax.f32 %v4284_v54, 0.0 }
 0xccb   : > { %v4286_v18 = vpack.c.bf16 %v4285_v58, %v4285_v58 }
 0xccc   : > { %v4271_v29 = vpop.f32.mrf.mxu0 }
 0xccd   : > { %6745 = vmatmul.msk.bf16.vlgmr.msrb.gmra.mxu3 %vm1299_vm4, %v4286_v18  ;;  %6764 = vmatmul.msk.bf16.vlgmr.msra.gmra.mxu1 %vm1299_vm4, %v4286_v18 }
 0xcce   : > { %4627 = vmatpush.bf16.msrb.mxu3 %v7572_v27  ;;  %4781 = vmatpush.bf16.msra.mxu1 %v7583_v38  ;;  %v7582_v27 = vld [vmem:[%s10261_s9 + $0x248] sm:$0xff]  ;;  %v4885_v38 = vld [vmem:[%s10267_s15] sm:$0xf] }
 0xcd2   : > { %4628 = vmatpush.bf16.msrb.mxu3 %v7571_v63  ;;  %4782 = vmatpush.bf16.msra.mxu1 %v7582_v27 }
 0xcd6   : > { %4629 = vmatpush.bf16.msrb.mxu3 %v7570_v42 }
 0xcdd   : > { %6783 = vmatmul.msk.bf16.vlgmr.msra.gmra.mxu3 %vm1299_vm4, %v4286_v18 }
 0xcde   : > { %4819 = vmatpush.bf16.msra.mxu3 %v7586_v13  ;;  %v7590_v13 = vld [vmem:[%s10264_s12 + $0x80] sm:$0xff] }
 0xd4a   : > { %v4362_v4 = vpop.f32.mrf.mxu1 }
 0xd4b   : > { %v4409_v61 = vadd.f32 %v4362_v4, %v4177_v15 }
 0xd50   : > { %v4324_v23 = vpop.f32.mrf.mxu3 }
 0xd51   : > { %v4404_v0 = vrot.slane %v4324_v23, 7  ;;  %v7585_v23 = vld [vmem:[%s10261_s9 + $0x260] sm:$0xff] }
 0xd52   : > { %v4364_v16 = vpop.f32.mrf.mxu1  ;;  %4820 = vmatpush.bf16.msra.mxu3 %v7585_v23  ;;  %v7607_v23 = vld [vmem:[%s10261_s9 + $0x290] sm:$0xff] }
 0xd53   : > { %v4405_v1 = vsel %vm937_vm3, 0.0, %v4404_v0  ;;  %v7588_v16 = vld [vmem:[%s10261_s9 + $0x278] sm:$0xff] }
 0xd54   : > { %v4410_v33 = vadd.f32 %v4409_v61, %v4405_v1  ;;  %4858 = vmatpush.bf16.msra.mxu2 %v7588_v16  ;;  %v7584_v0 = vld [vmem:[%s10261_s9 + $0x258] sm:$0xff]  ;;  %v7587_v1 = vld [vmem:[%s10261_s9 + $0x270] sm:$0xff]  ;;  %v7742_v61 = vld [vmem:[%s10259_s7 + $0x8] ss:$0 sm:$0xff] }
 0xd55   : > { %v7610_v16 = vld [vmem:[%s10261_s9 + $0x2a8] sm:$0xff] }
 0xd56   : > { %4821 = vmatpush.bf16.msra.mxu3 %v7584_v0  ;;  %v7609_v0 = vld [vmem:[%s10261_s9 + $0x2a0] sm:$0xff] }
 0xd58   : > { %v4326_v19 = vpop.f32.mrf.mxu3  ;;  %4859 = vmatpush.bf16.msra.mxu2 %v7587_v1  ;;  %v7614_v1 = vld [vmem:[%s10261_s9 + $0x2c8] sm:$0xff] }
 0xd59   : > { %v7581_v19 = vld [vmem:[%s10261_s9 + $0x240] sm:$0xff] }
 0xd5a   : > { %4783 = vmatpush.bf16.msra.mxu1 %v7581_v19  ;;  %v7606_v19 = vld [vmem:[%s10261_s9 + $0x288] sm:$0xff] }
 0xd60   : > { %v4400_v17 = vpop.f32.mrf.mxu3 }
 0xd61   : > { %v4407_v35 = vrot.slane %v4400_v17, 1  ;;  %v7743_v17 = vld [vmem:[%s10260_s8 + $0x8] ss:$0 sm:$0xff] }
 0xd63   : > { %v4408_v44 = vsel %vm4406_vm9, 0.0, %v4407_v35 }
 0xd64   : > { %v4411_v2 = vadd.f32 %v4410_v33, %v4408_v44 }
 0xd66   : > { %v4417_v7 = vmul.f32 %v7736_v10, %v4411_v2 }
 0xd68   : > { %v4423_v11 = vadd.f32 %v7737_v37, %v4417_v7  ;;  %v4402_v45 = vpop.f32.mrf.mxu3  ;;  %v7597_v7 = vld [vmem:[%s10264_s12 + $0xb8] sm:$0xff] }
 0xd69   : > { %v7595_v45 = vld [vmem:[%s10264_s12 + $0xa8] sm:$0xff] }
 0xd6a   : > { %v4424_v36 = vmax.f32 %v4423_v11, 0.0  ;;  %v7596_v11 = vld [vmem:[%s10264_s12 + $0xb0] sm:$0xff] }
 0xd6c   : > { %v4425_v51 = vpack.c.bf16 %v4424_v36, %v4424_v36 }
 0xd6e   : > { %4499 = vmatmul.bf16.vlgmr.msrb.gmra.mxu2 %v4425_v51  ;;  %v7594_v51 = vld [vmem:[%s10264_s12 + $0xa0] sm:$0xff] }
 0xd6f   : > { %5066 = vmatpush.bf16.msrb.mxu2 %v7605_v5 }
 0xdf1   : > { %v4500_v47 = vpop.f32.mrf.mxu2 }
 0xdf2   : > { %v4509_v15 = vmul.f32 %v7738_v20, %v4500_v47  ;;  %v7744_v20 = vld [vmem:[%s10262_s10 + $0x2] ss:$0 sm:$0xff] }
 0xdf4   : > { %v4515_v49 = vadd.f32 %v7739_v46, %v4509_v15  ;;  %v7745_v15 = vld [vmem:[%s10263_s11 + $0x2] ss:$0 sm:$0xff] }
 0xdf6   : > { %v4516_v32 = vmax.f32 %v4515_v49, 0.0  ;;  %v7592_v49 = vld [vmem:[%s10264_s12 + $0x90] sm:$0xff] }
 0xdf8   : > { %v4517_v24 = vpack.c.bf16 %v4516_v32, %v4516_v32 }
 0xdf9   : > { %v4502_v22 = vpop.f32.mrf.mxu2 }
 0xdfa   : > { %6854 = vmatmul.msk.bf16.vlgmr.msra.gmra.mxu0 %vm1299_vm4, %v4517_v24  ;;  %6873 = vmatmul.msk.bf16.vlgmr.msrb.gmra.mxu1 %vm1299_vm4, %v4517_v24 }
 0xdfb   : > { %6892 = vmatmul.msk.bf16.vlgmr.msrb.gmra.mxu3 %vm1299_vm4, %v4517_v24 }
 0xdfc   : > { %4974 = vmatpush.bf16.msrb.mxu3 %v7597_v7 }
 0xe00   : > { %4975 = vmatpush.bf16.msrb.mxu3 %v7596_v11 }
 0xe04   : > { %4976 = vmatpush.bf16.msrb.mxu3 %v7595_v45 }
 0xe08   : > { %4977 = vmatpush.bf16.msrb.mxu3 %v7594_v51  ;;  %v7620_v51 = vld [vmem:[%s10299_s6 + $0x2a8] sm:$0xff] }
 0xe0c   : > { %4978 = vmatpush.bf16.msrb.mxu3 %v7593_v39  ;;  %v7615_v39 = vld [vmem:[%s10299_s6 + $0x280] sm:$0xff] }
 0xe10   : > { %4979 = vmatpush.bf16.msrb.mxu3 %v7592_v49 }
 0xe14   : > { %4980 = vmatpush.bf16.msrb.mxu3 %v7591_v12  ;;  %v7750_v12 = vld [vmem:[%s10303_s3 + $0xa] ss:$0 sm:$0xff] }
 0xe18   : > { %4981 = vmatpush.bf16.msrb.mxu3 %v7590_v13 }
 0xe77   : > { %v4555_v8 = vpop.f32.mrf.mxu0  ;;  %v4593_v25 = vpop.f32.mrf.mxu1 }
 0xe78   : > { %v4635_v60 = vrot.slane %v4555_v8, 7  ;;  %v4639_v57 = vadd.f32 %v4593_v25, %v4411_v2  ;;  %v7604_v8 = vld [vmem:[%s10299_s6 + $0x270] sm:$0xff]  ;;  %v7603_v25 = vld [vmem:[%s10299_s6 + $0x268] sm:$0xff] }
 0xe79   : > { %5067 = vmatpush.bf16.msrb.mxu2 %v7604_v8 }
 0xe7a   : > { %v4636_v54 = vsel %vm937_vm3, 0.0, %v4635_v60  ;;  %v7602_v60 = vld [vmem:[%s10299_s6 + $0x260] sm:$0xff] }
 0xe7b   : > { %v4640_v52 = vadd.f32 %v4639_v57, %v4636_v54  ;;  %v7601_v57 = vld [vmem:[%s10299_s6 + $0x258] sm:$0xff]  ;;  %v7600_v54 = vld [vmem:[%s10299_s6 + $0x250] sm:$0xff] }
 0xe7d   : > { %5068 = vmatpush.bf16.msrb.mxu2 %v7603_v25 }
 0xe7e   : > { %v4631_v58 = vpop.f32.mrf.mxu3 }
 0xe7f   : > { %v4637_v18 = vrot.slane %v4631_v58, 1  ;;  %v4557_v29 = vpop.f32.mrf.mxu0  ;;  %v4595_v59 = vpop.f32.mrf.mxu1 }
 0xe80   : > { %v7599_v59 = vld [vmem:[%s10299_s6 + $0x248] sm:$0xff] }
 0xe81   : > { %v4638_v56 = vsel %vm4406_vm9, 0.0, %v4637_v18  ;;  %5069 = vmatpush.bf16.msrb.mxu2 %v7602_v60  ;;  %v7624_v60 = vld [vmem:[%s10261_s9 + $0x2d8] sm:$0xff] }
 0xe82   : > { %v4641_v53 = vadd.f32 %v4640_v52, %v4638_v56  ;;  %v7598_v52 = vld [vmem:[%s10299_s6 + $0x240] sm:$0xff]  ;;  %v7611_v56 = vld [vmem:[%s10261_s9 + $0x2b0] sm:$0xff] }
 0xe84   : > { %v4647_v55 = vmul.f32 %v7740_v26, %v4641_v53  ;;  %v7608_v26 = vld [vmem:[%s10261_s9 + $0x298] sm:$0xff] }
 0xe85   : > { %5070 = vmatpush.bf16.msrb.mxu2 %v7601_v57  ;;  %5126 = vmatpush.bf16.msra.mxu0 %v7608_v26  ;;  %v7627_v57 = vld [vmem:[%s10261_s9 + $0x2f0] sm:$0xff]  ;;  %v7637_v26 = vld [vmem:[%s10299_s6 + $0x2e8] sm:$0xff] }
 0xe86   : > { %v4653_v4 = vadd.f32 %v7741_v40, %v4647_v55  ;;  %v4633_v62 = vpop.f32.mrf.mxu3  ;;  %v7747_v40 = vld [vmem:[%s10304_s5 + $0x9] ss:$0 sm:$0xff] }
 0xe88   : > { %v4654_v14 = vmax.f32 %v4653_v4, 0.0 }
 0xe89   : > { %5071 = vmatpush.bf16.msrb.mxu2 %v7600_v54  ;;  %5127 = vmatpush.bf16.msra.mxu0 %v7607_v23  ;;  %v7630_v54 = vld [vmem:[%s10261_s9 + $0x308] sm:$0xff]  ;;  %v7635_v23 = vld [vmem:[%s10299_s6 + $0x2d8] sm:$0xff] }
 0xe8a   : > { %v4655_v34 = vpack.c.bf16 %v4654_v14, %v4654_v14 }
 0xe8c   : > { %4729 = vmatmul.bf16.vlgmr.msrb.gmra.mxu0 %v4655_v34 }
 0xe8d   : > { %5072 = vmatpush.bf16.msrb.mxu2 %v7599_v59  ;;  %5128 = vmatpush.bf16.msra.mxu0 %v7606_v19  ;;  %v7639_v59 = vld [vmem:[%s10299_s6 + $0x2f8] sm:$0xff]  ;;  %v7633_v19 = vld [vmem:[%s10299_s6 + $0x2c8] sm:$0xff] }
 0xe91   : > { %5073 = vmatpush.bf16.msrb.mxu2 %v7598_v52  ;;  %5202 = vmatpush.bf16.msrb.mxu0 %v7614_v1  ;;  %v7638_v52 = vld [vmem:[%s10299_s6 + $0x2f0] sm:$0xff]  ;;  %v7642_v1 = vld [vmem:[%s10261_s9 + $0x328] sm:$0xff] }
 0xf09   : > { %v4730_v35 = vpop.f32.mrf.mxu0 }
 0xf0a   : > { %v4739_v33 = vmul.f32 %v7742_v61, %v4730_v35  ;;  %v7613_v61 = vld [vmem:[%s10261_s9 + $0x2c0] sm:$0xff]  ;;  %v7622_v35 = vld [vmem:[%s10299_s6 + $0x2b8] sm:$0xff] }
 0xf0b   : > { %5203 = vmatpush.bf16.msrb.mxu0 %v7613_v61  ;;  %v7645_v61 = vld [vmem:[%s10261_s9 + $0x340] sm:$0xff] }
 0xf0c   : > { %v4745_v10 = vadd.f32 %v7743_v17, %v4739_v33  ;;  %v7612_v17 = vld [vmem:[%s10261_s9 + $0x2b8] sm:$0xff]  ;;  %v7748_v33 = vld [vmem:[%s10259_s7 + $0x9] ss:$0 sm:$0xff] }
 0xf0e   : > { %v4746_v44 = vmax.f32 %v4745_v10, 0.0  ;;  %v7749_v10 = vld [vmem:[%s10260_s8 + $0x9] ss:$0 sm:$0xff] }
 0xf0f   : > { %5204 = vmatpush.bf16.msrb.mxu0 %v7612_v17  ;;  %v7648_v17 = vld [vmem:[%s10261_s9 + $0x358] sm:$0xff] }
 0xf10   : > { %v4747_v2 = vpack.c.bf16 %v4746_v44, %v4746_v44 }
 0xf11   : > { %v4732_v37 = vpop.f32.mrf.mxu0 }
 0xf12   : > { %6963 = vmatmul.msk.bf16.vlgmr.msra.gmra.mxu1 %vm1299_vm4, %v4747_v2  ;;  %6982 = vmatmul.msk.bf16.vlgmr.msra.gmra.mxu3 %vm1299_vm4, %v4747_v2 }
 0xf13   : > { %7001 = vmatmul.msk.bf16.vlgmr.msra.gmra.mxu2 %vm1299_vm4, %v4747_v2 }
 0xf8f   : > { %v4785_v36 = vpop.f32.mrf.mxu1 }
 0xf90   : > { %v4865_v41 = vrot.slane %v4785_v36, 7  ;;  %v7621_v36 = vld [vmem:[%s10299_s6 + $0x2b0] sm:$0xff] }
 0xf92   : > { %v4866_v42 = vsel %vm937_vm3, 0.0, %v4865_v41  ;;  %v7619_v41 = vld [vmem:[%s10299_s6 + $0x2a0] sm:$0xff] }
 0xf95   : > { %v4823_v9 = vpop.f32.mrf.mxu3 }
 0xf96   : > { %v4869_v63 = vadd.f32 %v4823_v9, %v4641_v53  ;;  %v4861_v43 = vpop.f32.mrf.mxu2  ;;  %v7746_v53 = vld [vmem:[%s10303_s3 + $0x9] ss:$0 sm:$0xff]  ;;  %v7618_v9 = vld [vmem:[%s10299_s6 + $0x298] sm:$0xff] }
 0xf97   : > { %v4867_v3 = vrot.slane %v4861_v43, 1  ;;  %v4787_v6 = vpop.f32.mrf.mxu1  ;;  %v7616_v43 = vld [vmem:[%s10299_s6 + $0x288] sm:$0xff] }
 0xf98   : > { %v4870_v50 = vadd.f32 %v4869_v63, %v4866_v42  ;;  %v7617_v63 = vld [vmem:[%s10299_s6 + $0x290] sm:$0xff]  ;;  %v7625_v42 = vld [vmem:[%s10261_s9 + $0x2e0] sm:$0xff] }
 0xf99   : > { %v4868_v46 = vsel %vm4406_vm9, 0.0, %v4867_v3  ;;  %v7628_v3 = vld [vmem:[%s10261_s9 + $0x2f8] sm:$0xff]  ;;  %v7631_v6 = vld [vmem:[%s10261_s9 + $0x310] sm:$0xff]  ;;  %5357 = vmatpush.bf16.msra.mxu3 %v7625_v42 }
 0xf9a   : > { %v4871_v47 = vadd.f32 %v4870_v50, %v4868_v46  ;;  %5395 = vmatpush.bf16.msra.mxu2 %v7628_v3 }
 0xf9c   : > { %v4877_v32 = vmul.f32 %v7744_v20, %v4871_v47 }
 0xf9d   : > { %v4825_v24 = vpop.f32.mrf.mxu3  ;;  %5358 = vmatpush.bf16.msra.mxu3 %v7624_v60  ;;  %v7651_v60 = vld [vmem:[%s10270_s18 + $0x10] sm:$0xff] }
 0xf9e   : > { %v4863_v22 = vpop.f32.mrf.mxu2  ;;  %v4883_v28 = vadd.f32 %v7745_v15, %v4877_v32  ;;  %5396 = vmatpush.bf16.msra.mxu2 %v7627_v57  ;;  %v7650_v57 = vld [vmem:[%s10270_s18 + $0x8] sm:$0xff] }
 0xfa0   : > { %v4884_v30 = vmax.f32 %v4883_v28, 0.0 }
 0xfa2   : > { %v4886_v48 = vpack.c.bf16 %v4884_v30, %v4884_v30 }
 0xfa4   : > { %v4893_v21 = vsel %vm4891_vm10, %v4886_v48, 0 }
 0xfa5   : > { %4902 = vmatpush.bf16.msrb.mxu1 %v4893_v21  ;;  %v7751_v21 = vld [vmem:[%s10304_s5 + $0xa] ss:$0 sm:$0xff] }
 0xfa8   : > { %7004 = vmatmul.msk.bf16.vlgmr.msrb.gmra.mxu1 %vm4887_vm11, %v4885_v38 }
 0xfa9   : > { %5164 = vmatpush.bf16.msra.mxu1 %v7611_v56  ;;  %v7752_v56 = vld [vmem:[%s10259_s7 + $0xa] ss:$0 sm:$0xff] }
 0xfad   : > { %5165 = vmatpush.bf16.msra.mxu1 %v7610_v16  ;;  %v7634_v16 = vld [vmem:[%s10299_s6 + $0x2d0] sm:$0xff] }
 0xfb1   : > { %5166 = vmatpush.bf16.msra.mxu1 %v7609_v0  ;;  %v7632_v0 = vld [vmem:[%s10299_s6 + $0x2c0] sm:$0xff] }
 0xfb5   : > { %5297 = vmatpush.bf16.msrb.mxu1 %v7622_v35 }
 0xfb9   : > { %5298 = vmatpush.bf16.msrb.mxu1 %v7621_v36  ;;  %v7754_v36 = vld [vmem:[%s10303_s3 + $0xb] ss:$0 sm:$0xff]  ;;  %s7774_s3 = sshra.s32 %s5792_s30, 4  ;;  %s7775_s3 = int_to_ptr.hbm [resolvable:$true] %s7774_s3 }
 0xfba   : > { %p7781_p0 = scmp.lt.s32.totalorder %s7775_s3, %s10272_s20 }
 0xfbd   : > { %5299 = vmatpush.bf16.msrb.mxu1 %v7620_v51 }
 0xfc1   : > { %5300 = vmatpush.bf16.msrb.mxu1 %v7619_v41 }
 0xfc5   : > { %5301 = vmatpush.bf16.msrb.mxu1 %v7618_v9  ;;  %v7755_v9 = vld [vmem:[%s10304_s5 + $0xb] ss:$0 sm:$0xff]  ;;  %s7776_s5 = scalar_lea.hbm %s7775_s3, 1 }
 0xfc6   : > { %p7777_p11 = scmp.ne.s32.totalorder %s7775_s3, %s7776_s5  ;;  %p7782_p1 = scmp.lt.s32.totalorder %s7780_s25, %s7776_s5 }
 0xfc8   : > { %p7778_p12 = pnand %p7777_p11, %p7967_p5  ;;  %p7783_p2 = por %p7782_p1, %p7781_p0 }
 0xfc9   : > { %5302 = vmatpush.bf16.msrb.mxu1 %v7617_v63 }
 0xfca   : > { %p7779_p13 = pneg %p7778_p12 }
 0xfcc   : > { %p7784_p3 = pnand %p7783_p2, %p7779_p13 }
 0xfcd   : > { %5303 = vmatpush.bf16.msrb.mxu1 %v7616_v43 }
 0xfd1   : > { %5304 = vmatpush.bf16.msrb.mxu1 %v7615_v39 }
0x1025   : > { %v4904_v58 = vpop.f32.mrf.mxu1 }
0x1026   : > { %v4908_v18 = vpack.c.bf16 %v4904_v58, %v4904_v58  ;;  %v7623_v58 = vld [vmem:[%s10261_s9 + $0x2d0] sm:$0xff] }
0x1027   : > { %5359 = vmatpush.bf16.msra.mxu3 %v7623_v58 }
0x1028   : > { %4982 = vmatmul.bf16.vlgmr.msrb.gmra.mxu3 %v4908_v18  ;;  %v7626_v18 = vld [vmem:[%s10261_s9 + $0x2e8] sm:$0xff] }
0x1029   : > { %5397 = vmatpush.bf16.msra.mxu2 %v7626_v18 }
0x102b   : > { %5527 = vmatpush.bf16.msrb.mxu3 %v7639_v59 }
0x102d   : > { %v4906_v29 = vpop.f32.mrf.mxu1 }
0x102e   : > { %v7629_v29 = vld [vmem:[%s10261_s9 + $0x300] sm:$0xff] }
0x102f   : > { %5528 = vmatpush.bf16.msrb.mxu3 %v7638_v52 }
0x1033   : > { %5529 = vmatpush.bf16.msrb.mxu3 %v7637_v26 }
0x10ab   : > { %v4983_v55 = vpop.f32.mrf.mxu3 }
0x10ac   : > { %v4992_v4 = vmul.f32 %v7746_v53, %v4983_v55  ;;  %v7753_v53 = vld [vmem:[%s10260_s8 + $0xa] ss:$0 sm:$0xff] }
0x10ae   : > { %v4998_v62 = vadd.f32 %v7747_v40, %v4992_v4 }
0x10b0   : > { %v4999_v14 = vmax.f32 %v4998_v62, 0.0 }
0x10b2   : > { %v5000_v34 = vpack.c.bf16 %v4999_v14, %v4999_v14 }
0x10b3   : > { %v4985_v27 = vpop.f32.mrf.mxu3 }
0x10b4   : > { %5074 = vmatmul.bf16.vlgmr.msrb.gmra.mxu2 %v5000_v34  ;;  %v7636_v27 = vld [vmem:[%s10299_s6 + $0x2e0] sm:$0xff] }
0x10b5   : > { %5530 = vmatpush.bf16.msrb.mxu3 %v7636_v27  ;;  %5587 = vmatpush.bf16.msrb.mxu2 %v7642_v1 }
0x10b9   : > { %5531 = vmatpush.bf16.msrb.mxu3 %v7635_v23 }
0x10bd   : > { %5532 = vmatpush.bf16.msrb.mxu3 %v7634_v16 }
0x10c1   : > { %5533 = vmatpush.bf16.msrb.mxu3 %v7633_v19 }
0x10c5   : > { %5534 = vmatpush.bf16.msrb.mxu3 %v7632_v0 }
0x1137   : > { %v5075_v44 = vpop.f32.mrf.mxu2 }
0x1138   : > { %v5084_v2 = vmul.f32 %v7748_v33, %v5075_v44 }
0x113a   : > { %v5090_v37 = vadd.f32 %v7749_v10, %v5084_v2 }
0x113c   : > { %v5091_v7 = vmax.f32 %v5090_v37, 0.0 }
0x113e   : > { %v5092_v11 = vpack.c.bf16 %v5091_v7, %v5091_v7 }
0x113f   : > { %v5077_v45 = vpop.f32.mrf.mxu2 }
0x1140   : > { %7123 = vmatmul.msk.bf16.vlgmr.msra.gmra.mxu0 %vm1299_vm4, %v5092_v11  ;;  %7142 = vmatmul.msk.bf16.vlgmr.msra.gmra.mxu1 %vm1299_vm4, %v5092_v11 }
0x1141   : > { %5433 = vmatpush.bf16.msra.mxu0 %v7631_v6  ;;  %5663 = vmatpush.bf16.msra.mxu1 %v7648_v17 }
0x1145   : > { %5434 = vmatpush.bf16.msra.mxu0 %v7630_v54  ;;  %v7649_v54 = vld [vmem:[%s10270_s18] sm:$0xff] }
0x1149   : > { %5435 = vmatpush.bf16.msra.mxu0 %v7629_v29 }
0x1150   : > { %7161 = vmatmul.msk.bf16.vlgmr.msrb.gmra.mxu0 %vm1299_vm4, %v5092_v11 }
0x1151   : > { %5625 = vmatpush.bf16.msrb.mxu0 %v7645_v61 }
0x11bd   : > { %v5130_v50 = vpop.f32.mrf.mxu0  ;;  %v5168_v20 = vpop.f32.mrf.mxu1 }
0x11be   : > { %v5210_v15 = vrot.slane %v5130_v50, 7  ;;  %v5215_v49 = vadd.f32 %v5168_v20, %v4983_v55  ;;  %v7641_v50 = vld [vmem:[%s10261_s9 + $0x320] sm:$0xff]  ;;  %v7644_v20 = vld [vmem:[%s10261_s9 + $0x338] sm:$0xff] }
0x11bf   : > { %5588 = vmatpush.bf16.msrb.mxu2 %v7641_v50  ;;  %5626 = vmatpush.bf16.msrb.mxu0 %v7644_v20 }
0x11c0   : > { %v5211_v32 = vsel %vm937_vm3, 0.0, %v5210_v15  ;;  %v7643_v15 = vld [vmem:[%s10261_s9 + $0x330] sm:$0xff] }
0x11c1   : > { %v5216_v28 = vadd.f32 %v5215_v49, %v5211_v32  ;;  %v7646_v49 = vld [vmem:[%s10261_s9 + $0x348] sm:$0xff] }
0x11c2   : > { %v7756_v32 = vld [vmem:[%s10259_s7 + $0xb] ss:$0 sm:$0xff] }
0x11c3   : > { %5627 = vmatpush.bf16.msrb.mxu0 %v7643_v15 }
0x11c5   : > { %v5132_v46 = vpop.f32.mrf.mxu0  ;;  %v5170_v47 = vpop.f32.mrf.mxu1 }
0x11c6   : > { %v7647_v46 = vld [vmem:[%s10261_s9 + $0x350] sm:$0xff]  ;;  %v7640_v47 = vld [vmem:[%s10261_s9 + $0x318] sm:$0xff] }
0x11c7   : > { %5664 = vmatpush.bf16.msra.mxu1 %v7647_v46  ;;  %5589 = vmatpush.bf16.msrb.mxu2 %v7640_v47 }
0x11cb   : > { %5665 = vmatpush.bf16.msra.mxu1 %v7646_v49 }
0x11cd   : > { %v5206_v24 = vpop.f32.mrf.mxu0 }
0x11ce   : > { %v5213_v22 = vrot.slane %v5206_v24, 1  ;;  %v7757_v24 = vld [vmem:[%s10260_s8 + $0xb] ss:$0 sm:$0xff] }
0x11d0   : > { %v5214_v30 = vsel %vm5212_vm12, 0.0, %v5213_v22 }
0x11d1   : > { %v5217_v48 = vadd.f32 %v5216_v28, %v5214_v30 }
0x11d3   : > { %v5223_v38 = vmul.f32 %v7750_v12, %v5217_v48 }
0x11d5   : > { %v5229_v13 = vadd.f32 %v7751_v21, %v5223_v38  ;;  %v5208_v5 = vpop.f32.mrf.mxu0  ;;  %v7656_v38 = vld [vmem:[%s10270_s18 + $0x38] sm:$0xff] }
0x11d6   : > { %v7654_v5 = vld [vmem:[%s10270_s18 + $0x28] sm:$0xff] }
0x11d7   : > { %v5230_v8 = vmax.f32 %v5229_v13, 0.0  ;;  %v7655_v13 = vld [vmem:[%s10270_s18 + $0x30] sm:$0xff] }
0x11d9   : > { %v5231_v25 = vpack.c.bf16 %v5230_v8, %v5230_v8  ;;  %v7653_v8 = vld [vmem:[%s10270_s18 + $0x20] sm:$0xff] }
0x11db   : > { %5305 = vmatmul.bf16.vlgmr.msrb.gmra.mxu1 %v5231_v25  ;;  %v7652_v25 = vld [vmem:[%s10270_s18 + $0x18] sm:$0xff] }
0x1258   : > { %v5306_v40 = vpop.f32.mrf.mxu1 }
0x1259   : > { %v5315_v55 = vmul.f32 %v7752_v56, %v5306_v40 }
0x125b   : > { %v5321_v4 = vadd.f32 %v7753_v53, %v5315_v55 }
0x125d   : > { %v5322_v62 = vmax.f32 %v5321_v4, 0.0  ;;  %v7758_v4 = vld [vmem:[%s10268_s16] ss:$0 sm:$0xff] }
0x125f   : > { %v5323_v14 = vpack.c.bf16 %v5322_v62, %v5322_v62 }
0x1260   : > { %v5308_v34 = vpop.f32.mrf.mxu1 }
0x1261   : > { %7232 = vmatmul.msk.bf16.vlgmr.msra.gmra.mxu3 %vm1299_vm4, %v5323_v14  ;;  %7251 = vmatmul.msk.bf16.vlgmr.msra.gmra.mxu2 %vm1299_vm4, %v5323_v14  ;;  %v7759_v34 = vld [vmem:[%s10269_s17] ss:$0 sm:$0xff] }
0x1262   : > { %7270 = vmatmul.msk.bf16.vlgmr.msra.gmra.mxu0 %vm1299_vm4, %v5323_v14  ;;  %5764 = vmatpush.bf16.msra.mxu2 %v7656_v38 }
0x1266   : > { %5765 = vmatpush.bf16.msra.mxu2 %v7655_v13 }
0x126a   : > { %5766 = vmatpush.bf16.msra.mxu2 %v7654_v5 }
0x126e   : > { %5767 = vmatpush.bf16.msra.mxu2 %v7653_v8 }
0x1272   : > { %5768 = vmatpush.bf16.msra.mxu2 %v7652_v25 }
0x1276   : > { %5769 = vmatpush.bf16.msra.mxu2 %v7651_v60 }
0x127a   : > { %5770 = vmatpush.bf16.msra.mxu2 %v7650_v57 }
0x127e   : > { %5771 = vmatpush.bf16.msra.mxu2 %v7649_v54 }
0x12df   : > { %v5437_v35 = vpop.f32.mrf.mxu0 }
0x12e0   : > { %v5443_v44 = vrot.slane %v5437_v35, 1 }
0x12e2   : > { %v5444_v51 = vsel %vm5212_vm12, 0.0, %v5443_v44 }
0x12e4   : > { %v5361_v33 = vpop.f32.mrf.mxu3  ;;  %v5399_v10 = vpop.f32.mrf.mxu2 }
0x12e5   : > { %v5441_v2 = vrot.slane %v5361_v33, 7  ;;  %v5445_v37 = vadd.f32 %v5399_v10, %v5217_v48 }
0x12e7   : > { %v5442_v7 = vsel %vm937_vm3, 0.0, %v5441_v2  ;;  %v5439_v11 = vpop.f32.mrf.mxu0 }
0x12e8   : > { %v5446_v45 = vadd.f32 %v5445_v37, %v5442_v7 }
0x12ea   : > { %v5447_v41 = vadd.f32 %v5446_v45, %v5444_v51 }
0x12ec   : > { %v5453_v63 = vmul.f32 %v7754_v36, %v5447_v41  ;;  %v5363_v43 = vpop.f32.mrf.mxu3  ;;  %v5401_v39 = vpop.f32.mrf.mxu2 }
0x12ee   : > { %v5459_v42 = vadd.f32 %v7755_v9, %v5453_v63 }
0x12f0   : > { %v5460_v3 = vmax.f32 %v5459_v42, 0.0 }
0x12f2   : > { %v5461_v6 = vpack.c.bf16 %v5460_v3, %v5460_v3 }
0x12f4   : > { %5535 = vmatmul.bf16.vlgmr.msrb.gmra.mxu3 %v5461_v6 }
0x1377   : > { %v5536_v22 = vpop.f32.mrf.mxu3 }
0x1378   : > { %v5545_v28 = vmul.f32 %v7756_v32, %v5536_v22 }
0x137a   : > { %v5551_v12 = vadd.f32 %v7757_v24, %v5545_v28 }
0x137c   : > { %v5552_v30 = vmax.f32 %v5551_v12, 0.0 }
0x137e   : > { %v5553_v48 = vpack.c.bf16 %v5552_v30, %v5552_v30 }
0x137f   : > { %v5538_v21 = vpop.f32.mrf.mxu3 }
0x1380   : > { %7341 = vmatmul.msk.bf16.vlgmr.msrb.gmra.mxu2 %vm1299_vm4, %v5553_v48  ;;  %7360 = vmatmul.msk.bf16.vlgmr.msrb.gmra.mxu0 %vm1299_vm4, %v5553_v48 }
0x1381   : > { %7379 = vmatmul.msk.bf16.vlgmr.msra.gmra.mxu1 %vm1299_vm4, %v5553_v48 }
0x13fd   : > { %v5629_v58 = vpop.f32.mrf.mxu0 }
0x13fe   : > { %v5667_v18 = vpop.f32.mrf.mxu1  ;;  %v5675_v26 = vadd.f32 %v5629_v58, %v5447_v41 }
0x13ff   : > { %v5673_v59 = vrot.slane %v5667_v18, 1 }
0x1401   : > { %v5674_v62 = vsel %vm5212_vm12, 0.0, %v5673_v59 }
0x1403   : > { %v5591_v29 = vpop.f32.mrf.mxu2 }
0x1404   : > { %v5671_v52 = vrot.slane %v5591_v29, 7 }
0x1405   : > { %v5631_v56 = vpop.f32.mrf.mxu0 }
0x1406   : > { %v5672_v53 = vsel %vm937_vm3, 0.0, %v5671_v52  ;;  %v5669_v40 = vpop.f32.mrf.mxu1 }
0x1407   : > { %v5676_v55 = vadd.f32 %v5675_v26, %v5672_v53 }
0x1409   : > { %v5677_v14 = vadd.f32 %v5676_v55, %v5674_v62 }
0x140b   : > { %v5682_v27 = vmul.f32 %v7758_v4, %v5677_v14  ;;  %v5593_v23 = vpop.f32.mrf.mxu2 }
0x140d   : > { %v5687_v16 = vadd.f32 %v7759_v34, %v5682_v27 }
0x140f   : > { %v5688_v19 = vmax.f32 %v5687_v16, 0.0 }
0x1411   : > { %v5690_v0 = vsel %vm5689_vm13, %v5688_v19, 0.0 }
0x1412   : > { %v5691_v1 = vrot.slane %v5690_v0, 4 }
0x1414   : > { %v5692_v61 = vadd.f32 %v5691_v1, %v5690_v0 }
0x1416   : > { %v5693_v17 = vrot.slane %v5692_v61, 2 }
0x1418   : > { %v5694_v35 = vadd.f32 %v5693_v17, %v5692_v61 }
0x141a   : > { %v5695_v33 = vrot.slane %v5694_v35, 1 }
0x141c   : > { %v5696_v10 = vadd.f32 %v5695_v33, %v5694_v35 }
0x141e   : > { %v5697_v44 = vmul.f32 0.5, %v5696_v10 }
0x1420   : > { %v5698_v2 = vpack.c.bf16 %v5697_v44, %v5697_v44 }
0x1422   : > { %5772 = vmatmul.bf16.vlgmr.msra.gmra.mxu2 %v5698_v2 }
0x14a5   : > { %v5773_v37 = vpop.f32.mrf.mxu2 }
0x14a6   : > { %v5774_v7 = vadd.f32 %v5773_v37, %v5715_v31 }
0x14a8   : > { %5777 = vst [vmem:[%s621_s28] sm:$0x1] %v5774_v7 }
0x14a9   : > { %7787 = shalt.err (!%p7784_p3)
}
0x14aa   : > { %7665 = dma.vmem_to_hbm [thread:$0]  (%p7967_p5), %s5790_s27, 16, %s5792_s30, %s5779_s0  }
0x14ad   : > { %v5775_v11 = vpop.f32.mrf.mxu2 }
0x14ae PF: > { %s10305_s1 = sld [smem:[#allocation7_spill]] }
0x14af   : > { %s10306_s24 = sld [smem:[#allocation5_spill]] }
0x14b4   : > { %p7671_p4 = scmp.ge.s32.totalorder %s10305_s1, 2 }
0x14b5   : > { %s5803_s6 = sand.u32 1, %s10306_s24  }
0x14b6   : > { %p7668_p7 = pnand %p7671_p4, %p7971_p6  ;;  %s5804_s2 = scalar_lea.sflag [#allocation3], %s5803_s6 }
0x14b8   : > { %p7669_p8 = pneg %p7668_p7 }
0x14ba   : > { %7805 = dma.done.wait (%p7669_p8), %s5804_s2, 16  }
0x14bb   : > { %7807 = vsyncadd (%p7669_p8), %s5804_s2, 4294967280  ;;  %s10308_s24 = sld [smem:[#allocation8_spill]]  ;;  %s10311_s1 = smov %s7814_s22 }
0x14bc   : > { %s10309_s5 = sld [smem:[#allocation6_spill]] }
0x14bd   : > { %s10310_s23 = sld [smem:[#allocation9_spill]] }
0x14c1   : > { %p30_p9 = scmp.ge.s32.totalorder %s10308_s24, 4  }
0x14c2   : > { %s10312_s22 = smov %s10309_s5 }
0x14c3   :  { %32 = sbr.rel (!%p30_p9) target bundleno = 11 (0xb), region = 231 }
0x14c8   :  { %5809 = vsyncpa [#allocation3], 1 }
0x14c9   :  { %5811 = vsyncpa [#allocation3 + $0x1], 1 }

</bundles_post_ra>
